<compile_context>
chip_gen: v5e
topology: v5e:2x2
jax: 0.10.0
libtpu: 0.0.40
codegen_flags: <defaults>
</compile_context>

<pallas_src>
import functools

import jax
import jax.numpy as jnp
from jax import lax
from jax.experimental import pallas as pl
from jax.experimental.pallas import tpu as pltpu


_LN_EPS = 1e-5  # PyTorch nn.LayerNorm default


def _erf_poly(z):
    """Abramowitz & Stegun 7.1.26 erf approximation (|err| < ~1.5e-7).

    The 1/(1+p*|z|) divide is done with the EUP approx reciprocal + one Newton
    step so the widest elementwise tensor (M, dff) does not load the VALU.
    """
    a1 = 0.254829592
    a2 = -0.284496736
    a3 = 1.421413741
    a4 = -1.453152027
    a5 = 1.061405429
    p = 0.3275911
    sign = jnp.where(z >= 0.0, 1.0, -1.0)
    az = jnp.abs(z)
    den = 1.0 + p * az
    t = pl.reciprocal(den, approx=True)
    t = t * (2.0 - den * t)          # one Newton refinement
    poly = ((((a5 * t + a4) * t + a3) * t + a2) * t + a1) * t
    return sign * (1.0 - poly * jnp.exp(-az * az))


def _gelu_exact(v):
    # erf-based GELU == PyTorch nn.GELU() (approximate='none').
    return 0.5 * v * (1.0 + _erf_poly(v * 0.7071067811865476))


def _layer_norm_f32(v, gamma, beta):
    mu = jnp.mean(v, axis=-1, keepdims=True)
    var = jnp.mean(jnp.square(v - mu), axis=-1, keepdims=True)
    return (v - mu) * lax.rsqrt(var + _LN_EPS) * gamma + beta


def _softmax_lastdim(scores, seq_valid, seq_pad):
    """Stable softmax over the last axis; masks padded key positions."""
    if seq_valid < seq_pad:
        kidx = lax.broadcasted_iota(jnp.int32, scores.shape, scores.ndim - 1)
        scores = jnp.where(kidx < seq_valid, scores, -1e30)
    scores = scores - jnp.max(scores, axis=-1, keepdims=True)
    probs = jnp.exp(scores)
    denom = jnp.sum(probs, axis=-1, keepdims=True)
    r = pl.reciprocal(denom, approx=True)    # EUP slot
    r = r * (2.0 - denom * r)                # one Newton refinement
    return probs * r


def _encoder_layer_kernel(x_ref, ln1_g_ref, ln1_b_ref, w_in_ref, w_out_ref,
                          b_attn_ref, ln2_g_ref, ln2_b_ref, w1_ref, b1_ref,
                          w2_ref, b2_ref, o_ref,
                          *, num_heads, dim_head, seq_pad, seq_valid, block_b,
                          scale, split_mode):
    dim = num_heads * dim_head
    m = block_b * seq_pad
    compute_dtype = x_ref.dtype  # MXU operand dtype (feed bf16 for full rate)

    # ---- load batch tile, flatten to a 2-D (m, dim) slab --------------------
    x2 = x_ref[...].reshape(m, dim)

    # ---- LayerNorm 1 (f32 statistics) ---------------------------------------
    h1 = _layer_norm_f32(x2.astype(jnp.float32),
                         ln1_g_ref[...].astype(jnp.float32),
                         ln1_b_ref[...].astype(jnp.float32))
    h1c = h1.astype(compute_dtype)

    # ---- fused qkv projection (no bias, as in the spec); downcast the widest
    #      live tensor immediately --------------------------------------------
    qkv = jnp.dot(h1c, w_in_ref[...],
                  preferred_element_type=jnp.float32).astype(compute_dtype)
    q2 = qkv[:, 0 * dim:1 * dim]
    k2 = qkv[:, 1 * dim:2 * dim]
    v2 = qkv[:, 2 * dim:3 * dim]

    if split_mode == "reshape":
        # One relayout per operand; heads become an einsum batch dim.
        def split(t2):
            return t2.reshape(block_b, seq_pad, num_heads, dim_head)

        q, k, v = split(q2), split(k2), split(v2)
        scores = jnp.einsum("bqhd,bkhd->bhqk", q, k,
                            preferred_element_type=jnp.float32) * scale
        probs = _softmax_lastdim(scores, seq_valid, seq_pad).astype(compute_dtype)
        ctx = jnp.einsum("bhqk,bkhd->bqhd", probs, v,
                         preferred_element_type=jnp.float32)
        y2 = ctx.reshape(m, dim)                     # head-major merge
    else:
        # Fallback: loop over heads only (leading-dim stacks, 3-D einsums).
        def split(t2):
            return jnp.stack(
                [t2[:, h * dim_head:(h + 1) * dim_head]
                 .reshape(block_b, seq_pad, dim_head)
                 for h in range(num_heads)],
                axis=0).reshape(num_heads * block_b, seq_pad, dim_head)

        q, k, v = split(q2), split(k2), split(v2)
        scores = jnp.einsum("gqd,gkd->gqk", q, k,
                            preferred_element_type=jnp.float32) * scale
        probs = _softmax_lastdim(scores, seq_valid, seq_pad).astype(compute_dtype)
        ctx = jnp.einsum("gqk,gkd->gqd", probs, v,
                         preferred_element_type=jnp.float32)
        ctx = ctx.reshape(num_heads, block_b, seq_pad, dim_head)
        y2 = jnp.concatenate([ctx[h] for h in range(num_heads)],
                             axis=-1).reshape(m, dim)

    # ---- output projection + residual with the *normed* input ---------------
    attn_out = jnp.dot(y2.astype(compute_dtype), w_out_ref[...],
                       preferred_element_type=jnp.float32)
    attn_out = attn_out + b_attn_ref[...].astype(jnp.float32)
    x1 = attn_out + h1

    # ---- LayerNorm 2 + FNN (Linear -> GELU -> Linear) + residual ------------
    h2 = _layer_norm_f32(x1, ln2_g_ref[...].astype(jnp.float32),
                         ln2_b_ref[...].astype(jnp.float32))
    h2c = h2.astype(compute_dtype)

    ff = jnp.dot(h2c, w1_ref[...], preferred_element_type=jnp.float32)
    ff = _gelu_exact(ff + b1_ref[...].astype(jnp.float32))
    ff_out = jnp.dot(ff.astype(compute_dtype), w2_ref[...],
                     preferred_element_type=jnp.float32)
    ff_out = ff_out + b2_ref[...].astype(jnp.float32)

    out = ff_out + h2
    o_ref[...] = out.reshape(block_b, seq_pad, dim).astype(o_ref.dtype)


def _default_vmem_limit_bytes():
    """Raise the scoped-VMEM limit above the 16/32 MiB defaults, leaving ~15%
    headroom below the chip's physical VMEM."""
    try:
        cap = getattr(pltpu.get_tpu_info(), "vmem_capacity_bytes", None)
        if cap:
            return int(cap * 0.85)
    except Exception:
        pass
    return 48 * 1024 * 1024  # safe on every generation (v7x physical = 64 MiB)


def _pick_block_b(bs, ns_pad, dim, dff, num_heads, itemsize, vmem_limit_bytes):
    """Largest divisor of bs whose per-step VMEM estimate fits the budget."""
    const_bytes = itemsize * (dim * 3 * dim + dim * dim + dim * dff + dff * dim
                              + 6 * dim + dff)           # single-buffered consts
    budget = int(0.75 * vmem_limit_bytes) - const_bytes
    best = 1
    for cand in range(1, bs + 1):
        if bs % cand:
            continue
        m = cand * ns_pad
        act = itemsize * (2 * 2 * m * dim          # x / out tiles, double-buffered
                          + 3 * m * dim            # qkv (compute dtype)
                          + 3 * m * dim            # per-head q,k,v
                          + m * dim                # merged context
                          + m * dff)               # ff activation (compute dtype)
        act += 4 * (2 * cand * num_heads * ns_pad * ns_pad   # scores+probs (f32)
                    + 3 * m * dim                            # f32 LN / residuals
                    + m * dff)                               # f32 pre-GELU
        if act <= budget:
            best = cand
    return best


def transformer_encoder_layer_pallas(
        x, ln1_gamma, ln1_beta, w_in_t, w_out_t, b_attn_out,
        ln2_gamma, ln2_beta, w1_t, b1, w2_t, b2,
        *, num_heads, block_b=None, vmem_limit_bytes=None):
    """x: [bs, ns, dim]; w_in_t: [dim, 3*dim]; w_out_t: [dim, dim];
    w1_t: [dim, dff]; w2_t: [dff, dim]; biases/affines as (1, features)."""
    bs, ns, dim = x.shape
    assert dim % num_heads == 0
    dim_head = dim // num_heads
    dff = w1_t.shape[1]
    scale = float(dim_head) ** (-0.5)

    if vmem_limit_bytes is None:
        vmem_limit_bytes = _default_vmem_limit_bytes()

    # Pad seq so M = block_b * ns_pad is sublane (8) aligned; padded keys are
    # masked inside the kernel's softmax and padded rows sliced off below.
    ns_pad = -(-ns // 8) * 8
    x_in = x if ns_pad == ns else jnp.pad(x, ((0, 0), (0, ns_pad - ns), (0, 0)))

    itemsize = jnp.dtype(x.dtype).itemsize
    if block_b is None:
        block_b = _pick_block_b(bs, ns_pad, dim, dff, num_heads, itemsize,
                                vmem_limit_bytes)
    assert bs % block_b == 0
    grid = (bs // block_b,)

    # Advisory cost estimate for XLA's scheduler.
    m_total = bs * ns_pad
    flops = int(2 * m_total * (dim * 3 * dim + dim * dim + 2 * dim * dff)
                + 4 * bs * num_heads * ns_pad * ns_pad * dim_head)
    transcendentals = int(bs * num_heads * ns_pad * ns_pad + m_total * dff)
    param_bytes = sum(int(a.size) * jnp.dtype(a.dtype).itemsize for a in
                      (ln1_gamma, ln1_beta, w_in_t, w_out_t, b_attn_out,
                       ln2_gamma, ln2_beta, w1_t, b1, w2_t, b2))
    cost = pl.CostEstimate(flops=flops, transcendentals=transcendentals,
                           bytes_accessed=int(2 * x_in.size * itemsize
                                              + param_bytes))

    def run(split_mode, single_buffer):
        kernel = functools.partial(
            _encoder_layer_kernel, num_heads=num_heads, dim_head=dim_head,
            seq_pad=ns_pad, seq_valid=ns, block_b=block_b, scale=scale,
            split_mode=split_mode)

        # Loop-invariant operands: single-buffer (their index_map is constant,
        # so the default double buffer is pure VMEM waste).
        const_kw = dict(pipeline_mode=pl.Buffered(1)) if single_buffer else {}

        def const_spec(shape):
            return pl.BlockSpec(shape, lambda i: (0,) * len(shape), **const_kw)

        return pl.pallas_call(
            kernel,
            out_shape=jax.ShapeDtypeStruct((bs, ns_pad, dim), x.dtype),
            grid_spec=pltpu.PrefetchScalarGridSpec(
                num_scalar_prefetch=0,
                grid=grid,
                in_specs=[
                    pl.BlockSpec((block_b, ns_pad, dim), lambda i: (i, 0, 0)),
                    const_spec((1, dim)),            # LN1 gamma
                    const_spec((1, dim)),            # LN1 beta
                    const_spec((dim, 3 * dim)),      # W_in^T (qkv, no bias)
                    const_spec((dim, dim)),          # W_out^T
                    const_spec((1, dim)),            # attention output bias
                    const_spec((1, dim)),            # LN2 gamma
                    const_spec((1, dim)),            # LN2 beta
                    const_spec((dim, dff)),          # FNN W1^T
                    const_spec((1, dff)),            # FNN b1
                    const_spec((dff, dim)),          # FNN W2^T
                    const_spec((1, dim)),            # FNN b2
                ],
                out_specs=pl.BlockSpec((block_b, ns_pad, dim),
                                       lambda i: (i, 0, 0)),
            ),
            compiler_params=pltpu.CompilerParams(
                dimension_semantics=("parallel",),
                vmem_limit_bytes=int(vmem_limit_bytes)),
            cost_estimate=cost,
        )(x_in, ln1_gamma, ln1_beta, w_in_t, w_out_t, b_attn_out,
          ln2_gamma, ln2_beta, w1_t, b1, w2_t, b2)

    # Try the optimized configuration first; fall back to known-good variants
    # so the kernel always runs even if a lowering feature is unavailable.
    out, last_err = None, None
    for cfg in (("reshape", True), ("reshape", False),
                ("loop", True), ("loop", False)):
        try:
            out = jax.block_until_ready(run(*cfg))
            break
        except Exception as err:  # lowering/feature support varies by version
            last_err = err
            out = None
    if out is None:
        raise last_err
    return out if ns_pad == ns else out[:, :ns, :]


def transformer_encoder_layer_ref(
        x, ln1_gamma, ln1_beta, w_in_t, w_out_t, b_attn_out,
        ln2_gamma, ln2_beta, w1_t, b1, w2_t, b2, *, num_heads):
    """Pure-JAX reference matching the PyTorch forward exactly."""
    bs, ns, dim = x.shape
    dim_head = dim // num_heads
    scale = float(dim_head) ** (-0.5)

    def layer_norm(v, g, b):
        mu = jnp.mean(v, axis=-1, keepdims=True)
        var = jnp.mean(jnp.square(v - mu), axis=-1, keepdims=True)
        return (v - mu) / jnp.sqrt(var + _LN_EPS) * g[0] + b[0]

    h1 = layer_norm(x, ln1_gamma, ln1_beta)
    qkv = jnp.einsum("bnd,de->bne", h1, w_in_t)
    qkv = qkv.reshape(bs, ns, 3, num_heads, dim_head)
    qkv = jnp.transpose(qkv, (2, 0, 3, 1, 4))        # (3, bs, nh, ns, dh)
    q, k, v = qkv[0], qkv[1], qkv[2]
    attn = jnp.einsum("bhqd,bhkd->bhqk", q, k) * scale
    attn = jax.nn.softmax(attn, axis=-1)
    y = jnp.einsum("bhqk,bhkd->bhqd", attn, v)
    y = jnp.transpose(y, (0, 2, 1, 3)).reshape(bs, ns, dim)
    attn_out = jnp.einsum("bnd,de->bne", y, w_out_t) + b_attn_out[0]
    x1 = attn_out + h1                                # residual with normed x

    h2 = layer_norm(x1, ln2_gamma, ln2_beta)
    ff = jnp.einsum("bnd,df->bnf", h2, w1_t) + b1[0]
    ff = jax.nn.gelu(ff, approximate=False)           # exact GELU (erf)
    ff = jnp.einsum("bnf,fd->bnd", ff, w2_t) + b2[0]
    return ff + h2                                    # residual with normed x


if __name__ == "__main__":
    # ViT-ish small shapes: batch=2, seq = num_patches + 1 = 9 (odd, exercises
    # the seq padding/masking path), dim_hidden=32, heads=4, dim_feedforward=64.
    bs, ns, dim_hidden, num_heads, dim_ff = 2, 9, 32, 4, 64

    key = jax.random.PRNGKey(0)
    keys = jax.random.split(key, 12)

    x = jax.random.normal(keys[0], (bs, ns, dim_hidden), jnp.float32)
    ln1_gamma = 1.0 + 0.1 * jax.random.normal(keys[1], (1, dim_hidden), jnp.float32)
    ln1_beta = 0.1 * jax.random.normal(keys[2], (1, dim_hidden), jnp.float32)
    w_in_t = 0.05 * jax.random.normal(keys[3], (dim_hidden, 3 * dim_hidden), jnp.float32)
    w_out_t = 0.05 * jax.random.normal(keys[4], (dim_hidden, dim_hidden), jnp.float32)
    b_attn_out = 0.05 * jax.random.normal(keys[5], (1, dim_hidden), jnp.float32)
    ln2_gamma = 1.0 + 0.1 * jax.random.normal(keys[6], (1, dim_hidden), jnp.float32)
    ln2_beta = 0.1 * jax.random.normal(keys[7], (1, dim_hidden), jnp.float32)
    w1_t = 0.05 * jax.random.normal(keys[8], (dim_hidden, dim_ff), jnp.float32)
    b1 = 0.05 * jax.random.normal(keys[9], (1, dim_ff), jnp.float32)
    w2_t = 0.05 * jax.random.normal(keys[10], (dim_ff, dim_hidden), jnp.float32)
    b2 = 0.05 * jax.random.normal(keys[11], (1, dim_hidden), jnp.float32)

    args = (x, ln1_gamma, ln1_beta, w_in_t, w_out_t, b_attn_out,
            ln2_gamma, ln2_beta, w1_t, b1, w2_t, b2)

    ref = transformer_encoder_layer_ref(*args, num_heads=num_heads)

    # f32 path: full accuracy (tolerance covers the approx-recip + Newton path).
    out = transformer_encoder_layer_pallas(*args, num_heads=num_heads)
    out = jax.block_until_ready(out)
    assert out.shape == (bs, ns, dim_hidden)
    max_err = float(jnp.max(jnp.abs(out - ref)))
    assert max_err < 2e-4, f"f32 mismatch vs reference (max abs err {max_err})"

    # bf16 path (review: bf16 MXU operands, f32 accumulation). Loose sanity check.
    args_bf16 = tuple(a.astype(jnp.bfloat16) for a in args)
    out_bf16 = transformer_encoder_layer_pallas(*args_bf16, num_heads=num_heads)
    out_bf16 = jax.block_until_ready(out_bf16).astype(jnp.float32)
    assert out_bf16.shape == (bs, ns, dim_hidden)
    assert bool(jnp.all(jnp.isfinite(out_bf16)))
    bf16_err = float(jnp.max(jnp.abs(out_bf16 - ref)))
    assert bf16_err < 0.5, f"bf16 path deviates unreasonably (max abs err {bf16_err})"

    print("KERNEL_OK")
</pallas_src>

<mosaic_0001>
module attributes {stable_mosaic.version = 11 : i64} {
  func.func @_encoder_layer_kernel(%arg0: i32, %arg1: memref<2x16x32xf32, #tpu.memory_space<vmem>>, %arg2: memref<1x32xf32, #tpu.memory_space<vmem>>, %arg3: memref<1x32xf32, #tpu.memory_space<vmem>>, %arg4: memref<32x96xf32, #tpu.memory_space<vmem>>, %arg5: memref<32x32xf32, #tpu.memory_space<vmem>>, %arg6: memref<1x32xf32, #tpu.memory_space<vmem>>, %arg7: memref<1x32xf32, #tpu.memory_space<vmem>>, %arg8: memref<1x32xf32, #tpu.memory_space<vmem>>, %arg9: memref<32x64xf32, #tpu.memory_space<vmem>>, %arg10: memref<1x64xf32, #tpu.memory_space<vmem>>, %arg11: memref<64x32xf32, #tpu.memory_space<vmem>>, %arg12: memref<1x32xf32, #tpu.memory_space<vmem>>, %arg13: memref<2x16x32xf32, #tpu.memory_space<vmem>>) attributes {dimension_semantics = [#tpu.dimension_semantics<parallel>], iteration_bounds = array<i64: 1>, scalar_prefetch = 0 : i64, scratch_operands = 0 : i64, tpu.core_type = #tpu.core_type<tc>, window_params = [{transform_indices = @transform_0, window_bounds = array<i64: 2, 16, 32>}, {pipeline_mode = #tpu.pipeline_mode<synchronous>, transform_indices = @transform_1, window_bounds = array<i64: 1, 32>}, {pipeline_mode = #tpu.pipeline_mode<synchronous>, transform_indices = @transform_2, window_bounds = array<i64: 1, 32>}, {pipeline_mode = #tpu.pipeline_mode<synchronous>, transform_indices = @transform_3, window_bounds = array<i64: 32, 96>}, {pipeline_mode = #tpu.pipeline_mode<synchronous>, transform_indices = @transform_4, window_bounds = array<i64: 32, 32>}, {pipeline_mode = #tpu.pipeline_mode<synchronous>, transform_indices = @transform_5, window_bounds = array<i64: 1, 32>}, {pipeline_mode = #tpu.pipeline_mode<synchronous>, transform_indices = @transform_6, window_bounds = array<i64: 1, 32>}, {pipeline_mode = #tpu.pipeline_mode<synchronous>, transform_indices = @transform_7, window_bounds = array<i64: 1, 32>}, {pipeline_mode = #tpu.pipeline_mode<synchronous>, transform_indices = @transform_8, window_bounds = array<i64: 32, 64>}, {pipeline_mode = #tpu.pipeline_mode<synchronous>, transform_indices = @transform_9, window_bounds = array<i64: 1, 64>}, {pipeline_mode = #tpu.pipeline_mode<synchronous>, transform_indices = @transform_10, window_bounds = array<i64: 64, 32>}, {pipeline_mode = #tpu.pipeline_mode<synchronous>, transform_indices = @transform_11, window_bounds = array<i64: 1, 32>}, {transform_indices = @transform_12, window_bounds = array<i64: 2, 16, 32>}]} {
    %c0 = arith.constant 0 : index
    %c0_0 = arith.constant 0 : index
    %c0_1 = arith.constant 0 : index
    %0 = vector.load %arg1[%c0, %c0_0, %c0_1] : memref<2x16x32xf32, #tpu.memory_space<vmem>>, vector<2x16x32xf32>
    %1 = vector.shape_cast %0 : vector<2x16x32xf32> to vector<32x32xf32>
    %c0_2 = arith.constant 0 : index
    %c0_3 = arith.constant 0 : index
    %2 = vector.load %arg2[%c0_2, %c0_3] : memref<1x32xf32, #tpu.memory_space<vmem>>, vector<1x32xf32>
    %c0_4 = arith.constant 0 : index
    %c0_5 = arith.constant 0 : index
    %3 = vector.load %arg3[%c0_4, %c0_5] : memref<1x32xf32, #tpu.memory_space<vmem>>, vector<1x32xf32>
    %cst = arith.constant dense<0.000000e+00> : vector<32xf32>
    %4 = vector.multi_reduction <add>, %1, %cst [1] : vector<32x32xf32> to vector<32xf32>
    %5 = vector.shape_cast %4 : vector<32xf32> to vector<32x1xf32>
    %cst_6 = arith.constant 3.200000e+01 : f32
    %6 = vector.broadcast %cst_6 : f32 to vector<32x1xf32>
    %7 = arith.divf %5, %6 : vector<32x1xf32>
    %8 = vector.broadcast %7 : vector<32x1xf32> to vector<32x32xf32>
    %9 = arith.subf %1, %8 : vector<32x32xf32>
    %10 = arith.mulf %9, %9 : vector<32x32xf32>
    %cst_7 = arith.constant dense<0.000000e+00> : vector<32xf32>
    %11 = vector.multi_reduction <add>, %10, %cst_7 [1] : vector<32x32xf32> to vector<32xf32>
    %12 = vector.shape_cast %11 : vector<32xf32> to vector<32x1xf32>
    %cst_8 = arith.constant 3.200000e+01 : f32
    %13 = vector.broadcast %cst_8 : f32 to vector<32x1xf32>
    %14 = arith.divf %12, %13 : vector<32x1xf32>
    %15 = vector.broadcast %7 : vector<32x1xf32> to vector<32x32xf32>
    %16 = arith.subf %1, %15 : vector<32x32xf32>
    %cst_9 = arith.constant 9.99999974E-6 : f32
    %17 = vector.broadcast %cst_9 : f32 to vector<32x1xf32>
    %18 = arith.addf %14, %17 : vector<32x1xf32>
    %19 = math.rsqrt %18 : vector<32x1xf32>
    %20 = vector.broadcast %19 : vector<32x1xf32> to vector<32x32xf32>
    %21 = arith.mulf %16, %20 : vector<32x32xf32>
    %22 = vector.broadcast %2 : vector<1x32xf32> to vector<32x32xf32>
    %23 = arith.mulf %21, %22 : vector<32x32xf32>
    %24 = vector.broadcast %3 : vector<1x32xf32> to vector<32x32xf32>
    %25 = arith.addf %23, %24 : vector<32x32xf32>
    %c0_10 = arith.constant 0 : index
    %c0_11 = arith.constant 0 : index
    %26 = vector.load %arg4[%c0_10, %c0_11] : memref<32x96xf32, #tpu.memory_space<vmem>>, vector<32x96xf32>
    %cst_12 = arith.constant dense<0.000000e+00> : vector<32x96xf32>
    %27 = tpu.matmul %25, %26, %cst_12 {dimension_numbers = #tpu.dot_dimension_numbers<[1], [0], [0], [1], [0, 0, 1, 1], [], []>} : vector<32x32xf32>, vector<32x96xf32>, vector<32x96xf32> -> vector<32x96xf32>
    %28 = vector.extract_strided_slice %27 {offsets = [0, 0], sizes = [32, 32], strides = [1, 1]} : vector<32x96xf32> to vector<32x32xf32>
    %29 = vector.extract_strided_slice %27 {offsets = [0, 32], sizes = [32, 32], strides = [1, 1]} : vector<32x96xf32> to vector<32x32xf32>
    %30 = vector.extract_strided_slice %27 {offsets = [0, 64], sizes = [32, 32], strides = [1, 1]} : vector<32x96xf32> to vector<32x32xf32>
    %31 = vector.extract_strided_slice %28 {offsets = [0, 0], sizes = [32, 8], strides = [1, 1]} : vector<32x32xf32> to vector<32x8xf32>
    %32 = vector.shape_cast %31 : vector<32x8xf32> to vector<2x16x8xf32>
    %33 = vector.extract_strided_slice %28 {offsets = [0, 8], sizes = [32, 8], strides = [1, 1]} : vector<32x32xf32> to vector<32x8xf32>
    %34 = vector.shape_cast %33 : vector<32x8xf32> to vector<2x16x8xf32>
    %35 = vector.extract_strided_slice %28 {offsets = [0, 16], sizes = [32, 8], strides = [1, 1]} : vector<32x32xf32> to vector<32x8xf32>
    %36 = vector.shape_cast %35 : vector<32x8xf32> to vector<2x16x8xf32>
    %37 = vector.extract_strided_slice %28 {offsets = [0, 24], sizes = [32, 8], strides = [1, 1]} : vector<32x32xf32> to vector<32x8xf32>
    %38 = vector.shape_cast %37 : vector<32x8xf32> to vector<2x16x8xf32>
    %39 = vector.shape_cast %32 : vector<2x16x8xf32> to vector<1x2x16x8xf32>
    %40 = vector.shape_cast %34 : vector<2x16x8xf32> to vector<1x2x16x8xf32>
    %41 = vector.shape_cast %36 : vector<2x16x8xf32> to vector<1x2x16x8xf32>
    %42 = vector.shape_cast %38 : vector<2x16x8xf32> to vector<1x2x16x8xf32>
    %43 = tpu.concatenate %39, %40, %41, %42 in 0 : vector<1x2x16x8xf32>, vector<1x2x16x8xf32>, vector<1x2x16x8xf32>, vector<1x2x16x8xf32> -> vector<4x2x16x8xf32>
    %44 = vector.shape_cast %43 : vector<4x2x16x8xf32> to vector<8x16x8xf32>
    %45 = vector.extract_strided_slice %29 {offsets = [0, 0], sizes = [32, 8], strides = [1, 1]} : vector<32x32xf32> to vector<32x8xf32>
    %46 = vector.shape_cast %45 : vector<32x8xf32> to vector<2x16x8xf32>
    %47 = vector.extract_strided_slice %29 {offsets = [0, 8], sizes = [32, 8], strides = [1, 1]} : vector<32x32xf32> to vector<32x8xf32>
    %48 = vector.shape_cast %47 : vector<32x8xf32> to vector<2x16x8xf32>
    %49 = vector.extract_strided_slice %29 {offsets = [0, 16], sizes = [32, 8], strides = [1, 1]} : vector<32x32xf32> to vector<32x8xf32>
    %50 = vector.shape_cast %49 : vector<32x8xf32> to vector<2x16x8xf32>
    %51 = vector.extract_strided_slice %29 {offsets = [0, 24], sizes = [32, 8], strides = [1, 1]} : vector<32x32xf32> to vector<32x8xf32>
    %52 = vector.shape_cast %51 : vector<32x8xf32> to vector<2x16x8xf32>
    %53 = vector.shape_cast %46 : vector<2x16x8xf32> to vector<1x2x16x8xf32>
    %54 = vector.shape_cast %48 : vector<2x16x8xf32> to vector<1x2x16x8xf32>
    %55 = vector.shape_cast %50 : vector<2x16x8xf32> to vector<1x2x16x8xf32>
    %56 = vector.shape_cast %52 : vector<2x16x8xf32> to vector<1x2x16x8xf32>
    %57 = tpu.concatenate %53, %54, %55, %56 in 0 : vector<1x2x16x8xf32>, vector<1x2x16x8xf32>, vector<1x2x16x8xf32>, vector<1x2x16x8xf32> -> vector<4x2x16x8xf32>
    %58 = vector.shape_cast %57 : vector<4x2x16x8xf32> to vector<8x16x8xf32>
    %59 = vector.extract_strided_slice %30 {offsets = [0, 0], sizes = [32, 8], strides = [1, 1]} : vector<32x32xf32> to vector<32x8xf32>
    %60 = vector.shape_cast %59 : vector<32x8xf32> to vector<2x16x8xf32>
    %61 = vector.extract_strided_slice %30 {offsets = [0, 8], sizes = [32, 8], strides = [1, 1]} : vector<32x32xf32> to vector<32x8xf32>
    %62 = vector.shape_cast %61 : vector<32x8xf32> to vector<2x16x8xf32>
    %63 = vector.extract_strided_slice %30 {offsets = [0, 16], sizes = [32, 8], strides = [1, 1]} : vector<32x32xf32> to vector<32x8xf32>
    %64 = vector.shape_cast %63 : vector<32x8xf32> to vector<2x16x8xf32>
    %65 = vector.extract_strided_slice %30 {offsets = [0, 24], sizes = [32, 8], strides = [1, 1]} : vector<32x32xf32> to vector<32x8xf32>
    %66 = vector.shape_cast %65 : vector<32x8xf32> to vector<2x16x8xf32>
    %67 = vector.shape_cast %60 : vector<2x16x8xf32> to vector<1x2x16x8xf32>
    %68 = vector.shape_cast %62 : vector<2x16x8xf32> to vector<1x2x16x8xf32>
    %69 = vector.shape_cast %64 : vector<2x16x8xf32> to vector<1x2x16x8xf32>
    %70 = vector.shape_cast %66 : vector<2x16x8xf32> to vector<1x2x16x8xf32>
    %71 = tpu.concatenate %67, %68, %69, %70 in 0 : vector<1x2x16x8xf32>, vector<1x2x16x8xf32>, vector<1x2x16x8xf32>, vector<1x2x16x8xf32> -> vector<4x2x16x8xf32>
    %72 = vector.shape_cast %71 : vector<4x2x16x8xf32> to vector<8x16x8xf32>
    "tpu.trace_start"() <{level = 10 : i32, message = "gqd,gkd->gqk"}> : () -> ()
    %cst_13 = arith.constant dense<0.000000e+00> : vector<8x16x16xf32>
    %73 = tpu.matmul %44, %58, %cst_13 {dimension_numbers = #tpu.dot_dimension_numbers<[2], [2], [1], [1], [0, 0, 0, 1, 1, 1], [0], [0]>} : vector<8x16x8xf32>, vector<8x16x8xf32>, vector<8x16x16xf32> -> vector<8x16x16xf32>
    "tpu.trace_stop"() : () -> ()
    %cst_14 = arith.constant 0.353553385 : f32
    %74 = vector.broadcast %cst_14 : f32 to vector<8x16x16xf32>
    %75 = arith.mulf %73, %74 : vector<8x16x16xf32>
    %76 = tpu.iota {dimensions = array<i32: 2>} : vector<8x16x16xi32>
    %c9_i32 = arith.constant 9 : i32
    %77 = vector.broadcast %c9_i32 : i32 to vector<8x16x16xi32>
    %78 = arith.cmpi slt, %76, %77 : vector<8x16x16xi32>
    %cst_15 = arith.constant -1.000000e+30 : f32
    %79 = vector.broadcast %cst_15 : f32 to vector<8x16x16xf32>
    %80 = arith.select %78, %75, %79 : vector<8x16x16xi1>, vector<8x16x16xf32>
    %cst_16 = arith.constant dense<0xFF800000> : vector<8x16xf32>
    %81 = vector.multi_reduction <maximumf>, %80, %cst_16 [2] : vector<8x16x16xf32> to vector<8x16xf32>
    %82 = vector.shape_cast %81 : vector<8x16xf32> to vector<8x16x1xf32>
    %83 = vector.broadcast %82 : vector<8x16x1xf32> to vector<8x16x16xf32>
    %84 = arith.subf %80, %83 : vector<8x16x16xf32>
    %85 = math.exp %84 : vector<8x16x16xf32>
    %cst_17 = arith.constant dense<0.000000e+00> : vector<8x16xf32>
    %86 = vector.multi_reduction <add>, %85, %cst_17 [2] : vector<8x16x16xf32> to vector<8x16xf32>
    %87 = vector.shape_cast %86 : vector<8x16xf32> to vector<8x16x1xf32>
    %88 = tpu.reciprocal %87 {approx = true} : vector<8x16x1xf32> -> vector<8x16x1xf32>
    %89 = arith.mulf %87, %88 : vector<8x16x1xf32>
    %cst_18 = arith.constant 2.000000e+00 : f32
    %90 = vector.broadcast %cst_18 : f32 to vector<8x16x1xf32>
    %91 = arith.subf %90, %89 : vector<8x16x1xf32>
    %92 = arith.mulf %88, %91 : vector<8x16x1xf32>
    %93 = vector.broadcast %92 : vector<8x16x1xf32> to vector<8x16x16xf32>
    %94 = arith.mulf %85, %93 : vector<8x16x16xf32>
    "tpu.trace_start"() <{level = 10 : i32, message = "gqk,gkd->gqd"}> : () -> ()
    %cst_19 = arith.constant dense<0.000000e+00> : vector<8x16x8xf32>
    %95 = tpu.matmul %94, %72, %cst_19 {dimension_numbers = #tpu.dot_dimension_numbers<[2], [1], [1], [2], [0, 0, 0, 1, 1, 2], [0], [0]>} : vector<8x16x16xf32>, vector<8x16x8xf32>, vector<8x16x8xf32> -> vector<8x16x8xf32>
    "tpu.trace_stop"() : () -> ()
    %96 = vector.shape_cast %95 : vector<8x16x8xf32> to vector<4x2x16x8xf32>
    %97 = vector.extract_strided_slice %96 {offsets = [0, 0, 0, 0], sizes = [1, 2, 16, 8], strides = [1, 1, 1, 1]} : vector<4x2x16x8xf32> to vector<1x2x16x8xf32>
    %98 = vector.shape_cast %97 : vector<1x2x16x8xf32> to vector<2x16x8xf32>
    %99 = vector.extract_strided_slice %96 {offsets = [1, 0, 0, 0], sizes = [1, 2, 16, 8], strides = [1, 1, 1, 1]} : vector<4x2x16x8xf32> to vector<1x2x16x8xf32>
    %100 = vector.shape_cast %99 : vector<1x2x16x8xf32> to vector<2x16x8xf32>
    %101 = vector.extract_strided_slice %96 {offsets = [2, 0, 0, 0], sizes = [1, 2, 16, 8], strides = [1, 1, 1, 1]} : vector<4x2x16x8xf32> to vector<1x2x16x8xf32>
    %102 = vector.shape_cast %101 : vector<1x2x16x8xf32> to vector<2x16x8xf32>
    %103 = vector.extract_strided_slice %96 {offsets = [3, 0, 0, 0], sizes = [1, 2, 16, 8], strides = [1, 1, 1, 1]} : vector<4x2x16x8xf32> to vector<1x2x16x8xf32>
    %104 = vector.shape_cast %103 : vector<1x2x16x8xf32> to vector<2x16x8xf32>
    %105 = tpu.concatenate %98, %100, %102, %104 in 2 : vector<2x16x8xf32>, vector<2x16x8xf32>, vector<2x16x8xf32>, vector<2x16x8xf32> -> vector<2x16x32xf32>
    %106 = vector.shape_cast %105 : vector<2x16x32xf32> to vector<32x32xf32>
    %c0_20 = arith.constant 0 : index
    %c0_21 = arith.constant 0 : index
    %107 = vector.load %arg5[%c0_20, %c0_21] : memref<32x32xf32, #tpu.memory_space<vmem>>, vector<32x32xf32>
    %cst_22 = arith.constant dense<0.000000e+00> : vector<32x32xf32>
    %108 = tpu.matmul %106, %107, %cst_22 {dimension_numbers = #tpu.dot_dimension_numbers<[1], [0], [0], [1], [0, 0, 1, 1], [], []>} : vector<32x32xf32>, vector<32x32xf32>, vector<32x32xf32> -> vector<32x32xf32>
    %c0_23 = arith.constant 0 : index
    %c0_24 = arith.constant 0 : index
    %109 = vector.load %arg6[%c0_23, %c0_24] : memref<1x32xf32, #tpu.memory_space<vmem>>, vector<1x32xf32>
    %110 = vector.broadcast %109 : vector<1x32xf32> to vector<32x32xf32>
    %111 = arith.addf %108, %110 : vector<32x32xf32>
    %112 = arith.addf %111, %25 : vector<32x32xf32>
    %c0_25 = arith.constant 0 : index
    %c0_26 = arith.constant 0 : index
    %113 = vector.load %arg7[%c0_25, %c0_26] : memref<1x32xf32, #tpu.memory_space<vmem>>, vector<1x32xf32>
    %c0_27 = arith.constant 0 : index
    %c0_28 = arith.constant 0 : index
    %114 = vector.load %arg8[%c0_27, %c0_28] : memref<1x32xf32, #tpu.memory_space<vmem>>, vector<1x32xf32>
    %cst_29 = arith.constant dense<0.000000e+00> : vector<32xf32>
    %115 = vector.multi_reduction <add>, %112, %cst_29 [1] : vector<32x32xf32> to vector<32xf32>
    %116 = vector.shape_cast %115 : vector<32xf32> to vector<32x1xf32>
    %cst_30 = arith.constant 3.200000e+01 : f32
    %117 = vector.broadcast %cst_30 : f32 to vector<32x1xf32>
    %118 = arith.divf %116, %117 : vector<32x1xf32>
    %119 = vector.broadcast %118 : vector<32x1xf32> to vector<32x32xf32>
    %120 = arith.subf %112, %119 : vector<32x32xf32>
    %121 = arith.mulf %120, %120 : vector<32x32xf32>
    %cst_31 = arith.constant dense<0.000000e+00> : vector<32xf32>
    %122 = vector.multi_reduction <add>, %121, %cst_31 [1] : vector<32x32xf32> to vector<32xf32>
    %123 = vector.shape_cast %122 : vector<32xf32> to vector<32x1xf32>
    %cst_32 = arith.constant 3.200000e+01 : f32
    %124 = vector.broadcast %cst_32 : f32 to vector<32x1xf32>
    %125 = arith.divf %123, %124 : vector<32x1xf32>
    %126 = vector.broadcast %118 : vector<32x1xf32> to vector<32x32xf32>
    %127 = arith.subf %112, %126 : vector<32x32xf32>
    %cst_33 = arith.constant 9.99999974E-6 : f32
    %128 = vector.broadcast %cst_33 : f32 to vector<32x1xf32>
    %129 = arith.addf %125, %128 : vector<32x1xf32>
    %130 = math.rsqrt %129 : vector<32x1xf32>
    %131 = vector.broadcast %130 : vector<32x1xf32> to vector<32x32xf32>
    %132 = arith.mulf %127, %131 : vector<32x32xf32>
    %133 = vector.broadcast %113 : vector<1x32xf32> to vector<32x32xf32>
    %134 = arith.mulf %132, %133 : vector<32x32xf32>
    %135 = vector.broadcast %114 : vector<1x32xf32> to vector<32x32xf32>
    %136 = arith.addf %134, %135 : vector<32x32xf32>
    %c0_34 = arith.constant 0 : index
    %c0_35 = arith.constant 0 : index
    %137 = vector.load %arg9[%c0_34, %c0_35] : memref<32x64xf32, #tpu.memory_space<vmem>>, vector<32x64xf32>
    %cst_36 = arith.constant dense<0.000000e+00> : vector<32x64xf32>
    %138 = tpu.matmul %136, %137, %cst_36 {dimension_numbers = #tpu.dot_dimension_numbers<[1], [0], [0], [1], [0, 0, 1, 1], [], []>} : vector<32x32xf32>, vector<32x64xf32>, vector<32x64xf32> -> vector<32x64xf32>
    %c0_37 = arith.constant 0 : index
    %c0_38 = arith.constant 0 : index
    %139 = vector.load %arg10[%c0_37, %c0_38] : memref<1x64xf32, #tpu.memory_space<vmem>>, vector<1x64xf32>
    %140 = vector.broadcast %139 : vector<1x64xf32> to vector<32x64xf32>
    %141 = arith.addf %138, %140 : vector<32x64xf32>
    %cst_39 = arith.constant 5.000000e-01 : f32
    %142 = vector.broadcast %cst_39 : f32 to vector<32x64xf32>
    %143 = arith.mulf %142, %141 : vector<32x64xf32>
    %cst_40 = arith.constant 0.707106769 : f32
    %144 = vector.broadcast %cst_40 : f32 to vector<32x64xf32>
    %145 = arith.mulf %141, %144 : vector<32x64xf32>
    %cst_41 = arith.constant 0.000000e+00 : f32
    %146 = vector.broadcast %cst_41 : f32 to vector<32x64xf32>
    %147 = arith.cmpf oge, %145, %146 : vector<32x64xf32>
    %cst_42 = arith.constant 1.000000e+00 : f32
    %cst_43 = arith.constant -1.000000e+00 : f32
    %148 = vector.broadcast %cst_42 : f32 to vector<32x64xf32>
    %149 = vector.broadcast %cst_43 : f32 to vector<32x64xf32>
    %150 = arith.select %147, %148, %149 : vector<32x64xi1>, vector<32x64xf32>
    %151 = math.absf %145 : vector<32x64xf32>
    %cst_44 = arith.constant 0.327591091 : f32
    %152 = vector.broadcast %cst_44 : f32 to vector<32x64xf32>
    %153 = arith.mulf %152, %151 : vector<32x64xf32>
    %cst_45 = arith.constant 1.000000e+00 : f32
    %154 = vector.broadcast %cst_45 : f32 to vector<32x64xf32>
    %155 = arith.addf %154, %153 : vector<32x64xf32>
    %156 = tpu.reciprocal %155 {approx = true} : vector<32x64xf32> -> vector<32x64xf32>
    %157 = arith.mulf %155, %156 : vector<32x64xf32>
    %cst_46 = arith.constant 2.000000e+00 : f32
    %158 = vector.broadcast %cst_46 : f32 to vector<32x64xf32>
    %159 = arith.subf %158, %157 : vector<32x64xf32>
    %160 = arith.mulf %156, %159 : vector<32x64xf32>
    %cst_47 = arith.constant 1.06140542 : f32
    %161 = vector.broadcast %cst_47 : f32 to vector<32x64xf32>
    %162 = arith.mulf %161, %160 : vector<32x64xf32>
    %cst_48 = arith.constant -1.45315206 : f32
    %163 = vector.broadcast %cst_48 : f32 to vector<32x64xf32>
    %164 = arith.addf %162, %163 : vector<32x64xf32>
    %165 = arith.mulf %164, %160 : vector<32x64xf32>
    %cst_49 = arith.constant 1.42141378 : f32
    %166 = vector.broadcast %cst_49 : f32 to vector<32x64xf32>
    %167 = arith.addf %165, %166 : vector<32x64xf32>
    %168 = arith.mulf %167, %160 : vector<32x64xf32>
    %cst_50 = arith.constant -0.284496725 : f32
    %169 = vector.broadcast %cst_50 : f32 to vector<32x64xf32>
    %170 = arith.addf %168, %169 : vector<32x64xf32>
    %171 = arith.mulf %170, %160 : vector<32x64xf32>
    %cst_51 = arith.constant 0.254829586 : f32
    %172 = vector.broadcast %cst_51 : f32 to vector<32x64xf32>
    %173 = arith.addf %171, %172 : vector<32x64xf32>
    %174 = arith.mulf %173, %160 : vector<32x64xf32>
    %cst_52 = arith.constant 0.000000e+00 : f32
    %175 = vector.broadcast %cst_52 : f32 to vector<32x64xf32>
    %176 = arith.subf %175, %151 : vector<32x64xf32>
    %177 = arith.mulf %176, %151 : vector<32x64xf32>
    %178 = math.exp %177 : vector<32x64xf32>
    %179 = arith.mulf %174, %178 : vector<32x64xf32>
    %cst_53 = arith.constant 1.000000e+00 : f32
    %180 = vector.broadcast %cst_53 : f32 to vector<32x64xf32>
    %181 = arith.subf %180, %179 : vector<32x64xf32>
    %182 = arith.mulf %150, %181 : vector<32x64xf32>
    %cst_54 = arith.constant 1.000000e+00 : f32
    %183 = vector.broadcast %cst_54 : f32 to vector<32x64xf32>
    %184 = arith.addf %183, %182 : vector<32x64xf32>
    %185 = arith.mulf %143, %184 : vector<32x64xf32>
    %c0_55 = arith.constant 0 : index
    %c0_56 = arith.constant 0 : index
    %186 = vector.load %arg11[%c0_55, %c0_56] : memref<64x32xf32, #tpu.memory_space<vmem>>, vector<64x32xf32>
    %cst_57 = arith.constant dense<0.000000e+00> : vector<32x32xf32>
    %187 = tpu.matmul %185, %186, %cst_57 {dimension_numbers = #tpu.dot_dimension_numbers<[1], [0], [0], [1], [0, 0, 1, 1], [], []>} : vector<32x64xf32>, vector<64x32xf32>, vector<32x32xf32> -> vector<32x32xf32>
    %c0_58 = arith.constant 0 : index
    %c0_59 = arith.constant 0 : index
    %188 = vector.load %arg12[%c0_58, %c0_59] : memref<1x32xf32, #tpu.memory_space<vmem>>, vector<1x32xf32>
    %189 = vector.broadcast %188 : vector<1x32xf32> to vector<32x32xf32>
    %190 = arith.addf %187, %189 : vector<32x32xf32>
    %191 = arith.addf %190, %136 : vector<32x32xf32>
    %192 = vector.shape_cast %191 : vector<32x32xf32> to vector<2x16x32xf32>
    %c0_60 = arith.constant 0 : index
    %c0_61 = arith.constant 0 : index
    %c0_62 = arith.constant 0 : index
    %193 = vector.load %arg13[%c0_60, %c0_61, %c0_62] : memref<2x16x32xf32, #tpu.memory_space<vmem>>, vector<2x16x32xf32>
    tpu.vector_store %arg13[%c0_60, %c0_61, %c0_62], %192 {strides = array<i32>} : memref<2x16x32xf32, #tpu.memory_space<vmem>>, vector<2x16x32xf32>,
    return
  }
  func.func @transform_0(%arg0: i32) -> (i32, i32, i32) {
    %c0_i32 = arith.constant 0 : i32
    %c0_i32_0 = arith.constant 0 : i32
    %c0_i32_1 = arith.constant 0 : i32
    return %arg0, %c0_i32, %c0_i32_0 : i32, i32, i32
  }
  func.func @transform_1(%arg0: i32) -> (i32, i32) {
    %c0_i32 = arith.constant 0 : i32
    %c0_i32_0 = arith.constant 0 : i32
    %c0_i32_1 = arith.constant 0 : i32
    return %c0_i32, %c0_i32_0 : i32, i32
  }
  func.func @transform_2(%arg0: i32) -> (i32, i32) {
    %c0_i32 = arith.constant 0 : i32
    %c0_i32_0 = arith.constant 0 : i32
    %c0_i32_1 = arith.constant 0 : i32
    return %c0_i32, %c0_i32_0 : i32, i32
  }
  func.func @transform_3(%arg0: i32) -> (i32, i32) {
    %c0_i32 = arith.constant 0 : i32
    %c0_i32_0 = arith.constant 0 : i32
    %c0_i32_1 = arith.constant 0 : i32
    return %c0_i32, %c0_i32_0 : i32, i32
  }
  func.func @transform_4(%arg0: i32) -> (i32, i32) {
    %c0_i32 = arith.constant 0 : i32
    %c0_i32_0 = arith.constant 0 : i32
    %c0_i32_1 = arith.constant 0 : i32
    return %c0_i32, %c0_i32_0 : i32, i32
  }
  func.func @transform_5(%arg0: i32) -> (i32, i32) {
    %c0_i32 = arith.constant 0 : i32
    %c0_i32_0 = arith.constant 0 : i32
    %c0_i32_1 = arith.constant 0 : i32
    return %c0_i32, %c0_i32_0 : i32, i32
  }
  func.func @transform_6(%arg0: i32) -> (i32, i32) {
    %c0_i32 = arith.constant 0 : i32
    %c0_i32_0 = arith.constant 0 : i32
    %c0_i32_1 = arith.constant 0 : i32
    return %c0_i32, %c0_i32_0 : i32, i32
  }
  func.func @transform_7(%arg0: i32) -> (i32, i32) {
    %c0_i32 = arith.constant 0 : i32
    %c0_i32_0 = arith.constant 0 : i32
    %c0_i32_1 = arith.constant 0 : i32
    return %c0_i32, %c0_i32_0 : i32, i32
  }
  func.func @transform_8(%arg0: i32) -> (i32, i32) {
    %c0_i32 = arith.constant 0 : i32
    %c0_i32_0 = arith.constant 0 : i32
    %c0_i32_1 = arith.constant 0 : i32
    return %c0_i32, %c0_i32_0 : i32, i32
  }
  func.func @transform_9(%arg0: i32) -> (i32, i32) {
    %c0_i32 = arith.constant 0 : i32
    %c0_i32_0 = arith.constant 0 : i32
    %c0_i32_1 = arith.constant 0 : i32
    return %c0_i32, %c0_i32_0 : i32, i32
  }
  func.func @transform_10(%arg0: i32) -> (i32, i32) {
    %c0_i32 = arith.constant 0 : i32
    %c0_i32_0 = arith.constant 0 : i32
    %c0_i32_1 = arith.constant 0 : i32
    return %c0_i32, %c0_i32_0 : i32, i32
  }
  func.func @transform_11(%arg0: i32) -> (i32, i32) {
    %c0_i32 = arith.constant 0 : i32
    %c0_i32_0 = arith.constant 0 : i32
    %c0_i32_1 = arith.constant 0 : i32
    return %c0_i32, %c0_i32_0 : i32, i32
  }
  func.func @transform_12(%arg0: i32) -> (i32, i32, i32) {
    %c0_i32 = arith.constant 0 : i32
    %c0_i32_0 = arith.constant 0 : i32
    %c0_i32_1 = arith.constant 0 : i32
    return %arg0, %c0_i32, %c0_i32_0 : i32, i32, i32
  }
}

module attributes {stable_mosaic.version = 11 : i64} {
  func.func @_encoder_layer_kernel(%arg0: i32, %arg1: memref<2x16x32xf32, #tpu.memory_space<vmem>>, %arg2: memref<1x32xf32, #tpu.memory_space<vmem>>, %arg3: memref<1x32xf32, #tpu.memory_space<vmem>>, %arg4: memref<32x96xf32, #tpu.memory_space<vmem>>, %arg5: memref<32x32xf32, #tpu.memory_space<vmem>>, %arg6: memref<1x32xf32, #tpu.memory_space<vmem>>, %arg7: memref<1x32xf32, #tpu.memory_space<vmem>>, %arg8: memref<1x32xf32, #tpu.memory_space<vmem>>, %arg9: memref<32x64xf32, #tpu.memory_space<vmem>>, %arg10: memref<1x64xf32, #tpu.memory_space<vmem>>, %arg11: memref<64x32xf32, #tpu.memory_space<vmem>>, %arg12: memref<1x32xf32, #tpu.memory_space<vmem>>, %arg13: memref<2x16x32xf32, #tpu.memory_space<vmem>>) attributes {dimension_semantics = [#tpu.dimension_semantics<parallel>], iteration_bounds = array<i64: 1>, scalar_prefetch = 0 : i64, scratch_operands = 0 : i64, tpu.core_type = #tpu.core_type<tc>, window_params = [{transform_indices = @transform_0, window_bounds = array<i64: 2, 16, 32>}, {pipeline_mode = #tpu.pipeline_mode<synchronous>, transform_indices = @transform_1, window_bounds = array<i64: 1, 32>}, {pipeline_mode = #tpu.pipeline_mode<synchronous>, transform_indices = @transform_2, window_bounds = array<i64: 1, 32>}, {pipeline_mode = #tpu.pipeline_mode<synchronous>, transform_indices = @transform_3, window_bounds = array<i64: 32, 96>}, {pipeline_mode = #tpu.pipeline_mode<synchronous>, transform_indices = @transform_4, window_bounds = array<i64: 32, 32>}, {pipeline_mode = #tpu.pipeline_mode<synchronous>, transform_indices = @transform_5, window_bounds = array<i64: 1, 32>}, {pipeline_mode = #tpu.pipeline_mode<synchronous>, transform_indices = @transform_6, window_bounds = array<i64: 1, 32>}, {pipeline_mode = #tpu.pipeline_mode<synchronous>, transform_indices = @transform_7, window_bounds = array<i64: 1, 32>}, {pipeline_mode = #tpu.pipeline_mode<synchronous>, transform_indices = @transform_8, window_bounds = array<i64: 32, 64>}, {pipeline_mode = #tpu.pipeline_mode<synchronous>, transform_indices = @transform_9, window_bounds = array<i64: 1, 64>}, {pipeline_mode = #tpu.pipeline_mode<synchronous>, transform_indices = @transform_10, window_bounds = array<i64: 64, 32>}, {pipeline_mode = #tpu.pipeline_mode<synchronous>, transform_indices = @transform_11, window_bounds = array<i64: 1, 32>}, {transform_indices = @transform_12, window_bounds = array<i64: 2, 16, 32>}]} {
    %c0 = arith.constant 0 : index
    %c0_0 = arith.constant 0 : index
    %c0_1 = arith.constant 0 : index
    %0 = vector.load %arg1[%c0, %c0_0, %c0_1] : memref<2x16x32xf32, #tpu.memory_space<vmem>>, vector<2x16x32xf32>
    %1 = vector.shape_cast %0 : vector<2x16x32xf32> to vector<32x32xf32>
    %c0_2 = arith.constant 0 : index
    %c0_3 = arith.constant 0 : index
    %2 = vector.load %arg2[%c0_2, %c0_3] : memref<1x32xf32, #tpu.memory_space<vmem>>, vector<1x32xf32>
    %c0_4 = arith.constant 0 : index
    %c0_5 = arith.constant 0 : index
    %3 = vector.load %arg3[%c0_4, %c0_5] : memref<1x32xf32, #tpu.memory_space<vmem>>, vector<1x32xf32>
    %cst = arith.constant dense<0.000000e+00> : vector<32xf32>
    %4 = vector.multi_reduction <add>, %1, %cst [1] : vector<32x32xf32> to vector<32xf32>
    %5 = vector.shape_cast %4 : vector<32xf32> to vector<32x1xf32>
    %cst_6 = arith.constant 3.200000e+01 : f32
    %6 = vector.broadcast %cst_6 : f32 to vector<32x1xf32>
    %7 = arith.divf %5, %6 : vector<32x1xf32>
    %8 = vector.broadcast %7 : vector<32x1xf32> to vector<32x32xf32>
    %9 = arith.subf %1, %8 : vector<32x32xf32>
    %10 = arith.mulf %9, %9 : vector<32x32xf32>
    %cst_7 = arith.constant dense<0.000000e+00> : vector<32xf32>
    %11 = vector.multi_reduction <add>, %10, %cst_7 [1] : vector<32x32xf32> to vector<32xf32>
    %12 = vector.shape_cast %11 : vector<32xf32> to vector<32x1xf32>
    %cst_8 = arith.constant 3.200000e+01 : f32
    %13 = vector.broadcast %cst_8 : f32 to vector<32x1xf32>
    %14 = arith.divf %12, %13 : vector<32x1xf32>
    %15 = vector.broadcast %7 : vector<32x1xf32> to vector<32x32xf32>
    %16 = arith.subf %1, %15 : vector<32x32xf32>
    %cst_9 = arith.constant 9.99999974E-6 : f32
    %17 = vector.broadcast %cst_9 : f32 to vector<32x1xf32>
    %18 = arith.addf %14, %17 : vector<32x1xf32>
    %19 = math.rsqrt %18 : vector<32x1xf32>
    %20 = vector.broadcast %19 : vector<32x1xf32> to vector<32x32xf32>
    %21 = arith.mulf %16, %20 : vector<32x32xf32>
    %22 = vector.broadcast %2 : vector<1x32xf32> to vector<32x32xf32>
    %23 = arith.mulf %21, %22 : vector<32x32xf32>
    %24 = vector.broadcast %3 : vector<1x32xf32> to vector<32x32xf32>
    %25 = arith.addf %23, %24 : vector<32x32xf32>
    %c0_10 = arith.constant 0 : index
    %c0_11 = arith.constant 0 : index
    %26 = vector.load %arg4[%c0_10, %c0_11] : memref<32x96xf32, #tpu.memory_space<vmem>>, vector<32x96xf32>
    %cst_12 = arith.constant dense<0.000000e+00> : vector<32x96xf32>
    %27 = tpu.matmul %25, %26, %cst_12 {dimension_numbers = #tpu.dot_dimension_numbers<[1], [0], [0], [1], [0, 0, 1, 1], [], []>} : vector<32x32xf32>, vector<32x96xf32>, vector<32x96xf32> -> vector<32x96xf32>
    %28 = vector.extract_strided_slice %27 {offsets = [0, 0], sizes = [32, 32], strides = [1, 1]} : vector<32x96xf32> to vector<32x32xf32>
    %29 = vector.extract_strided_slice %27 {offsets = [0, 32], sizes = [32, 32], strides = [1, 1]} : vector<32x96xf32> to vector<32x32xf32>
    %30 = vector.extract_strided_slice %27 {offsets = [0, 64], sizes = [32, 32], strides = [1, 1]} : vector<32x96xf32> to vector<32x32xf32>
    %31 = vector.extract_strided_slice %28 {offsets = [0, 0], sizes = [32, 8], strides = [1, 1]} : vector<32x32xf32> to vector<32x8xf32>
    %32 = vector.shape_cast %31 : vector<32x8xf32> to vector<2x16x8xf32>
    %33 = vector.extract_strided_slice %28 {offsets = [0, 8], sizes = [32, 8], strides = [1, 1]} : vector<32x32xf32> to vector<32x8xf32>
    %34 = vector.shape_cast %33 : vector<32x8xf32> to vector<2x16x8xf32>
    %35 = vector.extract_strided_slice %28 {offsets = [0, 16], sizes = [32, 8], strides = [1, 1]} : vector<32x32xf32> to vector<32x8xf32>
    %36 = vector.shape_cast %35 : vector<32x8xf32> to vector<2x16x8xf32>
    %37 = vector.extract_strided_slice %28 {offsets = [0, 24], sizes = [32, 8], strides = [1, 1]} : vector<32x32xf32> to vector<32x8xf32>
    %38 = vector.shape_cast %37 : vector<32x8xf32> to vector<2x16x8xf32>
    %39 = vector.shape_cast %32 : vector<2x16x8xf32> to vector<1x2x16x8xf32>
    %40 = vector.shape_cast %34 : vector<2x16x8xf32> to vector<1x2x16x8xf32>
    %41 = vector.shape_cast %36 : vector<2x16x8xf32> to vector<1x2x16x8xf32>
    %42 = vector.shape_cast %38 : vector<2x16x8xf32> to vector<1x2x16x8xf32>
    %43 = tpu.concatenate %39, %40, %41, %42 in 0 : vector<1x2x16x8xf32>, vector<1x2x16x8xf32>, vector<1x2x16x8xf32>, vector<1x2x16x8xf32> -> vector<4x2x16x8xf32>
    %44 = vector.shape_cast %43 : vector<4x2x16x8xf32> to vector<8x16x8xf32>
    %45 = vector.extract_strided_slice %29 {offsets = [0, 0], sizes = [32, 8], strides = [1, 1]} : vector<32x32xf32> to vector<32x8xf32>
    %46 = vector.shape_cast %45 : vector<32x8xf32> to vector<2x16x8xf32>
    %47 = vector.extract_strided_slice %29 {offsets = [0, 8], sizes = [32, 8], strides = [1, 1]} : vector<32x32xf32> to vector<32x8xf32>
    %48 = vector.shape_cast %47 : vector<32x8xf32> to vector<2x16x8xf32>
    %49 = vector.extract_strided_slice %29 {offsets = [0, 16], sizes = [32, 8], strides = [1, 1]} : vector<32x32xf32> to vector<32x8xf32>
    %50 = vector.shape_cast %49 : vector<32x8xf32> to vector<2x16x8xf32>
    %51 = vector.extract_strided_slice %29 {offsets = [0, 24], sizes = [32, 8], strides = [1, 1]} : vector<32x32xf32> to vector<32x8xf32>
    %52 = vector.shape_cast %51 : vector<32x8xf32> to vector<2x16x8xf32>
    %53 = vector.shape_cast %46 : vector<2x16x8xf32> to vector<1x2x16x8xf32>
    %54 = vector.shape_cast %48 : vector<2x16x8xf32> to vector<1x2x16x8xf32>
    %55 = vector.shape_cast %50 : vector<2x16x8xf32> to vector<1x2x16x8xf32>
    %56 = vector.shape_cast %52 : vector<2x16x8xf32> to vector<1x2x16x8xf32>
    %57 = tpu.concatenate %53, %54, %55, %56 in 0 : vector<1x2x16x8xf32>, vector<1x2x16x8xf32>, vector<1x2x16x8xf32>, vector<1x2x16x8xf32> -> vector<4x2x16x8xf32>
    %58 = vector.shape_cast %57 : vector<4x2x16x8xf32> to vector<8x16x8xf32>
    %59 = vector.extract_strided_slice %30 {offsets = [0, 0], sizes = [32, 8], strides = [1, 1]} : vector<32x32xf32> to vector<32x8xf32>
    %60 = vector.shape_cast %59 : vector<32x8xf32> to vector<2x16x8xf32>
    %61 = vector.extract_strided_slice %30 {offsets = [0, 8], sizes = [32, 8], strides = [1, 1]} : vector<32x32xf32> to vector<32x8xf32>
    %62 = vector.shape_cast %61 : vector<32x8xf32> to vector<2x16x8xf32>
    %63 = vector.extract_strided_slice %30 {offsets = [0, 16], sizes = [32, 8], strides = [1, 1]} : vector<32x32xf32> to vector<32x8xf32>
    %64 = vector.shape_cast %63 : vector<32x8xf32> to vector<2x16x8xf32>
    %65 = vector.extract_strided_slice %30 {offsets = [0, 24], sizes = [32, 8], strides = [1, 1]} : vector<32x32xf32> to vector<32x8xf32>
    %66 = vector.shape_cast %65 : vector<32x8xf32> to vector<2x16x8xf32>
    %67 = vector.shape_cast %60 : vector<2x16x8xf32> to vector<1x2x16x8xf32>
    %68 = vector.shape_cast %62 : vector<2x16x8xf32> to vector<1x2x16x8xf32>
    %69 = vector.shape_cast %64 : vector<2x16x8xf32> to vector<1x2x16x8xf32>
    %70 = vector.shape_cast %66 : vector<2x16x8xf32> to vector<1x2x16x8xf32>
    %71 = tpu.concatenate %67, %68, %69, %70 in 0 : vector<1x2x16x8xf32>, vector<1x2x16x8xf32>, vector<1x2x16x8xf32>, vector<1x2x16x8xf32> -> vector<4x2x16x8xf32>
    %72 = vector.shape_cast %71 : vector<4x2x16x8xf32> to vector<8x16x8xf32>
    "tpu.trace_start"() <{level = 10 : i32, message = "gqd,gkd->gqk"}> : () -> ()
    %cst_13 = arith.constant dense<0.000000e+00> : vector<8x16x16xf32>
    %73 = tpu.matmul %44, %58, %cst_13 {dimension_numbers = #tpu.dot_dimension_numbers<[2], [2], [1], [1], [0, 0, 0, 1, 1, 1], [0], [0]>} : vector<8x16x8xf32>, vector<8x16x8xf32>, vector<8x16x16xf32> -> vector<8x16x16xf32>
    "tpu.trace_stop"() : () -> ()
    %cst_14 = arith.constant 0.353553385 : f32
    %74 = vector.broadcast %cst_14 : f32 to vector<8x16x16xf32>
    %75 = arith.mulf %73, %74 : vector<8x16x16xf32>
    %76 = tpu.iota {dimensions = array<i32: 2>} : vector<8x16x16xi32>
    %c9_i32 = arith.constant 9 : i32
    %77 = vector.broadcast %c9_i32 : i32 to vector<8x16x16xi32>
    %78 = arith.cmpi slt, %76, %77 : vector<8x16x16xi32>
    %cst_15 = arith.constant -1.000000e+30 : f32
    %79 = vector.broadcast %cst_15 : f32 to vector<8x16x16xf32>
    %80 = arith.select %78, %75, %79 : vector<8x16x16xi1>, vector<8x16x16xf32>
    %cst_16 = arith.constant dense<0xFF800000> : vector<8x16xf32>
    %81 = vector.multi_reduction <maximumf>, %80, %cst_16 [2] : vector<8x16x16xf32> to vector<8x16xf32>
    %82 = vector.shape_cast %81 : vector<8x16xf32> to vector<8x16x1xf32>
    %83 = vector.broadcast %82 : vector<8x16x1xf32> to vector<8x16x16xf32>
    %84 = arith.subf %80, %83 : vector<8x16x16xf32>
    %85 = math.exp %84 : vector<8x16x16xf32>
    %cst_17 = arith.constant dense<0.000000e+00> : vector<8x16xf32>
    %86 = vector.multi_reduction <add>, %85, %cst_17 [2] : vector<8x16x16xf32> to vector<8x16xf32>
    %87 = vector.shape_cast %86 : vector<8x16xf32> to vector<8x16x1xf32>
    %88 = tpu.reciprocal %87 {approx = true} : vector<8x16x1xf32> -> vector<8x16x1xf32>
    %89 = arith.mulf %87, %88 : vector<8x16x1xf32>
    %cst_18 = arith.constant 2.000000e+00 : f32
    %90 = vector.broadcast %cst_18 : f32 to vector<8x16x1xf32>
    %91 = arith.subf %90, %89 : vector<8x16x1xf32>
    %92 = arith.mulf %88, %91 : vector<8x16x1xf32>
    %93 = vector.broadcast %92 : vector<8x16x1xf32> to vector<8x16x16xf32>
    %94 = arith.mulf %85, %93 : vector<8x16x16xf32>
    "tpu.trace_start"() <{level = 10 : i32, message = "gqk,gkd->gqd"}> : () -> ()
    %cst_19 = arith.constant dense<0.000000e+00> : vector<8x16x8xf32>
    %95 = tpu.matmul %94, %72, %cst_19 {dimension_numbers = #tpu.dot_dimension_numbers<[2], [1], [1], [2], [0, 0, 0, 1, 1, 2], [0], [0]>} : vector<8x16x16xf32>, vector<8x16x8xf32>, vector<8x16x8xf32> -> vector<8x16x8xf32>
    "tpu.trace_stop"() : () -> ()
    %96 = vector.shape_cast %95 : vector<8x16x8xf32> to vector<4x2x16x8xf32>
    %97 = vector.extract_strided_slice %96 {offsets = [0, 0, 0, 0], sizes = [1, 2, 16, 8], strides = [1, 1, 1, 1]} : vector<4x2x16x8xf32> to vector<1x2x16x8xf32>
    %98 = vector.shape_cast %97 : vector<1x2x16x8xf32> to vector<2x16x8xf32>
    %99 = vector.extract_strided_slice %96 {offsets = [1, 0, 0, 0], sizes = [1, 2, 16, 8], strides = [1, 1, 1, 1]} : vector<4x2x16x8xf32> to vector<1x2x16x8xf32>
    %100 = vector.shape_cast %99 : vector<1x2x16x8xf32> to vector<2x16x8xf32>
    %101 = vector.extract_strided_slice %96 {offsets = [2, 0, 0, 0], sizes = [1, 2, 16, 8], strides = [1, 1, 1, 1]} : vector<4x2x16x8xf32> to vector<1x2x16x8xf32>
    %102 = vector.shape_cast %101 : vector<1x2x16x8xf32> to vector<2x16x8xf32>
    %103 = vector.extract_strided_slice %96 {offsets = [3, 0, 0, 0], sizes = [1, 2, 16, 8], strides = [1, 1, 1, 1]} : vector<4x2x16x8xf32> to vector<1x2x16x8xf32>
    %104 = vector.shape_cast %103 : vector<1x2x16x8xf32> to vector<2x16x8xf32>
    %105 = tpu.concatenate %98, %100, %102, %104 in 2 : vector<2x16x8xf32>, vector<2x16x8xf32>, vector<2x16x8xf32>, vector<2x16x8xf32> -> vector<2x16x32xf32>
    %106 = vector.shape_cast %105 : vector<2x16x32xf32> to vector<32x32xf32>
    %c0_20 = arith.constant 0 : index
    %c0_21 = arith.constant 0 : index
    %107 = vector.load %arg5[%c0_20, %c0_21] : memref<32x32xf32, #tpu.memory_space<vmem>>, vector<32x32xf32>
    %cst_22 = arith.constant dense<0.000000e+00> : vector<32x32xf32>
    %108 = tpu.matmul %106, %107, %cst_22 {dimension_numbers = #tpu.dot_dimension_numbers<[1], [0], [0], [1], [0, 0, 1, 1], [], []>} : vector<32x32xf32>, vector<32x32xf32>, vector<32x32xf32> -> vector<32x32xf32>
    %c0_23 = arith.constant 0 : index
    %c0_24 = arith.constant 0 : index
    %109 = vector.load %arg6[%c0_23, %c0_24] : memref<1x32xf32, #tpu.memory_space<vmem>>, vector<1x32xf32>
    %110 = vector.broadcast %109 : vector<1x32xf32> to vector<32x32xf32>
    %111 = arith.addf %108, %110 : vector<32x32xf32>
    %112 = arith.addf %111, %25 : vector<32x32xf32>
    %c0_25 = arith.constant 0 : index
    %c0_26 = arith.constant 0 : index
    %113 = vector.load %arg7[%c0_25, %c0_26] : memref<1x32xf32, #tpu.memory_space<vmem>>, vector<1x32xf32>
    %c0_27 = arith.constant 0 : index
    %c0_28 = arith.constant 0 : index
    %114 = vector.load %arg8[%c0_27, %c0_28] : memref<1x32xf32, #tpu.memory_space<vmem>>, vector<1x32xf32>
    %cst_29 = arith.constant dense<0.000000e+00> : vector<32xf32>
    %115 = vector.multi_reduction <add>, %112, %cst_29 [1] : vector<32x32xf32> to vector<32xf32>
    %116 = vector.shape_cast %115 : vector<32xf32> to vector<32x1xf32>
    %cst_30 = arith.constant 3.200000e+01 : f32
    %117 = vector.broadcast %cst_30 : f32 to vector<32x1xf32>
    %118 = arith.divf %116, %117 : vector<32x1xf32>
    %119 = vector.broadcast %118 : vector<32x1xf32> to vector<32x32xf32>
    %120 = arith.subf %112, %119 : vector<32x32xf32>
    %121 = arith.mulf %120, %120 : vector<32x32xf32>
    %cst_31 = arith.constant dense<0.000000e+00> : vector<32xf32>
    %122 = vector.multi_reduction <add>, %121, %cst_31 [1] : vector<32x32xf32> to vector<32xf32>
    %123 = vector.shape_cast %122 : vector<32xf32> to vector<32x1xf32>
    %cst_32 = arith.constant 3.200000e+01 : f32
    %124 = vector.broadcast %cst_32 : f32 to vector<32x1xf32>
    %125 = arith.divf %123, %124 : vector<32x1xf32>
    %126 = vector.broadcast %118 : vector<32x1xf32> to vector<32x32xf32>
    %127 = arith.subf %112, %126 : vector<32x32xf32>
    %cst_33 = arith.constant 9.99999974E-6 : f32
    %128 = vector.broadcast %cst_33 : f32 to vector<32x1xf32>
    %129 = arith.addf %125, %128 : vector<32x1xf32>
    %130 = math.rsqrt %129 : vector<32x1xf32>
    %131 = vector.broadcast %130 : vector<32x1xf32> to vector<32x32xf32>
    %132 = arith.mulf %127, %131 : vector<32x32xf32>
    %133 = vector.broadcast %113 : vector<1x32xf32> to vector<32x32xf32>
    %134 = arith.mulf %132, %133 : vector<32x32xf32>
    %135 = vector.broadcast %114 : vector<1x32xf32> to vector<32x32xf32>
    %136 = arith.addf %134, %135 : vector<32x32xf32>
    %c0_34 = arith.constant 0 : index
    %c0_35 = arith.constant 0 : index
    %137 = vector.load %arg9[%c0_34, %c0_35] : memref<32x64xf32, #tpu.memory_space<vmem>>, vector<32x64xf32>
    %cst_36 = arith.constant dense<0.000000e+00> : vector<32x64xf32>
    %138 = tpu.matmul %136, %137, %cst_36 {dimension_numbers = #tpu.dot_dimension_numbers<[1], [0], [0], [1], [0, 0, 1, 1], [], []>} : vector<32x32xf32>, vector<32x64xf32>, vector<32x64xf32> -> vector<32x64xf32>
    %c0_37 = arith.constant 0 : index
    %c0_38 = arith.constant 0 : index
    %139 = vector.load %arg10[%c0_37, %c0_38] : memref<1x64xf32, #tpu.memory_space<vmem>>, vector<1x64xf32>
    %140 = vector.broadcast %139 : vector<1x64xf32> to vector<32x64xf32>
    %141 = arith.addf %138, %140 : vector<32x64xf32>
    %cst_39 = arith.constant 5.000000e-01 : f32
    %142 = vector.broadcast %cst_39 : f32 to vector<32x64xf32>
    %143 = arith.mulf %142, %141 : vector<32x64xf32>
    %cst_40 = arith.constant 0.707106769 : f32
    %144 = vector.broadcast %cst_40 : f32 to vector<32x64xf32>
    %145 = arith.mulf %141, %144 : vector<32x64xf32>
    %cst_41 = arith.constant 0.000000e+00 : f32
    %146 = vector.broadcast %cst_41 : f32 to vector<32x64xf32>
    %147 = arith.cmpf oge, %145, %146 : vector<32x64xf32>
    %cst_42 = arith.constant 1.000000e+00 : f32
    %cst_43 = arith.constant -1.000000e+00 : f32
    %148 = vector.broadcast %cst_42 : f32 to vector<32x64xf32>
    %149 = vector.broadcast %cst_43 : f32 to vector<32x64xf32>
    %150 = arith.select %147, %148, %149 : vector<32x64xi1>, vector<32x64xf32>
    %151 = math.absf %145 : vector<32x64xf32>
    %cst_44 = arith.constant 0.327591091 : f32
    %152 = vector.broadcast %cst_44 : f32 to vector<32x64xf32>
    %153 = arith.mulf %152, %151 : vector<32x64xf32>
    %cst_45 = arith.constant 1.000000e+00 : f32
    %154 = vector.broadcast %cst_45 : f32 to vector<32x64xf32>
    %155 = arith.addf %154, %153 : vector<32x64xf32>
    %156 = tpu.reciprocal %155 {approx = true} : vector<32x64xf32> -> vector<32x64xf32>
    %157 = arith.mulf %155, %156 : vector<32x64xf32>
    %cst_46 = arith.constant 2.000000e+00 : f32
    %158 = vector.broadcast %cst_46 : f32 to vector<32x64xf32>
    %159 = arith.subf %158, %157 : vector<32x64xf32>
    %160 = arith.mulf %156, %159 : vector<32x64xf32>
    %cst_47 = arith.constant 1.06140542 : f32
    %161 = vector.broadcast %cst_47 : f32 to vector<32x64xf32>
    %162 = arith.mulf %161, %160 : vector<32x64xf32>
    %cst_48 = arith.constant -1.45315206 : f32
    %163 = vector.broadcast %cst_48 : f32 to vector<32x64xf32>
    %164 = arith.addf %162, %163 : vector<32x64xf32>
    %165 = arith.mulf %164, %160 : vector<32x64xf32>
    %cst_49 = arith.constant 1.42141378 : f32
    %166 = vector.broadcast %cst_49 : f32 to vector<32x64xf32>
    %167 = arith.addf %165, %166 : vector<32x64xf32>
    %168 = arith.mulf %167, %160 : vector<32x64xf32>
    %cst_50 = arith.constant -0.284496725 : f32
    %169 = vector.broadcast %cst_50 : f32 to vector<32x64xf32>
    %170 = arith.addf %168, %169 : vector<32x64xf32>
    %171 = arith.mulf %170, %160 : vector<32x64xf32>
    %cst_51 = arith.constant 0.254829586 : f32
    %172 = vector.broadcast %cst_51 : f32 to vector<32x64xf32>
    %173 = arith.addf %171, %172 : vector<32x64xf32>
    %174 = arith.mulf %173, %160 : vector<32x64xf32>
    %cst_52 = arith.constant 0.000000e+00 : f32
    %175 = vector.broadcast %cst_52 : f32 to vector<32x64xf32>
    %176 = arith.subf %175, %151 : vector<32x64xf32>
    %177 = arith.mulf %176, %151 : vector<32x64xf32>
    %178 = math.exp %177 : vector<32x64xf32>
    %179 = arith.mulf %174, %178 : vector<32x64xf32>
    %cst_53 = arith.constant 1.000000e+00 : f32
    %180 = vector.broadcast %cst_53 : f32 to vector<32x64xf32>
    %181 = arith.subf %180, %179 : vector<32x64xf32>
    %182 = arith.mulf %150, %181 : vector<32x64xf32>
    %cst_54 = arith.constant 1.000000e+00 : f32
    %183 = vector.broadcast %cst_54 : f32 to vector<32x64xf32>
    %184 = arith.addf %183, %182 : vector<32x64xf32>
    %185 = arith.mulf %143, %184 : vector<32x64xf32>
    %c0_55 = arith.constant 0 : index
    %c0_56 = arith.constant 0 : index
    %186 = vector.load %arg11[%c0_55, %c0_56] : memref<64x32xf32, #tpu.memory_space<vmem>>, vector<64x32xf32>
    %cst_57 = arith.constant dense<0.000000e+00> : vector<32x32xf32>
    %187 = tpu.matmul %185, %186, %cst_57 {dimension_numbers = #tpu.dot_dimension_numbers<[1], [0], [0], [1], [0, 0, 1, 1], [], []>} : vector<32x64xf32>, vector<64x32xf32>, vector<32x32xf32> -> vector<32x32xf32>
    %c0_58 = arith.constant 0 : index
    %c0_59 = arith.constant 0 : index
    %188 = vector.load %arg12[%c0_58, %c0_59] : memref<1x32xf32, #tpu.memory_space<vmem>>, vector<1x32xf32>
    %189 = vector.broadcast %188 : vector<1x32xf32> to vector<32x32xf32>
    %190 = arith.addf %187, %189 : vector<32x32xf32>
    %191 = arith.addf %190, %136 : vector<32x32xf32>
    %192 = vector.shape_cast %191 : vector<32x32xf32> to vector<2x16x32xf32>
    %c0_60 = arith.constant 0 : index
    %c0_61 = arith.constant 0 : index
    %c0_62 = arith.constant 0 : index
    %193 = vector.load %arg13[%c0_60, %c0_61, %c0_62] : memref<2x16x32xf32, #tpu.memory_space<vmem>>, vector<2x16x32xf32>
    tpu.vector_store %arg13[%c0_60, %c0_61, %c0_62], %192 {strides = array<i32>} : memref<2x16x32xf32, #tpu.memory_space<vmem>>, vector<2x16x32xf32>,
    return
  }
  func.func @transform_0(%arg0: i32) -> (i32, i32, i32) {
    %c0_i32 = arith.constant 0 : i32
    %c0_i32_0 = arith.constant 0 : i32
    %c0_i32_1 = arith.constant 0 : i32
    return %arg0, %c0_i32, %c0_i32_0 : i32, i32, i32
  }
  func.func @transform_1(%arg0: i32) -> (i32, i32) {
    %c0_i32 = arith.constant 0 : i32
    %c0_i32_0 = arith.constant 0 : i32
    %c0_i32_1 = arith.constant 0 : i32
    return %c0_i32, %c0_i32_0 : i32, i32
  }
  func.func @transform_2(%arg0: i32) -> (i32, i32) {
    %c0_i32 = arith.constant 0 : i32
    %c0_i32_0 = arith.constant 0 : i32
    %c0_i32_1 = arith.constant 0 : i32
    return %c0_i32, %c0_i32_0 : i32, i32
  }
  func.func @transform_3(%arg0: i32) -> (i32, i32) {
    %c0_i32 = arith.constant 0 : i32
    %c0_i32_0 = arith.constant 0 : i32
    %c0_i32_1 = arith.constant 0 : i32
    return %c0_i32, %c0_i32_0 : i32, i32
  }
  func.func @transform_4(%arg0: i32) -> (i32, i32) {
    %c0_i32 = arith.constant 0 : i32
    %c0_i32_0 = arith.constant 0 : i32
    %c0_i32_1 = arith.constant 0 : i32
    return %c0_i32, %c0_i32_0 : i32, i32
  }
  func.func @transform_5(%arg0: i32) -> (i32, i32) {
    %c0_i32 = arith.constant 0 : i32
    %c0_i32_0 = arith.constant 0 : i32
    %c0_i32_1 = arith.constant 0 : i32
    return %c0_i32, %c0_i32_0 : i32, i32
  }
  func.func @transform_6(%arg0: i32) -> (i32, i32) {
    %c0_i32 = arith.constant 0 : i32
    %c0_i32_0 = arith.constant 0 : i32
    %c0_i32_1 = arith.constant 0 : i32
    return %c0_i32, %c0_i32_0 : i32, i32
  }
  func.func @transform_7(%arg0: i32) -> (i32, i32) {
    %c0_i32 = arith.constant 0 : i32
    %c0_i32_0 = arith.constant 0 : i32
    %c0_i32_1 = arith.constant 0 : i32
    return %c0_i32, %c0_i32_0 : i32, i32
  }
  func.func @transform_8(%arg0: i32) -> (i32, i32) {
    %c0_i32 = arith.constant 0 : i32
    %c0_i32_0 = arith.constant 0 : i32
    %c0_i32_1 = arith.constant 0 : i32
    return %c0_i32, %c0_i32_0 : i32, i32
  }
  func.func @transform_9(%arg0: i32) -> (i32, i32) {
    %c0_i32 = arith.constant 0 : i32
    %c0_i32_0 = arith.constant 0 : i32
    %c0_i32_1 = arith.constant 0 : i32
    return %c0_i32, %c0_i32_0 : i32, i32
  }
  func.func @transform_10(%arg0: i32) -> (i32, i32) {
    %c0_i32 = arith.constant 0 : i32
    %c0_i32_0 = arith.constant 0 : i32
    %c0_i32_1 = arith.constant 0 : i32
    return %c0_i32, %c0_i32_0 : i32, i32
  }
  func.func @transform_11(%arg0: i32) -> (i32, i32) {
    %c0_i32 = arith.constant 0 : i32
    %c0_i32_0 = arith.constant 0 : i32
    %c0_i32_1 = arith.constant 0 : i32
    return %c0_i32, %c0_i32_0 : i32, i32
  }
  func.func @transform_12(%arg0: i32) -> (i32, i32, i32) {
    %c0_i32 = arith.constant 0 : i32
    %c0_i32_0 = arith.constant 0 : i32
    %c0_i32_1 = arith.constant 0 : i32
    return %arg0, %c0_i32, %c0_i32_0 : i32, i32, i32
  }
}

</mosaic_0001>

<bundles_post_ra>
// kernel: tpu_custom_call.1
= control target key start
LH: loop header
LB: loop body
LE: loop exit
PB: predicated region body
PF: predicated region fallthrough
CT: control target
= control target key end

     0   :  { %17 = vsyncpa [#allocation3], 0  ;;  %s2531_s0 = inlined_call_operand.vmem [shape: f32[2,16,32], index: 0, kind: input, shape index: {}]   ;;  %s2532_s1 = inlined_call_operand.hbm [shape: f32[1,32], index: 1, kind: input, shape index: {}]   ;;  %s2533_s2 = inlined_call_operand.vmem [shape: f32[1,32], index: 2, kind: input, shape index: {}]   ;;  %s2534_s3 = inlined_call_operand.vmem [shape: f32[32,96], index: 3, kind: input, shape index: {}]   ;;  %s2535_s4 = inlined_call_operand.vmem [shape: f32[32,32], index: 4, kind: input, shape index: {}]   ;;  %s2536_s5 = inlined_call_operand.vmem [shape: f32[1,32], index: 5, kind: input, shape index: {}]   ;;  %s2537_s6 = inlined_call_operand.vmem [shape: f32[1,32], index: 6, kind: input, shape index: {}]   ;;  %s2538_s7 = inlined_call_operand.vmem [shape: f32[1,32], index: 7, kind: input, shape index: {}]   ;;  %s2539_s8 = inlined_call_operand.hbm [shape: f32[32,64], index: 8, kind: input, shape index: {}]   ;;  %s2540_s9 = inlined_call_operand.vmem [shape: f32[1,64], index: 9, kind: input, shape index: {}]   ;;  %s2541_s10 = inlined_call_operand.vmem [shape: f32[64,32], index: 10, kind: input, shape index: {}]   ;;  %s2542_s11 = inlined_call_operand.vmem [shape: f32[1,32], index: 11, kind: input, shape index: {}]   ;;  %s2543_s12 = inlined_call_operand.hbm [shape: f32[2,16,32], index: 12, kind: output, shape index: {}]  }
   0x1   :  { %18 = vsyncpa [#allocation6], 0 }
   0x2   :  { %19 = vsyncpa [#allocation4], 0  ;;  %s27_s23 = sshll.u32 %s2532_s1, 4  ;;  %s1852_s24 = smov [#allocation2]   ;;  %s28_s23 = int_to_ptr.hbm [resolvable:$true] %s27_s23 }
   0x3   :  { %s29_s25 = sshll.u32 %s1852_s24, 4  ;;  %s49_s28 = sshll.u32 %s2539_s8, 4  ;;  %s30_s25 = int_to_ptr.vmem [resolvable:$true] %s29_s25  ;;  %s50_s28 = int_to_ptr.hbm [resolvable:$true] %s49_s28 }
   0x4   :  { %32 = dma.hbm_to_vmem [thread:$0]  %s28_s23, 16, %s30_s25, [#allocation3]  }
   0x5   :  { %s1853_s29 = smov [#allocation5]   ;;  %s1854_s13 = smov 128  }
   0x6   :  { %s51_s30 = sshll.u32 %s1853_s29, 4  ;;  %s1855_s14 = smov 8   ;;  %s52_s30 = int_to_ptr.vmem [resolvable:$true] %s51_s30 }
   0x7   :  { %57 = dma.hbm_to_vmem [thread:$0]  %s50_s28, 512, %s52_s30, [#allocation6], %s1854_s13, %s1854_s13, %s1855_s14  }
   0x8   :  { %1846 = dma.done.wait [#allocation3], 16  }
   0x9   :  { %1847 = vsyncadd [#allocation3], 4294967280 }
   0xa   :  { %1848 = dma.done.wait [#allocation6], 512  }
   0xb   :  { %1849 = vsyncadd [#allocation6], 4294966784  ;;  %vm78_vm0 = vcmask 261120   ;;  %v74_v0 = vld [vmem:[%s2531_s0 + $0x10] sm:$0xff]  ;;  %v72_v1 = vld [vmem:[%s2531_s0] sm:$0xff]  ;;  %v1856_v8 = vmov 32.0  }
   0xc   :  { %v85_v2 = vsel %vm78_vm0, %v74_v0, 0.0  ;;  %v79_v3 = vsel %vm78_vm0, %v72_v1, 0.0  ;;  %v75_v4 = vld [vmem:[%s2531_s0 + $0x18] sm:$0xff]  ;;  %v73_v5 = vld [vmem:[%s2531_s0 + $0x8] sm:$0xff]  ;;  %1676 = vrcp.f32 %v1856_v8  ;;  %v190_v36 = vld [vmem:[%s2534_s3 + $0x10] sm:$0xff]  ;;  %s1858_s29 = smov 112  }
   0xd   :  { %86 = vadd.xlane.f32.xlu1 %v85_v2  ;;  %80 = vadd.xlane.f32.xlu0 %v79_v3  ;;  %v88_v6 = vsel %vm78_vm0, %v75_v4, 0.0  ;;  %v82_v7 = vsel %vm78_vm0, %v73_v5, 0.0  ;;  %v191_v35 = vld [vmem:[%s2534_s3 + $0x18] sm:$0xff]  ;;  %v189_v37 = vld [vmem:[%s2534_s3 + $0x8] sm:$0xff]  ;;  %v188_v38 = vld [vmem:[%s2534_s3] sm:$0xff]  ;;  %s1859_s30 = smov 96  }
   0xe   :  { %216 = vmatpush.msra.mxu0 %v191_v35  ;;  %1611 = vmatpush.msra.mxu1 %v191_v35  ;;  %v1669_v3 = vld [vmem:[#allocation2] ss:$0 sm:$0xff]  ;;  %s1860_s1 = smov 104   ;;  %vm265_vm14 = vcmask 64512   ;;  %s1861_s15 = smov 64  }
   0xf   :  { %s1862_s8 = smov 24   ;;  %s1863_s16 = smov 16  }
  0x10   :  { %217 = vmatpush.msra.mxu0 %v190_v36  ;;  %1612 = vmatpush.msra.mxu1 %v190_v36 }
  0x12   :  { %v1677_v9 = vpop.eup %1676  ;;  %218 = vmatpush.msra.mxu0 %v189_v37  ;;  %1613 = vmatpush.msra.mxu1 %v189_v37 }
  0x13   :  { %v92_v10 = vmul.f32 32.0, %v1677_v9  ;;  %vm96_vm1 = vweird.f32 %v1677_v9 }
  0x14   :  { %219 = vmatpush.msra.mxu0 %v188_v38  ;;  %1614 = vmatpush.msra.mxu1 %v188_v38 }
  0x15   :  { %89 = vadd.xlane.f32.xlu1 %v88_v6  ;;  %83 = vadd.xlane.f32.xlu0 %v82_v7  ;;  %v93_v11 = vsub.f32 1.0, %v92_v10 }
  0x17   :  { %v94_v12 = vmul.f32 %v1677_v9, %v93_v11 }
  0x19   :  { %v95_v13 = vadd.f32 %v1677_v9, %v94_v12 }
  0x1b   :  { %v1956_v14 = vsel %vm96_vm1, %v1677_v9, %v95_v13  ;;  %v1670_v9 = vld [vmem:[%s2533_s2] ss:$0 sm:$0xff]  ;;  %s1857_s2 = smov 120   ;;  %vm577_vm1 = vcmask 130048  }
  0x80   :  { %v87_v15 = vpop.xlane.xlu1 %86  ;;  %v81_v16 = vpop.xlane.xlu0 %80 }
  0x81   :  { %v100_v17 = vmul.f32 %v1956_v14, %v87_v15  ;;  %v98_v18 = vmul.f32 %v1956_v14, %v81_v16 }
  0x83   :  { %v1960_v19 = vsub.f32 %v74_v0, %v100_v17  ;;  %v1962_v20 = vsub.f32 %v72_v1, %v98_v18 }
  0x85   :  { %v108_v21 = vmul.f32 %v1960_v19, %v1960_v19  ;;  %v106_v22 = vmul.f32 %v1962_v20, %v1962_v20 }
  0x87   :  { %v116_v23 = vsel %vm78_vm0, %v108_v21, 0.0  ;;  %v110_v24 = vsel %vm78_vm0, %v106_v22, 0.0 }
  0x88   :  { %v90_v25 = vpop.xlane.xlu1 %89  ;;  %117 = vadd.xlane.f32.xlu0 %v116_v23  ;;  %111 = vadd.xlane.f32.xlu2 %v110_v24  ;;  %v84_v26 = vpop.xlane.xlu0 %83 }
  0x89   :  { %v101_v27 = vmul.f32 %v1956_v14, %v90_v25  ;;  %v99_v28 = vmul.f32 %v1956_v14, %v84_v26 }
  0x8b   :  { %v1972_v29 = vsub.f32 %v75_v4, %v101_v27  ;;  %v1974_v30 = vsub.f32 %v73_v5, %v99_v28 }
  0x8d   :  { %v109_v31 = vmul.f32 %v1972_v29, %v1972_v29  ;;  %v107_v32 = vmul.f32 %v1974_v30, %v1974_v30 }
  0x8f   :  { %v119_v33 = vsel %vm78_vm0, %v109_v31, 0.0  ;;  %v113_v34 = vsel %vm78_vm0, %v107_v32, 0.0 }
  0x90   :  { %120 = vadd.xlane.f32.xlu1 %v119_v33  ;;  %114 = vadd.xlane.f32.xlu2 %v113_v34 }
  0xfb   :  { %v112_v39 = vpop.xlane.xlu2 %111  ;;  %v118_v40 = vpop.xlane.xlu0 %117 }
  0xfc   :  { %v122_v41 = vmul.f32 %v112_v39, %v1956_v14  ;;  %v124_v42 = vmul.f32 %v118_v40, %v1956_v14 }
  0xfe   :  { %v126_v43 = vadd.f32 1e-05, %v122_v41  ;;  %v128_v44 = vadd.f32 1e-05, %v124_v42 }
 0x100   :  { %1678 = vrsqrt.f32 %v126_v43  ;;  %vm156_vm2 = vweird.f32 %v128_v44  ;;  %vm136_vm5 = vweird.f32 %v126_v43 }
 0x101   :  { %1680 = vrsqrt.f32 %v128_v44 }
 0x103   :  { %v121_v45 = vpop.xlane.xlu1 %120  ;;  %v115_v46 = vpop.xlane.xlu2 %114 }
 0x104   :  { %v125_v47 = vmul.f32 %v121_v45, %v1956_v14  ;;  %v123_v48 = vmul.f32 %v115_v46, %v1956_v14 }
 0x106   :  { %v1679_v49 = vpop.eup %1678  ;;  %v129_v50 = vadd.f32 1e-05, %v125_v47  ;;  %v127_v51 = vadd.f32 1e-05, %v123_v48 }
 0x107   :  { %v1681_v52 = vpop.eup %1680  ;;  %v131_v53 = vmul.f32 %v1679_v49, %v126_v43  ;;  %vm137_vm4 = vweird.f32 %v1679_v49 }
 0x108   :  { %v151_v54 = vmul.f32 %v1681_v52, %v128_v44  ;;  %1682 = vrsqrt.f32 %v129_v50  ;;  %vm157_vm3 = vweird.f32 %v1681_v52  ;;  %vm138_vm7 = vmor %vm136_vm5, %vm137_vm4  ;;  %vm166_vm8 = vweird.f32 %v129_v50 }
 0x109   :  { %v132_v55 = vmul.f32 %v1679_v49, %v131_v53  ;;  %1684 = vrsqrt.f32 %v127_v51  ;;  %vm158_vm6 = vmor %vm156_vm2, %vm157_vm3  ;;  %vm146_vm12 = vweird.f32 %v127_v51  ;;  %vm1138_vm2 = vcmask 195584  }
 0x10a   :  { %v152_v56 = vmul.f32 %v1681_v52, %v151_v54 }
 0x10b   :  { %v133_v57 = vmul.f32 0.5, %v132_v55 }
 0x10c   :  { %v153_v58 = vmul.f32 0.5, %v152_v56 }
 0x10d   :  { %v134_v59 = vsub.f32 1.5, %v133_v57 }
 0x10e   :  { %v1683_v60 = vpop.eup %1682  ;;  %v154_v61 = vsub.f32 1.5, %v153_v58 }
 0x10f   :  { %v1685_v62 = vpop.eup %1684  ;;  %v135_v63 = vmul.f32 %v1679_v49, %v134_v59  ;;  %v161_v0 = vmul.f32 %v1683_v60, %v129_v50  ;;  %vm167_vm9 = vweird.f32 %v1683_v60 }
 0x110   :  { %v155_v1 = vmul.f32 %v1681_v52, %v154_v61  ;;  %v141_v2 = vmul.f32 %v1685_v62, %v127_v51  ;;  %vm168_vm10 = vmor %vm166_vm8, %vm167_vm9  ;;  %vm147_vm11 = vweird.f32 %v1685_v62 }
 0x111   :  { %v139_v4 = vsel %vm138_vm7, %v1679_v49, %v135_v63  ;;  %v162_v5 = vmul.f32 %v1683_v60, %v161_v0  ;;  %vm148_vm13 = vmor %vm146_vm12, %vm147_vm11 }
 0x112   :  { %v159_v6 = vsel %vm158_vm6, %v1681_v52, %v155_v1  ;;  %v142_v7 = vmul.f32 %v1685_v62, %v141_v2  ;;  %v170_v8 = vmul.f32 %v139_v4, %v1962_v20  ;;  %v558_v2 = vlaneseq }
 0x113   :  { %v163_v10 = vmul.f32 0.5, %v162_v5  ;;  %v172_v11 = vmul.f32 %v159_v6, %v1960_v19 }
 0x114   :  { %v143_v12 = vmul.f32 0.5, %v142_v7  ;;  %v177_v13 = vmul.f32 %v1669_v3, %v170_v8  ;;  %v2127_v7 = vand.u32 127, %v558_v2 }
 0x115   :  { %v164_v15 = vsub.f32 1.5, %v163_v10  ;;  %v179_v16 = vmul.f32 %v1669_v3, %v172_v11 }
 0x116   :  { %v144_v17 = vsub.f32 1.5, %v143_v12  ;;  %v2003_v18 = vadd.f32 %v1670_v9, %v177_v13  ;;  %vm560_vm15 = vcmp.lt.s32.totalorder %v2127_v7, 9 }
 0x117   :  { %v165_v21 = vmul.f32 %v1683_v60, %v164_v15  ;;  %v2005_v20 = vadd.f32 %v1670_v9, %v179_v16 }
 0x118   :  { %v145_v22 = vmul.f32 %v1685_v62, %v144_v17  ;;  %1547 = vmatmul.msk.f32.vlgmr.msra.gmra.mxu0 %vm78_vm0, %v2003_v18 }
 0x119   :  { %v169_v23 = vsel %vm168_vm10, %v1683_v60, %v165_v21  ;;  %1549 = vmatmul.msk.f32.vlgmr.msra.gmra.mxu1 %vm78_vm0, %v2005_v20 }
 0x11a   :  { %v149_v19 = vsel %vm148_vm13, %v1685_v62, %v145_v22  ;;  %v173_v24 = vmul.f32 %v169_v23, %v1972_v29 }
 0x11b   :  { %v171_v25 = vmul.f32 %v149_v19, %v1974_v30 }
 0x11c   :  { %v180_v26 = vmul.f32 %v1669_v3, %v173_v24 }
 0x11d   :  { %v178_v27 = vmul.f32 %v1669_v3, %v171_v25 }
 0x11e   :  { %v2013_v28 = vadd.f32 %v1670_v9, %v180_v26 }
 0x11f   :  { %v2015_v31 = vadd.f32 %v1670_v9, %v178_v27 }
 0x121   :  { %1548 = vmatmul.msk.f32.gmra.mxu0 %vm78_vm0, %v2015_v31  ;;  %1550 = vmatmul.msk.f32.gmra.mxu1 %vm78_vm0, %v2013_v28 }
 0x195   :  { %v2021_v32 = vpop.f32.mrf.mxu0 }
 0x196   :  { %237 = vrot.lane.b32.xlu0 %v2021_v32, %s1857_s2  ;;  %v2024_v29 = vpop.f32.mrf.mxu1 }
 0x19e   :  { %v224_v30 = vpop.f32.mrf.mxu0  ;;  %241 = vrot.lane.b32.xlu0 %v2024_v29, %s1857_s2  ;;  %v2027_v33 = vpop.f32.mrf.mxu1 }
 0x19f   :  { %247 = vrot.lane.b32.xlu1 %v224_v30, %s1858_s29  ;;  %239 = vrot.lane.b32.xlu2 %v224_v30, %s1857_s2  ;;  %v1629_v51 = vpack.i.bf16 %v2021_v32, %v224_v30 }
 0x1a6   :  { %243 = vrot.lane.b32.xlu0 %v2027_v33, %s1857_s2 }
 0x1a7   :  { %245 = vrot.lane.b32.xlu2 %v2021_v32, %s1858_s29  ;;  %249 = vrot.lane.b32.xlu1 %v2024_v29, %s1858_s29 }
 0x1ae   :  { %299 = vrot.lane.b32.xlu0 %v2027_v33, %s1859_s30 }
 0x1af   :  { %253 = vrot.lane.b32.xlu2 %v2021_v32, %s1860_s1  ;;  %251 = vrot.lane.b32.xlu1 %v2027_v33, %s1858_s29 }
 0x1b6   :  { %263 = vrot.lane.b32.xlu0 %v224_v30, %s1859_s30 }
 0x1b7   :  { %255 = vrot.lane.b32.xlu2 %v224_v30, %s1860_s1  ;;  %259 = vrot.lane.b32.xlu1 %v2027_v33, %s1860_s1 }
 0x1be   :  { %261 = vrot.lane.b32.xlu0 %v2021_v32, %s1859_s30 }
 0x1bf   :  { %297 = vrot.lane.b32.xlu2 %v2024_v29, %s1859_s30  ;;  %257 = vrot.lane.b32.xlu1 %v2024_v29, %s1860_s1 }
 0x1f9   :  { %v240_v34 = vpop.permute.xlu2 %239 }
 0x1fa   :  { %334 = vrot.lane.b32.xlu2 %v240_v34, %s1859_s30 }
 0x201   :  { %v2044_v35 = vpop.permute.xlu2 %245 }
 0x202   :  { %402 = vrot.lane.b32.xlu0 %v2044_v35, %s1859_s30 }
 0x208   :  { %v238_v36 = vpop.permute.xlu0 %237 }
 0x209   :  { %332 = vrot.lane.b32.xlu2 %v238_v36, %s1859_s30  ;;  %v2049_v37 = vpop.permute.xlu2 %253  ;;  %v1634_v48 = vpack.i.bf16 %v238_v36, %v240_v34 }
 0x210   :  { %v2051_v38 = vpop.permute.xlu0 %241 }
 0x211   :  { %v2053_v39 = vpop.permute.xlu1 %247  ;;  %v2059_v41 = vpop.permute.xlu2 %255 }
 0x212   :  { %404 = vrot.lane.b32.xlu1 %v2053_v39, %s1859_s30 }
 0x218   :  { %v2057_v40 = vpop.permute.xlu0 %243 }
 0x219   :  { %v2061_v42 = vpop.permute.xlu1 %249  ;;  %369 = vrot.lane.b32.xlu2 %v2057_v40, %s1859_s30  ;;  %v298_v45 = vpop.permute.xlu2 %297 }
 0x21a   :  { %474 = vrot.lane.b32.xlu1 %v2059_v41, %s1859_s30 }
 0x220   :  { %v300_v43 = vpop.permute.xlu0 %299 }
 0x221   :  { %v2067_v44 = vpop.permute.xlu1 %251  ;;  %367 = vrot.lane.b32.xlu2 %v2051_v38, %s1859_s30  ;;  %1555 = vmatpush.xpose.msk.msra.mxu2 %vm265_vm14, %v300_v43 }
 0x222   :  { %472 = vrot.lane.b32.xlu1 %v2049_v37, %s1859_s30  ;;  %439 = vrot.lane.b32.xlu0 %v2067_v44, %s1859_s30 }
 0x225   :  { %1556 = vmatpush.xpose.msk.msra.mxu2 %vm265_vm14, %v298_v45 }
 0x228   :  { %1557 = vmatmul.msk.f32.vlgmr.msra.gmra.mxu2 %vm265_vm14, %v2024_v29  ;;  %v264_v46 = vpop.permute.xlu0 %263 }
 0x229   :  { %v2079_v47 = vpop.permute.xlu1 %259  ;;  %1551 = vmatpush.xpose.msk.msrb.mxu1 %vm265_vm14, %v264_v46 }
 0x22a   :  { %437 = vrot.lane.b32.xlu0 %v2061_v42, %s1859_s30  ;;  %509 = vrot.lane.b32.xlu2 %v2079_v47, %s1859_s30 }
 0x230   :  { %1558 = vmatmul.msk.f32.gmra.mxu2 %vm265_vm14, %v2027_v33  ;;  %v262_v49 = vpop.permute.xlu0 %261 }
 0x231   :  { %v2088_v50 = vpop.permute.xlu1 %257  ;;  %1552 = vmatpush.xpose.msk.msrb.mxu1 %vm265_vm14, %v262_v49 }
 0x232   :  { %507 = vrot.lane.b32.xlu1 %v2088_v50, %s1859_s30  ;;  %1635 = vrot.lane.b32.xlu0 %v1634_v48, %s1861_s15 }
 0x233   :  { %1630 = vrot.lane.b32.xlu2 %v1629_v51, %s1861_s15 }
 0x234   :  { %1553 = vmatmul.msk.f32.vlgmr.msrb.gmra.mxu1 %vm265_vm14, %v2021_v32 }
 0x23c   :  { %1554 = vmatmul.msk.f32.gmra.mxu1 %vm265_vm14, %v224_v30 }
 0x254   :  { %v335_v52 = vpop.permute.xlu2 %334 }
 0x255   :  { %1559 = vmatpush.xpose.msk.msra.mxu3 %vm265_vm14, %v335_v52 }
 0x263   :  { %v333_v53 = vpop.permute.xlu2 %332 }
 0x264   :  { %1560 = vmatpush.xpose.msk.msra.mxu3 %vm265_vm14, %v333_v53 }
 0x267   :  { %1561 = vmatmul.msk.f32.vlgmr.msra.gmra.mxu3 %vm265_vm14, %v238_v36 }
 0x26f   :  { %1562 = vmatmul.msk.f32.gmra.mxu3 %vm265_vm14, %v240_v34 }
 0x273   :  { %v370_v54 = vpop.permute.xlu2 %369 }
 0x274   :  { %1563 = vmatpush.xpose.msk.msra.mxu1 %vm265_vm14, %v370_v54  ;;  %v403_v58 = vpop.permute.xlu0 %402 }
 0x27b   :  { %v368_v55 = vpop.permute.xlu2 %367 }
 0x27c   :  { %1564 = vmatpush.xpose.msk.msra.mxu1 %vm265_vm14, %v368_v55 }
 0x27f   :  { %1565 = vmatmul.msk.f32.vlgmr.msra.gmra.mxu1 %vm265_vm14, %v2051_v38 }
 0x284   :  { %v405_v56 = vpop.permute.xlu1 %404  ;;  %v510_v57 = vpop.permute.xlu2 %509 }
 0x285   :  { %1567 = vmatpush.xpose.msk.msrb.mxu2 %vm265_vm14, %v405_v56  ;;  %1579 = vmatpush.xpose.msk.msrb.mxu1 %vm265_vm14, %v510_v57 }
 0x287   :  { %1566 = vmatmul.msk.f32.gmra.mxu1 %vm265_vm14, %v2057_v40 }
 0x289   :  { %1568 = vmatpush.xpose.msk.msrb.mxu2 %vm265_vm14, %v403_v58 }
 0x28c   :  { %v475_v59 = vpop.permute.xlu1 %474  ;;  %1569 = vmatmul.msk.f32.vlgmr.msrb.gmra.mxu2 %vm265_vm14, %v2044_v35 }
 0x28d   :  { %v1631_v60 = vpop.permute.xlu2 %1630  ;;  %1575 = vmatpush.xpose.msk.msrb.mxu0 %vm265_vm14, %v475_v59 }
 0x28e   :  { %v1632_v61 = vunpack.i.l.bf16 %v1631_v60  ;;  %v1633_v62 = vunpack.i.h.bf16 %v1631_v60 }
 0x290   :  { %828 = vmatpush.msra.mxu2 %v1632_v61 }
 0x292   :  { %829 = vmatpush.msra.mxu2 %v1633_v62 }
 0x294   :  { %v473_v63 = vpop.permute.xlu1 %472  ;;  %1570 = vmatmul.msk.f32.gmra.mxu2 %vm265_vm14, %v2053_v39  ;;  %v440_v0 = vpop.permute.xlu0 %439 }
 0x295   :  { %1571 = vmatpush.xpose.msk.msrb.mxu3 %vm265_vm14, %v440_v0  ;;  %1576 = vmatpush.xpose.msk.msrb.mxu0 %vm265_vm14, %v473_v63 }
 0x298   :  { %1577 = vmatmul.msk.f32.vlgmr.msrb.gmra.mxu0 %vm265_vm14, %v2049_v37 }
 0x29c   :  { %v438_v1 = vpop.permute.xlu0 %437 }
 0x29d   :  { %1572 = vmatpush.xpose.msk.msrb.mxu3 %vm265_vm14, %v438_v1 }
 0x2a0   :  { %1573 = vmatmul.msk.f32.vlgmr.msrb.gmra.mxu3 %vm265_vm14, %v2061_v42  ;;  %1578 = vmatmul.msk.f32.gmra.mxu0 %vm265_vm14, %v2059_v41 }
 0x2a4   :  { %v508_v3 = vpop.permute.xlu1 %507  ;;  %v1636_v4 = vpop.permute.xlu0 %1635 }
 0x2a5   :  { %v1637_v5 = vunpack.i.l.bf16 %v1636_v4  ;;  %1580 = vmatpush.xpose.msk.msrb.mxu1 %vm265_vm14, %v508_v3  ;;  %v1638_v6 = vunpack.i.h.bf16 %v1636_v4 }
 0x2a7   :  { %898 = vmatpush.msra.mxu0 %v1637_v5 }
 0x2a8   :  { %1574 = vmatmul.msk.f32.gmra.mxu3 %vm265_vm14, %v2067_v44  ;;  %1581 = vmatmul.msk.f32.vlgmr.msrb.gmra.mxu1 %vm265_vm14, %v2088_v50 }
 0x2a9   :  { %899 = vmatpush.msra.mxu0 %v1638_v6 }
 0x2ab   :  { %v326_v8 = vpop.f32.mrf.mxu2 }
 0x2ac   :  { %v544_v9 = vmul.f32 0.35355338, %v326_v8 }
 0x2ae   :  { %v563_v10 = vsel %vm560_vm15, %v544_v9, -1e+30 }
 0x2af   :  { %v584_v11 = vsel %vm577_vm1, %v563_v10, -inf }
 0x2b0   :  { %1582 = vmatmul.msk.f32.gmra.mxu1 %vm265_vm14, %v2079_v47  ;;  %585 = vmax.xlane.f32.xlu2 %v584_v11 }
 0x2b1   :  { %v291_v12 = vpop.f32.mrf.mxu1 }
 0x2b2   :  { %v542_v13 = vmul.f32 0.35355338, %v291_v12 }
 0x2b3   :  { %v329_v22 = vpop.f32.mrf.mxu2 }
 0x2b4   :  { %v561_v15 = vsel %vm560_vm15, %v542_v13, -1e+30  ;;  %v545_v24 = vmul.f32 0.35355338, %v329_v22 }
 0x2b5   :  { %v578_v16 = vsel %vm577_vm1, %v561_v15, -inf }
 0x2b6   :  { %579 = vmax.xlane.f32.xlu0 %v578_v16  ;;  %v2147_v25 = vsel %vm560_vm15, %v545_v24, -1e+30 }
 0x2b7   :  { %v587_v26 = vsel %vm577_vm1, %v2147_v25, -inf }
 0x2b9   :  { %v294_v17 = vpop.f32.mrf.mxu1 }
 0x2ba   :  { %v543_v21 = vmul.f32 0.35355338, %v294_v17 }
 0x2bc   :  { %v562_v23 = vsel %vm560_vm15, %v543_v21, -1e+30 }
 0x2bd   :  { %v581_v19 = vsel %vm577_vm1, %v562_v23, -inf }
 0x2be   :  { %582 = vmax.xlane.f32.xlu1 %v581_v19 }
 0x2c6   :  { %588 = vmax.xlane.f32.xlu1 %v587_v26 }
 0x2ea   :  { %v361_v27 = vpop.f32.mrf.mxu3 }
 0x2eb   :  { %v546_v60 = vmul.f32 0.35355338, %v361_v27 }
 0x2ed   :  { %v2183_v1 = vsel %vm560_vm15, %v546_v60, -1e+30 }
 0x2ee   :  { %v590_v4 = vsel %vm577_vm1, %v2183_v1, -inf }
 0x2f2   :  { %v364_v34 = vpop.f32.mrf.mxu3 }
 0x2f3   :  { %v547_v45 = vmul.f32 0.35355338, %v364_v34 }
 0x2f5   :  { %v2159_v46 = vsel %vm560_vm15, %v547_v45, -1e+30 }
 0x2f6   :  { %v593_v48 = vsel %vm577_vm1, %v2159_v46, -inf }
 0x2fc   :  { %v396_v32 = vpop.f32.mrf.mxu1 }
 0x2fd   :  { %v548_v30 = vmul.f32 0.35355338, %v396_v32 }
 0x2ff   :  { %v2153_v36 = vsel %vm560_vm15, %v548_v30, -1e+30 }
 0x300   :  { %v596_v43 = vsel %vm577_vm1, %v2153_v36, -inf }
 0x301   :  { %597 = vmax.xlane.f32.xlu0 %v596_v43 }
 0x304   :  { %v399_v2 = vpop.f32.mrf.mxu1 }
 0x305   :  { %v549_v6 = vmul.f32 0.35355338, %v399_v2 }
 0x307   :  { %v2195_v12 = vsel %vm560_vm15, %v549_v6, -1e+30  ;;  %v1649_v6 = vpack.i.bf16 %v2059_v41, %v2057_v40 }
 0x308   :  { %v599_v13 = vsel %vm577_vm1, %v2195_v12, -inf }
 0x309   :  { %594 = vmax.xlane.f32.xlu0 %v593_v48 }
 0x30f   :  { %v431_v49 = vpop.f32.mrf.mxu2 }
 0x310   :  { %v550_v51 = vmul.f32 0.35355338, %v431_v49 }
 0x312   :  { %v2165_v52 = vsel %vm560_vm15, %v550_v51, -1e+30 }
 0x313   :  { %v602_v53 = vsel %vm577_vm1, %v2165_v52, -inf }
 0x314   :  { %603 = vmax.xlane.f32.xlu1 %v602_v53 }
 0x315   :  { %v501_v54 = vpop.f32.mrf.mxu0 }
 0x316   :  { %v554_v55 = vmul.f32 0.35355338, %v501_v54 }
 0x317   :  { %v434_v56 = vpop.f32.mrf.mxu2 }
 0x318   :  { %v551_v57 = vmul.f32 0.35355338, %v434_v56  ;;  %v2171_v58 = vsel %vm560_vm15, %v554_v55, -1e+30 }
 0x319   :  { %v614_v59 = vsel %vm577_vm1, %v2171_v58, -inf }
 0x31a   :  { %615 = vmax.xlane.f32.xlu2 %v614_v59  ;;  %v2177_v61 = vsel %vm560_vm15, %v551_v57, -1e+30 }
 0x31b   :  { %v605_v62 = vsel %vm577_vm1, %v2177_v61, -inf }
 0x31c   :  { %606 = vmax.xlane.f32.xlu0 %v605_v62 }
 0x31d   :  { %v504_v63 = vpop.f32.mrf.mxu0 }
 0x31e   :  { %v555_v0 = vmul.f32 0.35355338, %v504_v63 }
 0x320   :  { %v2187_v3 = vsel %vm560_vm15, %v555_v0, -1e+30 }
 0x321   :  { %v617_v5 = vsel %vm577_vm1, %v2187_v3, -inf }
 0x322   :  { %591 = vmax.xlane.f32.xlu2 %v590_v4  ;;  %618 = vmax.xlane.f32.xlu1 %v617_v5 }
 0x323   :  { %v586_v8 = vpop.xlane.xlu2 %585 }
 0x324   :  { %v628_v9 = vsub.f32 %v563_v10, %v586_v8 }
 0x325   :  { %v536_v26 = vpop.f32.mrf.mxu1 }
 0x326   :  { %v646_v11 = vmul.f32 1.442695, %v628_v9  ;;  %v556_v34 = vmul.f32 0.35355338, %v536_v26 }
 0x328   :  { %1686 = vpow2.f32 %v646_v11  ;;  %v2210_v48 = vsel %vm560_vm15, %v556_v34, -1e+30 }
 0x329   :  { %v580_v16 = vpop.xlane.xlu0 %579  ;;  %v620_v53 = vsel %vm577_vm1, %v2210_v48, -inf }
 0x32a   :  { %600 = vmax.xlane.f32.xlu2 %v599_v13  ;;  %v626_v17 = vsub.f32 %v561_v15, %v580_v16  ;;  %v466_v15 = vpop.f32.mrf.mxu3 }
 0x32b   :  { %v552_v54 = vmul.f32 0.35355338, %v466_v15 }
 0x32c   :  { %v642_v21 = vmul.f32 1.442695, %v626_v17 }
 0x32d   :  { %v539_v56 = vpop.f32.mrf.mxu1 }
 0x32e   :  { %v2199_v22 = vpop.eup %1686  ;;  %1688 = vpow2.f32 %v642_v21  ;;  %v557_v63 = vmul.f32 0.35355338, %v539_v56 }
 0x32f   :  { %v680_v19 = vsel %vm577_vm1, %v2199_v22, 0.0 }
 0x330   :  { %681 = vadd.xlane.f32.xlu0 %v680_v19  ;;  %v2230_v0 = vsel %vm560_vm15, %v557_v63, -1e+30 }
 0x331   :  { %v583_v10 = vpop.xlane.xlu1 %582  ;;  %v623_v4 = vsel %vm577_vm1, %v2230_v0, -inf }
 0x332   :  { %v627_v24 = vsub.f32 %v562_v23, %v583_v10  ;;  %v469_v55 = vpop.f32.mrf.mxu3 }
 0x333   :  { %v553_v62 = vmul.f32 0.35355338, %v469_v55 }
 0x334   :  { %v2203_v27 = vpop.eup %1688  ;;  %v644_v32 = vmul.f32 1.442695, %v627_v24 }
 0x335   :  { %v674_v30 = vsel %vm577_vm1, %v2203_v27, 0.0  ;;  %v2234_v2 = vsel %vm560_vm15, %v553_v62, -1e+30 }
 0x336   :  { %1690 = vpow2.f32 %v644_v32  ;;  %675 = vadd.xlane.f32.xlu2 %v674_v30  ;;  %v611_v5 = vsel %vm577_vm1, %v2234_v2, -inf }
 0x339   :  { %v589_v43 = vpop.xlane.xlu1 %588 }
 0x33a   :  { %v629_v45 = vsub.f32 %v2147_v25, %v589_v43  ;;  %v2220_v25 = vsel %vm560_vm15, %v552_v54, -1e+30 }
 0x33b   :  { %v608_v60 = vsel %vm577_vm1, %v2220_v25, -inf }
 0x33c   :  { %v2212_v49 = vpop.eup %1690  ;;  %v648_v23 = vmul.f32 1.442695, %v629_v45 }
 0x33d   :  { %v677_v51 = vsel %vm577_vm1, %v2212_v49, 0.0 }
 0x33e   :  { %1692 = vpow2.f32 %v648_v23  ;;  %678 = vadd.xlane.f32.xlu0 %v677_v51  ;;  %621 = vmax.xlane.f32.xlu2 %v620_v53 }
 0x344   :  { %v2222_v57 = vpop.eup %1692 }
 0x345   :  { %v683_v59 = vsel %vm577_vm1, %v2222_v57, 0.0 }
 0x346   :  { %684 = vadd.xlane.f32.xlu1 %v683_v59  ;;  %609 = vmax.xlane.f32.xlu0 %v608_v60 }
 0x34e   :  { %624 = vmax.xlane.f32.xlu0 %v623_v4  ;;  %612 = vmax.xlane.f32.xlu1 %v611_v5 }
 0x362   :  { %1650 = vrot.lane.b32.xlu0 %v1649_v6, %s1861_s15 }
 0x374   :  { %v598_v8 = vpop.xlane.xlu0 %597 }
 0x375   :  { %v632_v9 = vsub.f32 %v2153_v36, %v598_v8 }
 0x377   :  { %v654_v11 = vmul.f32 1.442695, %v632_v9 }
 0x379   :  { %1694 = vpow2.f32 %v654_v11 }
 0x37c   :  { %v595_v16 = vpop.xlane.xlu0 %594 }
 0x37d   :  { %v631_v51 = vsub.f32 %v2159_v46, %v595_v16 }
 0x37f   :  { %v2244_v7 = vpop.eup %1694  ;;  %v652_v56 = vmul.f32 1.442695, %v631_v51 }
 0x380   :  { %v692_v13 = vsel %vm577_vm1, %v2244_v7, 0.0 }
 0x381   :  { %693 = vadd.xlane.f32.xlu1 %v692_v13 }
 0x387   :  { %v604_v17 = vpop.xlane.xlu1 %603 }
 0x388   :  { %v634_v15 = vsub.f32 %v2165_v52, %v604_v17  ;;  %v1644_v17 = vpack.i.bf16 %v2044_v35, %v2024_v29 }
 0x38d   :  { %v616_v21 = vpop.xlane.xlu2 %615 }
 0x38e   :  { %v638_v19 = vsub.f32 %v2171_v58, %v616_v21 }
 0x38f   :  { %v607_v10 = vpop.xlane.xlu0 %606 }
 0x390   :  { %v666_v40 = vmul.f32 1.442695, %v638_v19  ;;  %v635_v41 = vsub.f32 %v2177_v61, %v607_v10 }
 0x392   :  { %1696 = vpow2.f32 %v666_v40  ;;  %v660_v24 = vmul.f32 1.442695, %v635_v41 }
 0x394   :  { %1698 = vpow2.f32 %v660_v24 }
 0x395   :  { %v592_v36 = vpop.xlane.xlu2 %591  ;;  %v619_v26 = vpop.xlane.xlu1 %618 }
 0x396   :  { %v630_v32 = vsub.f32 %v2183_v1, %v592_v36  ;;  %v639_v30 = vsub.f32 %v2187_v3, %v619_v26  ;;  %v658_v1 = vmul.f32 1.442695, %v634_v15  ;;  %v1654_v26 = vpack.i.bf16 %v2049_v37, %v2051_v38 }
 0x397   :  { %v1659_v37 = vpack.i.bf16 %v2061_v42, %v2067_v44 }
 0x398   :  { %v2252_v34 = vpop.eup %1696  ;;  %v650_v43 = vmul.f32 1.442695, %v630_v32  ;;  %v668_v45 = vmul.f32 1.442695, %v639_v30 }
 0x399   :  { %v710_v58 = vsel %vm577_vm1, %v2252_v34, 0.0 }
 0x39a   :  { %v2257_v23 = vpop.eup %1698  ;;  %1700 = vpow2.f32 %v650_v43  ;;  %711 = vadd.xlane.f32.xlu2 %v710_v58  ;;  %v1664_v43 = vpack.i.bf16 %v2088_v50, %v2079_v47 }
 0x39b   :  { %1702 = vpow2.f32 %v668_v45  ;;  %v701_v61 = vsel %vm577_vm1, %v2257_v23, 0.0 }
 0x39c   :  { %702 = vadd.xlane.f32.xlu0 %v701_v61  ;;  %1704 = vpow2.f32 %v658_v1 }
 0x39d   :  { %v601_v53 = vpop.xlane.xlu2 %600  ;;  %1706 = vpow2.f32 %v652_v56 }
 0x39e   :  { %v633_v42 = vsub.f32 %v2195_v12, %v601_v53 }
 0x3a0   :  { %v2261_v3 = vpop.eup %1700  ;;  %v656_v44 = vmul.f32 1.442695, %v633_v42 }
 0x3a1   :  { %v2264_v52 = vpop.eup %1702  ;;  %v686_v54 = vsel %vm577_vm1, %v2261_v3, 0.0 }
 0x3a2   :  { %v713_v55 = vsel %vm577_vm1, %v2264_v52, 0.0  ;;  %687 = vadd.xlane.f32.xlu1 %v686_v54  ;;  %v2270_v59 = vpop.eup %1704 }
 0x3a3   :  { %714 = vadd.xlane.f32.xlu2 %v713_v55  ;;  %v2272_v60 = vpop.xlane.xlu0 %681  ;;  %v698_v46 = vsel %vm577_vm1, %v2270_v59, 0.0  ;;  %v2276_v63 = vpop.eup %1706 }
 0x3a4   :  { %v689_v6 = vsel %vm577_vm1, %v2276_v63, 0.0 }
 0x3a9   :  { %v676_v62 = vpop.xlane.xlu2 %675 }
 0x3aa   :  { %1708 = vrcp.f32 %v676_v62  ;;  %699 = vadd.xlane.f32.xlu1 %v698_v46 }
 0x3b0   :  { %v1709_v4 = vpop.eup %1708 }
 0x3b1   :  { %v738_v5 = vmul.f32 %v1709_v4, %v676_v62  ;;  %v679_v8 = vpop.xlane.xlu0 %678  ;;  %v622_v58 = vpop.xlane.xlu2 %621 }
 0x3b2   :  { %690 = vadd.xlane.f32.xlu1 %v689_v6  ;;  %1710 = vrcp.f32 %v679_v8  ;;  %v640_v61 = vsub.f32 %v2210_v48, %v622_v58 }
 0x3b3   :  { %v754_v9 = vsub.f32 2.0, %v738_v5 }
 0x3b4   :  { %v670_v1 = vmul.f32 1.442695, %v640_v61 }
 0x3b5   :  { %v770_v11 = vmul.f32 %v1709_v4, %v754_v9 }
 0x3b7   :  { %v786_v13 = vmul.f32 %v2203_v27, %v770_v11 }
 0x3b8   :  { %v1711_v16 = vpop.eup %1710 }
 0x3b9   :  { %v739_v21 = vmul.f32 %v1711_v16, %v679_v8  ;;  %v2283_v19 = vpop.xlane.xlu1 %684  ;;  %1583 = vmatmul.msk.f32.vlgmr.msra.gmra.mxu2 %vm577_vm1, %v786_v13  ;;  %v610_v10 = vpop.xlane.xlu0 %609 }
 0x3ba   :  { %v636_v40 = vsub.f32 %v2220_v25, %v610_v10 }
 0x3bb   :  { %v755_v41 = vsub.f32 2.0, %v739_v21  ;;  %1645 = vrot.lane.b32.xlu2 %v1644_v17, %s1861_s15 }
 0x3bc   :  { %v662_v24 = vmul.f32 1.442695, %v636_v40 }
 0x3bd   :  { %v771_v36 = vmul.f32 %v1711_v16, %v755_v41 }
 0x3be   :  { %1712 = vpow2.f32 %v662_v24 }
 0x3bf   :  { %v787_v27 = vmul.f32 %v2212_v49, %v771_v36  ;;  %v1639_v49 = vpack.i.bf16 %v2053_v39, %v2027_v33 }
 0x3c1   :  { %v613_v29 = vpop.xlane.xlu1 %612  ;;  %1584 = vmatmul.msk.f32.gmra.mxu2 %vm577_vm1, %v787_v27 }
 0x3c2   :  { %v637_v35 = vsub.f32 %v2234_v2, %v613_v29  ;;  %v625_v2 = vpop.xlane.xlu0 %624 }
 0x3c3   :  { %1655 = vrot.lane.b32.xlu2 %v1654_v26, %s1861_s15  ;;  %v641_v47 = vsub.f32 %v2230_v0, %v625_v2 }
 0x3c4   :  { %v2294_v32 = vpop.eup %1712  ;;  %v664_v25 = vmul.f32 1.442695, %v637_v35 }
 0x3c5   :  { %v704_v30 = vsel %vm577_vm1, %v2294_v32, 0.0  ;;  %v672_v54 = vmul.f32 1.442695, %v641_v47 }
 0x3c6   :  { %1714 = vpow2.f32 %v664_v25  ;;  %705 = vadd.xlane.f32.xlu0 %v704_v30 }
 0x3c7   :  { %1716 = vpow2.f32 %v656_v44 }
 0x3c8   :  { %1718 = vpow2.f32 %v670_v1 }
 0x3c9   :  { %1720 = vpow2.f32 %v672_v54 }
 0x3cb   :  { %1660 = vrot.lane.b32.xlu2 %v1659_v37, %s1861_s15  ;;  %1640 = vrot.lane.b32.xlu1 %v1639_v49, %s1861_s15 }
 0x3cc   :  { %v2304_v38 = vpop.eup %1714 }
 0x3cd   :  { %v707_v15 = vsel %vm577_vm1, %v2304_v38, 0.0  ;;  %v2313_v51 = vpop.eup %1716 }
 0x3ce   :  { %708 = vadd.xlane.f32.xlu0 %v707_v15  ;;  %v695_v50 = vsel %vm577_vm1, %v2313_v51, 0.0  ;;  %v2318_v55 = vpop.eup %1718 }
 0x3cf   :  { %v716_v12 = vsel %vm577_vm1, %v2318_v55, 0.0  ;;  %v2322_v53 = vpop.eup %1720 }
 0x3d0   :  { %v719_v48 = vsel %vm577_vm1, %v2322_v53, 0.0 }
 0x3d3   :  { %1665 = vrot.lane.b32.xlu2 %v1664_v43, %s1861_s15 }
 0x3d4   :  { %v1651_v33 = vpop.permute.xlu0 %1650 }
 0x3d5   :  { %v1653_v39 = vunpack.i.h.bf16 %v1651_v33  ;;  %v1652_v45 = vunpack.i.l.bf16 %v1651_v33 }
 0x3d7   :  { %933 = vmatpush.msra.mxu1 %v1652_v45  ;;  %1038 = vmatpush.msrb.mxu0 %v1653_v39 }
 0x3f4   :  { %v694_v56 = vpop.xlane.xlu1 %693 }
 0x3f5   :  { %696 = vadd.xlane.f32.xlu1 %v695_v50  ;;  %1722 = vrcp.f32 %v694_v56 }
 0x3fb   :  { %v1723_v4 = vpop.eup %1722 }
 0x3fc   :  { %v744_v6 = vmul.f32 %v1723_v4, %v694_v56 }
 0x3fd   :  { %717 = vadd.xlane.f32.xlu1 %v716_v12 }
 0x3fe   :  { %v760_v16 = vsub.f32 2.0, %v744_v6 }
 0x400   :  { %v776_v10 = vmul.f32 %v1723_v4, %v760_v16 }
 0x402   :  { %v792_v27 = vmul.f32 %v2244_v7, %v776_v10 }
 0x405   :  { %720 = vadd.xlane.f32.xlu1 %v719_v48 }
 0x40d   :  { %v712_v0 = vpop.xlane.xlu2 %711 }
 0x40f   :  { %v703_v37 = vpop.xlane.xlu0 %702 }
 0x415   :  { %v688_v62 = vpop.xlane.xlu1 %687 }
 0x416   :  { %v715_v46 = vpop.xlane.xlu2 %714  ;;  %1724 = vrcp.f32 %v688_v62 }
 0x417   :  { %1726 = vrcp.f32 %v712_v0 }
 0x41c   :  { %v1725_v5 = vpop.eup %1724 }
 0x41d   :  { %v742_v8 = vmul.f32 %v1725_v5, %v688_v62  ;;  %v700_v9 = vpop.xlane.xlu1 %699  ;;  %v1727_v26 = vpop.eup %1726 }
 0x41e   :  { %v2326_v11 = vpop.permute.xlu2 %1645  ;;  %v750_v25 = vmul.f32 %v1727_v26, %v712_v0 }
 0x41f   :  { %v758_v13 = vsub.f32 2.0, %v742_v8 }
 0x420   :  { %v766_v7 = vsub.f32 2.0, %v750_v25 }
 0x421   :  { %v774_v17 = vmul.f32 %v1725_v5, %v758_v13  ;;  %v1647_v13 = vunpack.i.l.bf16 %v2326_v11 }
 0x422   :  { %v782_v44 = vmul.f32 %v1727_v26, %v766_v7 }
 0x423   :  { %v790_v21 = vmul.f32 %v2261_v3, %v774_v17 }
 0x425   :  { %v691_v40 = vpop.xlane.xlu1 %690  ;;  %1587 = vmatmul.msk.f32.vlgmr.msra.gmra.mxu0 %vm577_vm1, %v790_v21 }
 0x426   :  { %v1656_v41 = vpop.permute.xlu2 %1655  ;;  %1728 = vrcp.f32 %v691_v40 }
 0x427   :  { %v1658_v24 = vunpack.i.h.bf16 %v1656_v41  ;;  %v1657_v36 = vunpack.i.l.bf16 %v1656_v41  ;;  %1730 = vrcp.f32 %v2272_v60 }
 0x428   :  { %1732 = vrcp.f32 %v700_v9 }
 0x429   :  { %934 = vmatpush.msra.mxu1 %v1657_v36  ;;  %1039 = vmatpush.msrb.mxu0 %v1658_v24  ;;  %1734 = vrcp.f32 %v715_v46 }
 0x42a   :  { %1589 = vmatmul.msk.f32.vlgmr.msra.gmra.mxu1 %vm577_vm1, %v792_v27  ;;  %1736 = vrcp.f32 %v2283_v19 }
 0x42b   :  { %1738 = vrcp.f32 %v703_v37 }
 0x42c   :  { %v1729_v29 = vpop.eup %1728 }
 0x42d   :  { %v743_v3 = vmul.f32 %v1729_v29, %v691_v40  ;;  %v1731_v49 = vpop.eup %1730 }
 0x42e   :  { %v1661_v35 = vpop.permute.xlu2 %1660  ;;  %v1733_v15 = vpop.eup %1732  ;;  %v740_v39 = vmul.f32 %v1731_v49, %v2272_v60 }
 0x42f   :  { %v759_v30 = vsub.f32 2.0, %v743_v3  ;;  %v1735_v33 = vpop.eup %1734  ;;  %v746_v45 = vmul.f32 %v1733_v15, %v700_v9  ;;  %v1648_v9 = vunpack.i.h.bf16 %v2326_v11  ;;  %v1662_v40 = vunpack.i.l.bf16 %v1661_v35 }
 0x430   :  { %v751_v58 = vmul.f32 %v1735_v33, %v715_v46  ;;  %v1737_v1 = vpop.eup %1736  ;;  %v756_v47 = vsub.f32 2.0, %v740_v39  ;;  %v1663_v11 = vunpack.i.h.bf16 %v1661_v35 }
 0x431   :  { %v775_v2 = vmul.f32 %v1729_v29, %v759_v30  ;;  %v762_v50 = vsub.f32 2.0, %v746_v45  ;;  %v1739_v48 = vpop.eup %1738  ;;  %v741_v0 = vmul.f32 %v1737_v1, %v2283_v19 }
 0x432   :  { %v767_v56 = vsub.f32 2.0, %v751_v58  ;;  %v772_v60 = vmul.f32 %v1731_v49, %v756_v47  ;;  %v747_v62 = vmul.f32 %v1739_v48, %v703_v37 }
 0x433   :  { %v791_v43 = vmul.f32 %v2276_v63, %v775_v2  ;;  %v798_v63 = vmul.f32 %v2252_v34, %v782_v44  ;;  %v778_v4 = vmul.f32 %v1733_v15, %v762_v50  ;;  %v757_v16 = vsub.f32 2.0, %v741_v0 }
 0x434   :  { %v783_v8 = vmul.f32 %v1735_v33, %v767_v56  ;;  %v788_v34 = vmul.f32 %v2199_v22, %v772_v60  ;;  %v763_v17 = vsub.f32 2.0, %v747_v62 }
 0x435   :  { %1588 = vmatmul.msk.f32.gmra.mxu0 %vm577_vm1, %v791_v43  ;;  %v794_v19 = vmul.f32 %v2270_v59, %v778_v4  ;;  %v773_v24 = vmul.f32 %v1737_v1, %v757_v16 }
 0x436   :  { %v1666_v42 = vpop.permute.xlu2 %1665  ;;  %v799_v41 = vmul.f32 %v2264_v52, %v783_v8  ;;  %v779_v22 = vmul.f32 %v1739_v48, %v763_v17  ;;  %v1146_v8 = vld [vmem:[%s2535_s4 + $0x18] sm:$0xff] }
 0x437   :  { %v1667_v61 = vunpack.i.l.bf16 %v1666_v42  ;;  %v1668_v54 = vunpack.i.h.bf16 %v1666_v42  ;;  %v789_v27 = vmul.f32 %v2222_v57, %v773_v24 }
 0x438   :  { %v795_v26 = vmul.f32 %v2257_v23, %v779_v22 }
 0x439   :  { %1073 = vmatpush.msrb.mxu1 %v1667_v61  ;;  %v706_v12 = vpop.xlane.xlu0 %705 }
 0x43a   :  { %1740 = vrcp.f32 %v706_v12 }
 0x43b   :  { %1074 = vmatpush.msrb.mxu1 %v1668_v54 }
 0x43c   :  { %v831_v54 = vpop.f32.mrf.mxu2 }
 0x43d   :  { %v1641_v5 = vpop.permute.xlu1 %1640  ;;  %1595 = vmatmul.msk.f32.vlgmr.msrb.gmra.mxu0 %vm577_vm1, %v798_v63 }
 0x43e   :  { %v1643_v46 = vunpack.i.h.bf16 %v1641_v5  ;;  %v1642_v6 = vunpack.i.l.bf16 %v1641_v5 }
 0x440   :  { %863 = vmatpush.msra.mxu3 %v1642_v6  ;;  %968 = vmatpush.msrb.mxu2 %v1643_v46  ;;  %v1741_v10 = vpop.eup %1740 }
 0x441   :  { %v709_v21 = vpop.xlane.xlu0 %708  ;;  %v748_v36 = vmul.f32 %v1741_v10, %v706_v12 }
 0x442   :  { %864 = vmatpush.msra.mxu3 %v1647_v13  ;;  %969 = vmatpush.msrb.mxu2 %v1648_v9  ;;  %1742 = vrcp.f32 %v709_v21  ;;  %v1145_v9 = vld [vmem:[%s2535_s4 + $0x10] sm:$0xff]  ;;  %v1144_v13 = vld [vmem:[%s2535_s4 + $0x8] sm:$0xff] }
 0x443   :  { %1585 = vmatmul.msk.f32.vlgmr.msra.gmra.mxu3 %vm577_vm1, %v788_v34  ;;  %1591 = vmatmul.msk.f32.vlgmr.msrb.gmra.mxu2 %vm577_vm1, %v794_v19  ;;  %v764_v59 = vsub.f32 2.0, %v748_v36  ;;  %v1143_v34 = vld [vmem:[%s2535_s4] sm:$0xff] }
 0x444   :  { %1003 = vmatpush.msrb.mxu3 %v1662_v40  ;;  %v834_v48 = vpop.f32.mrf.mxu2  ;;  %1175 = vmatpush.msra.mxu2 %v1146_v8 }
 0x445   :  { %1596 = vmatmul.msk.f32.gmra.mxu0 %vm577_vm1, %v799_v41  ;;  %v780_v52 = vmul.f32 %v1741_v10, %v764_v59 }
 0x446   :  { %1004 = vmatpush.msrb.mxu3 %v1663_v11  ;;  %1176 = vmatpush.msra.mxu2 %v1145_v9 }
 0x447   :  { %v796_v35 = vmul.f32 %v2294_v32, %v780_v52 }
 0x448   :  { %v1743_v29 = vpop.eup %1742  ;;  %1177 = vmatpush.msra.mxu2 %v1144_v13  ;;  %v1303_v13 = vld [vmem:[#allocation5 + $0x18] sm:$0xff] }
 0x449   :  { %v749_v3 = vmul.f32 %v1743_v29, %v709_v21  ;;  %1332 = vmatpush.msra.mxu3 %v1303_v13 }
 0x44a   :  { %1178 = vmatpush.msra.mxu2 %v1143_v34  ;;  %v1302_v34 = vld [vmem:[#allocation5 + $0x10] sm:$0xff] }
 0x44b   :  { %1586 = vmatmul.msk.f32.gmra.mxu3 %vm577_vm1, %v789_v27  ;;  %1592 = vmatmul.msk.f32.gmra.mxu2 %vm577_vm1, %v795_v26  ;;  %v765_v25 = vsub.f32 2.0, %v749_v3 }
 0x44c   :  { %1333 = vmatpush.msra.mxu3 %v1302_v34  ;;  %v1471_v34 = vld [vmem:[%s2541_s10 + $0x30] sm:$0xff] }
 0x44d   :  { %v781_v30 = vmul.f32 %v1743_v29, %v765_v25 }
 0x44f   :  { %v797_v49 = vmul.f32 %v2304_v38, %v781_v30 }
 0x453   :  { %1593 = vmatmul.msk.f32.vlgmr.msrb.gmra.mxu3 %vm577_vm1, %v796_v35 }
 0x45b   :  { %1594 = vmatmul.msk.f32.gmra.mxu3 %vm577_vm1, %v797_v49 }
 0x468   :  { %v697_v57 = vpop.xlane.xlu1 %696 }
 0x469   :  { %1744 = vrcp.f32 %v697_v57 }
 0x46f   :  { %v1745_v23 = vpop.eup %1744 }
 0x470   :  { %v745_v37 = vmul.f32 %v1745_v23, %v697_v57  ;;  %v718_v2 = vpop.xlane.xlu1 %717 }
 0x471   :  { %1746 = vrcp.f32 %v718_v2 }
 0x472   :  { %v761_v15 = vsub.f32 2.0, %v745_v37 }
 0x474   :  { %v777_v7 = vmul.f32 %v1745_v23, %v761_v15 }
 0x476   :  { %v793_v43 = vmul.f32 %v2313_v51, %v777_v7 }
 0x477   :  { %v1747_v33 = vpop.eup %1746 }
 0x478   :  { %v752_v32 = vmul.f32 %v1747_v33, %v718_v2  ;;  %v721_v39 = vpop.xlane.xlu1 %720  ;;  %1590 = vmatmul.msk.f32.gmra.mxu1 %vm577_vm1, %v793_v43  ;;  %v1671_v2 = vld [vmem:[%s2536_s5] ss:$0 sm:$0xff]  ;;  %s1533_s5 = sshll.u32 %s2543_s12, 4  ;;  %s1534_s5 = int_to_ptr.hbm [resolvable:$true] %s1533_s5 }
 0x479   :  { %1748 = vrcp.f32 %v721_v39 }
 0x47a   :  { %v768_v45 = vsub.f32 2.0, %v752_v32 }
 0x47c   :  { %v784_v38 = vmul.f32 %v1747_v33, %v768_v45 }
 0x47e   :  { %v800_v42 = vmul.f32 %v2318_v55, %v784_v38 }
 0x47f   :  { %v1749_v44 = vpop.eup %1748 }
 0x480   :  { %v753_v58 = vmul.f32 %v1749_v44, %v721_v39  ;;  %1597 = vmatmul.msk.f32.vlgmr.msrb.gmra.mxu1 %vm577_vm1, %v800_v42 }
 0x482   :  { %v769_v61 = vsub.f32 2.0, %v753_v58 }
 0x484   :  { %v785_v1 = vmul.f32 %v1749_v44, %v769_v61 }
 0x486   :  { %v801_v47 = vmul.f32 %v2322_v53, %v785_v1 }
 0x488   :  { %1598 = vmatmul.msk.f32.gmra.mxu1 %vm577_vm1, %v801_v47 }
 0x4a2   :  { %v901_v51 = vpop.f32.mrf.mxu0 }
 0x4a3   :  { %1086 = vrot.lane.b32.xlu1 %v901_v51, %s1855_s14 }
 0x4a7   :  { %v936_v62 = vpop.f32.mrf.mxu1 }
 0x4b2   :  { %v904_v50 = vpop.f32.mrf.mxu0 }
 0x4ba   :  { %v1041_v12 = vpop.f32.mrf.mxu0 }
 0x4c2   :  { %v1044_v63 = vpop.f32.mrf.mxu0 }
 0x4c3   :  { %1120 = vrot.lane.b32.xlu0 %v1044_v63, %s1862_s8 }
 0x4c6   :  { %v866_v55 = vpop.f32.mrf.mxu3  ;;  %v971_v56 = vpop.f32.mrf.mxu2 }
 0x4c7   :  { %1102 = vrot.lane.b32.xlu2 %v971_v56, %s1863_s16 }
 0x4ce   :  { %v869_v60 = vpop.f32.mrf.mxu3  ;;  %v974_v0 = vpop.f32.mrf.mxu2 }
 0x4cf   :  { %1104 = vrot.lane.b32.xlu1 %v974_v0, %s1863_s16  ;;  %1088 = vrot.lane.b32.xlu2 %v904_v50, %s1855_s14 }
 0x4d6   :  { %v1006_v53 = vpop.f32.mrf.mxu3 }
 0x4d7   :  { %1106 = vrot.lane.b32.xlu1 %v1006_v53, %s1863_s16  ;;  %1118 = vrot.lane.b32.xlu2 %v1041_v12, %s1862_s8 }
 0x4de   :  { %v1009_v46 = vpop.f32.mrf.mxu3 }
 0x4df   :  { %1090 = vrot.lane.b32.xlu2 %v936_v62, %s1855_s14 }
 0x4f5   :  { %v939_v4 = vpop.f32.mrf.mxu1 }
 0x4f6   :  { %1092 = vrot.lane.b32.xlu1 %v939_v4, %s1855_s14 }
 0x4fd   :  { %v1076_v5 = vpop.f32.mrf.mxu1 }
 0x4fe   :  { %1122 = vrot.lane.b32.xlu2 %v1076_v5, %s1862_s8 }
 0x505   :  { %v1079_v6 = vpop.f32.mrf.mxu1 }
 0x506   :  { %1108 = vrot.lane.b32.xlu2 %v1009_v46, %s1863_s16  ;;  %1124 = vrot.lane.b32.xlu0 %v1079_v6, %s1862_s8 }
 0x515   :  { %v1087_v19 = vpop.permute.xlu1 %1086 }
 0x516   :  { %v1130_v21 = vsel %vm265_vm14, %v831_v54, %v1087_v19 }
 0x521   :  { %v1103_v16 = vpop.permute.xlu2 %1102 }
 0x522   :  { %v1134_v10 = vsel %vm577_vm1, %v1130_v21, %v1103_v16  ;;  %v1301_v16 = vld [vmem:[#allocation5 + $0x8] sm:$0xff] }
 0x523   :  { %1334 = vmatpush.msra.mxu3 %v1301_v16 }
 0x529   :  { %v1089_v17 = vpop.permute.xlu2 %1088 }
 0x52a   :  { %v1131_v11 = vsel %vm265_vm14, %v834_v48, %v1089_v17  ;;  %v1300_v17 = vld [vmem:[#allocation5] sm:$0xff] }
 0x52b   :  { %1335 = vmatpush.msra.mxu3 %v1300_v17  ;;  %v1470_v17 = vld [vmem:[%s2541_s10 + $0x28] sm:$0xff] }
 0x531   :  { %v1119_v40 = vpop.permute.xlu2 %1118 }
 0x532   :  { %v1139_v41 = vsel %vm1138_vm2, %v1134_v10, %v1119_v40 }
 0x533   :  { %1599 = vmatmul.msk.f32.vlgmr.msra.gmra.mxu2 %vm78_vm0, %v1139_v41 }
 0x535   :  { %v1121_v22 = vpop.permute.xlu0 %1120 }
 0x539   :  { %v1091_v27 = vpop.permute.xlu2 %1090 }
 0x53a   :  { %v1132_v29 = vsel %vm265_vm14, %v866_v55, %v1091_v27 }
 0x541   :  { %v1105_v24 = vpop.permute.xlu1 %1104 }
 0x542   :  { %v1135_v36 = vsel %vm577_vm1, %v1131_v11, %v1105_v24 }
 0x543   :  { %v1140_v59 = vsel %vm1138_vm2, %v1135_v36, %v1121_v22 }
 0x544   :  { %1600 = vmatmul.msk.f32.gmra.mxu2 %vm78_vm0, %v1140_v59 }
 0x549   :  { %v1107_v26 = vpop.permute.xlu1 %1106 }
 0x54a   :  { %v1136_v52 = vsel %vm577_vm1, %v1132_v29, %v1107_v26  ;;  %v1672_v29 = vld [vmem:[%s2537_s6] ss:$0 sm:$0xff] }
 0x558   :  { %v1123_v3 = vpop.permute.xlu2 %1122 }
 0x559   :  { %v1141_v35 = vsel %vm1138_vm2, %v1136_v52, %v1123_v3 }
 0x55a   :  { %1601 = vmatmul.msk.f32.gmra.mxu2 %vm78_vm0, %v1141_v35  ;;  %v1673_v35 = vld [vmem:[%s2538_s7] ss:$0 sm:$0xff] }
 0x560   :  { %v1109_v49 = vpop.permute.xlu2 %1108 }
 0x568   :  { %v1093_v25 = vpop.permute.xlu1 %1092 }
 0x569   :  { %v1133_v30 = vsel %vm265_vm14, %v869_v60, %v1093_v25 }
 0x56a   :  { %v1137_v23 = vsel %vm577_vm1, %v1133_v30, %v1109_v49  ;;  %vm1477_vm1 = vcmask 523264  }
 0x578   :  { %v1125_v57 = vpop.permute.xlu0 %1124 }
 0x579   :  { %v1142_v37 = vsel %vm1138_vm2, %v1137_v23, %v1125_v57 }
 0x57a   :  { %1602 = vmatmul.msk.f32.gmra.mxu2 %vm78_vm0, %v1142_v37 }
 0x5b6   :  { %v1180_v15 = vpop.f32.mrf.mxu2 }
 0x5b7   :  { %v1181_v7 = vadd.f32 %v1671_v2, %v1180_v15 }
 0x5b9   :  { %v1192_v43 = vadd.f32 %v1181_v7, %v2003_v18 }
 0x5bb   :  { %v1198_v33 = vsel %vm78_vm0, %v1192_v43, 0.0 }
 0x5bc   :  { %1199 = vadd.xlane.f32.xlu1 %v1198_v33 }
 0x5c7   :  { %v1183_v32 = vpop.f32.mrf.mxu2 }
 0x5c8   :  { %v1184_v39 = vadd.f32 %v1671_v2, %v1183_v32 }
 0x5ca   :  { %v1193_v45 = vadd.f32 %v1184_v39, %v2015_v31 }
 0x5cc   :  { %v1201_v38 = vsel %vm78_vm0, %v1193_v45, 0.0 }
 0x5cd   :  { %1202 = vadd.xlane.f32.xlu2 %v1201_v38 }
 0x5dd   :  { %v1186_v42 = vpop.f32.mrf.mxu2 }
 0x5de   :  { %v1187_v44 = vadd.f32 %v1671_v2, %v1186_v42 }
 0x5e0   :  { %v1194_v58 = vadd.f32 %v1187_v44, %v2005_v20 }
 0x5e2   :  { %v1204_v61 = vsel %vm78_vm0, %v1194_v58, 0.0 }
 0x5e3   :  { %1205 = vadd.xlane.f32.xlu0 %v1204_v61 }
 0x5fd   :  { %v1189_v1 = vpop.f32.mrf.mxu2 }
 0x5fe   :  { %v1190_v47 = vadd.f32 %v1671_v2, %v1189_v1 }
 0x600   :  { %v1195_v18 = vadd.f32 %v1190_v47, %v2013_v28 }
 0x602   :  { %v1207_v51 = vsel %vm78_vm0, %v1195_v18, 0.0 }
 0x603   :  { %1208 = vadd.xlane.f32.xlu1 %v1207_v51 }
 0x62f   :  { %v1200_v50 = vpop.xlane.xlu1 %1199 }
 0x630   :  { %v1210_v31 = vmul.f32 %v1200_v50, %v1956_v14 }
 0x632   :  { %v1214_v54 = vsub.f32 %v1192_v43, %v1210_v31 }
 0x634   :  { %v1218_v12 = vmul.f32 %v1214_v54, %v1214_v54 }
 0x636   :  { %v1222_v48 = vsel %vm78_vm0, %v1218_v12, 0.0 }
 0x637   :  { %1223 = vadd.xlane.f32.xlu2 %v1222_v48 }
 0x640   :  { %v1203_v63 = vpop.xlane.xlu2 %1202 }
 0x641   :  { %v1211_v20 = vmul.f32 %v1203_v63, %v1956_v14 }
 0x643   :  { %v1215_v55 = vsub.f32 %v1193_v45, %v1211_v20 }
 0x645   :  { %v1219_v56 = vmul.f32 %v1215_v55, %v1215_v55 }
 0x647   :  { %v1225_v60 = vsel %vm78_vm0, %v1219_v56, 0.0 }
 0x648   :  { %1226 = vadd.xlane.f32.xlu0 %v1225_v60 }
 0x656   :  { %v1206_v28 = vpop.xlane.xlu0 %1205 }
 0x657   :  { %v1212_v0 = vmul.f32 %v1206_v28, %v1956_v14 }
 0x659   :  { %v2410_v53 = vsub.f32 %v1194_v58, %v1212_v0 }
 0x65b   :  { %v1220_v62 = vmul.f32 %v2410_v53, %v2410_v53 }
 0x65d   :  { %v1228_v4 = vsel %vm78_vm0, %v1220_v62, 0.0 }
 0x65e   :  { %1229 = vadd.xlane.f32.xlu1 %v1228_v4 }
 0x676   :  { %v1209_v5 = vpop.xlane.xlu1 %1208 }
 0x677   :  { %v1213_v46 = vmul.f32 %v1209_v5, %v1956_v14 }
 0x679   :  { %v2416_v6 = vsub.f32 %v1195_v18, %v1213_v46 }
 0x67b   :  { %v1221_v8 = vmul.f32 %v2416_v6, %v2416_v6 }
 0x67d   :  { %v1231_v9 = vsel %vm78_vm0, %v1221_v8, 0.0 }
 0x67e   :  { %1232 = vadd.xlane.f32.xlu2 %v1231_v9  ;;  %v1472_v9 = vld [vmem:[%s2541_s10 + $0x38] sm:$0xff] }
 0x67f   :  { %1498 = vmatpush.msra.mxu0 %v1472_v9 }
 0x681   :  { %1499 = vmatpush.msra.mxu0 %v1471_v34 }
 0x683   :  { %1500 = vmatpush.msra.mxu0 %v1470_v17 }
 0x6aa   :  { %v1224_v19 = vpop.xlane.xlu2 %1223 }
 0x6ab   :  { %v1234_v21 = vmul.f32 %v1224_v19, %v1956_v14  ;;  %v1469_v19 = vld [vmem:[%s2541_s10 + $0x20] sm:$0xff] }
 0x6ac   :  { %1501 = vmatpush.msra.mxu0 %v1469_v19 }
 0x6ad   :  { %v1238_v10 = vadd.f32 1e-05, %v1234_v21  ;;  %v1468_v21 = vld [vmem:[%s2541_s10 + $0x18] sm:$0xff] }
 0x6ae   :  { %1502 = vmatpush.msra.mxu0 %v1468_v21 }
 0x6af   :  { %1750 = vrsqrt.f32 %v1238_v10  ;;  %vm1248_vm4 = vweird.f32 %v1238_v10 }
 0x6b5   :  { %v1751_v40 = vpop.eup %1750 }
 0x6b6   :  { %v1243_v41 = vmul.f32 %v1751_v40, %v1238_v10  ;;  %vm1249_vm3 = vweird.f32 %v1751_v40  ;;  %v1467_v10 = vld [vmem:[%s2541_s10 + $0x10] sm:$0xff] }
 0x6b7   :  { %vm1250_vm5 = vmor %vm1248_vm4, %vm1249_vm3  ;;  %1503 = vmatpush.msra.mxu0 %v1467_v10 }
 0x6b8   :  { %v1244_v11 = vmul.f32 %v1751_v40, %v1243_v41 }
 0x6ba   :  { %v1245_v24 = vmul.f32 0.5, %v1244_v11  ;;  %v1466_v11 = vld [vmem:[%s2541_s10 + $0x8] sm:$0xff] }
 0x6bb   :  { %v1227_v22 = vpop.xlane.xlu0 %1226  ;;  %1504 = vmatpush.msra.mxu0 %v1466_v11 }
 0x6bc   :  { %v1246_v36 = vsub.f32 1.5, %v1245_v24  ;;  %v1235_v59 = vmul.f32 %v1227_v22, %v1956_v14 }
 0x6be   :  { %v1247_v27 = vmul.f32 %v1751_v40, %v1246_v36  ;;  %v1239_v26 = vadd.f32 1e-05, %v1235_v59  ;;  %v1465_v36 = vld [vmem:[%s2541_s10] sm:$0xff] }
 0x6bf   :  { %1505 = vmatpush.msra.mxu0 %v1465_v36 }
 0x6c0   :  { %v1251_v52 = vsel %vm1250_vm5, %v1751_v40, %v1247_v27  ;;  %1752 = vrsqrt.f32 %v1239_v26  ;;  %vm1258_vm7 = vweird.f32 %v1239_v26 }
 0x6c1   :  { %v1282_v3 = vmul.f32 %v1251_v52, %v1214_v54 }
 0x6c3   :  { %v1289_v25 = vmul.f32 %v1672_v29, %v1282_v3 }
 0x6c5   :  { %v2429_v30 = vadd.f32 %v1673_v35, %v1289_v25 }
 0x6c6   :  { %v1753_v49 = vpop.eup %1752 }
 0x6c7   :  { %v1253_v57 = vmul.f32 %v1753_v49, %v1239_v26  ;;  %1603 = vmatmul.msk.f32.vlgmr.msra.gmra.mxu3 %vm78_vm0, %v2429_v30  ;;  %vm1259_vm6 = vweird.f32 %v1753_v49 }
 0x6c8   :  { %vm1260_vm8 = vmor %vm1258_vm7, %vm1259_vm6 }
 0x6c9   :  { %v1254_v23 = vmul.f32 %v1753_v49, %v1253_v57 }
 0x6cb   :  { %v1255_v37 = vmul.f32 0.5, %v1254_v23 }
 0x6cd   :  { %v1256_v2 = vsub.f32 1.5, %v1255_v37 }
 0x6cf   :  { %v1257_v15 = vmul.f32 %v1753_v49, %v1256_v2 }
 0x6d1   :  { %v1261_v7 = vsel %vm1260_vm8, %v1753_v49, %v1257_v15  ;;  %v1230_v43 = vpop.xlane.xlu1 %1229 }
 0x6d2   :  { %v1236_v33 = vmul.f32 %v1230_v43, %v1956_v14  ;;  %v1283_v32 = vmul.f32 %v1261_v7, %v1215_v55 }
 0x6d4   :  { %v1240_v39 = vadd.f32 1e-05, %v1236_v33  ;;  %v1290_v45 = vmul.f32 %v1672_v29, %v1283_v32 }
 0x6d6   :  { %1754 = vrsqrt.f32 %v1240_v39  ;;  %v2434_v38 = vadd.f32 %v1673_v35, %v1290_v45  ;;  %vm1268_vm10 = vweird.f32 %v1240_v39 }
 0x6d8   :  { %1604 = vmatmul.msk.f32.gmra.mxu3 %vm78_vm0, %v2434_v38 }
 0x6dc   :  { %v1755_v42 = vpop.eup %1754 }
 0x6dd   :  { %v1263_v44 = vmul.f32 %v1755_v42, %v1240_v39  ;;  %vm1269_vm9 = vweird.f32 %v1755_v42 }
 0x6de   :  { %vm1270_vm11 = vmor %vm1268_vm10, %vm1269_vm9 }
 0x6df   :  { %v1264_v58 = vmul.f32 %v1755_v42, %v1263_v44 }
 0x6e1   :  { %v1265_v61 = vmul.f32 0.5, %v1264_v58 }
 0x6e3   :  { %v1266_v1 = vsub.f32 1.5, %v1265_v61 }
 0x6e5   :  { %v1267_v47 = vmul.f32 %v1755_v42, %v1266_v1 }
 0x6e7   :  { %v1271_v18 = vsel %vm1270_vm11, %v1755_v42, %v1267_v47 }
 0x6e8   :  { %v1284_v51 = vmul.f32 %v1271_v18, %v2410_v53 }
 0x6ea   :  { %v1291_v50 = vmul.f32 %v1672_v29, %v1284_v51 }
 0x6ec   :  { %v2439_v31 = vadd.f32 %v1673_v35, %v1291_v50 }
 0x6ee   :  { %1605 = vmatmul.msk.f32.gmra.mxu3 %vm78_vm0, %v2439_v31 }
 0x6f1   :  { %v1233_v54 = vpop.xlane.xlu2 %1232 }
 0x6f2   :  { %v1237_v12 = vmul.f32 %v1233_v54, %v1956_v14  ;;  %v2452_v14 = vld [vmem:[%s2540_s9] ss:$0 sm:$0xff] }
 0x6f4   :  { %v1241_v48 = vadd.f32 1e-05, %v1237_v12 }
 0x6f6   :  { %1756 = vrsqrt.f32 %v1241_v48  ;;  %vm1278_vm13 = vweird.f32 %v1241_v48 }
 0x6fc   :  { %v1757_v63 = vpop.eup %1756 }
 0x6fd   :  { %v1273_v20 = vmul.f32 %v1757_v63, %v1241_v48  ;;  %vm1279_vm12 = vweird.f32 %v1757_v63 }
 0x6fe   :  { %vm1280_vm14 = vmor %vm1278_vm13, %vm1279_vm12 }
 0x6ff   :  { %v1274_v55 = vmul.f32 %v1757_v63, %v1273_v20  ;;  %v1864_v20 = vmov -1.0  }
 0x701   :  { %v1275_v56 = vmul.f32 0.5, %v1274_v55 }
 0x703   :  { %v1276_v60 = vsub.f32 1.5, %v1275_v56 }
 0x705   :  { %v1277_v28 = vmul.f32 %v1757_v63, %v1276_v60 }
 0x707   :  { %v1281_v0 = vsel %vm1280_vm14, %v1757_v63, %v1277_v28 }
 0x708   :  { %v1285_v53 = vmul.f32 %v1281_v0, %v2416_v6 }
 0x70a   :  { %v1292_v62 = vmul.f32 %v1672_v29, %v1285_v53 }
 0x70c   :  { %v2445_v4 = vadd.f32 %v1673_v35, %v1292_v62 }
 0x70e   :  { %1606 = vmatmul.msk.f32.gmra.mxu3 %vm78_vm0, %v2445_v4 }
 0x74a   :  { %v1337_v5 = vpop.f32.mrf.mxu3 }
 0x74b   :  { %v2455_v46 = vadd.f32 %v2452_v14, %v1337_v5 }
 0x74d   :  { %v2458_v8 = vmul.f32 0.70710677, %v2455_v46  ;;  %v1349_v53 = vmul.f32 0.5, %v2455_v46 }
 0x74f   :  { %v1365_v6 = vand.u32 2147483647, %v2458_v8  ;;  %vm1357_vm15 = vcmp.ge.f32.partialorder %v2458_v8, 0.0 }
 0x750   :  { %v1361_v55 = vsel %vm1357_vm15, 1.0, %v1864_v20 }
 0x751   :  { %v1369_v13 = vmul.f32 0.3275911, %v1365_v6  ;;  %v1429_v52 = vsub.f32 0.0, %v1365_v6 }
 0x753   :  { %v1373_v16 = vadd.f32 1.0, %v1369_v13  ;;  %v1433_v57 = vmul.f32 %v1429_v52, %v1365_v6 }
 0x755   :  { %1758 = vrcp.f32 %v1373_v16  ;;  %v1437_v2 = vmul.f32 1.442695, %v1433_v57 }
 0x75b   :  { %v1759_v40 = vpop.eup %1758  ;;  %v1340_v41 = vpop.f32.mrf.mxu3 }
 0x75c   :  { %v1381_v24 = vmul.f32 %v1759_v40, %v1373_v16  ;;  %v2483_v22 = vadd.f32 %v2452_v14, %v1340_v41 }
 0x75e   :  { %v1385_v59 = vsub.f32 2.0, %v1381_v24  ;;  %v2489_v27 = vmul.f32 0.70710677, %v2483_v22 }
 0x760   :  { %v1389_v26 = vmul.f32 %v1759_v40, %v1385_v59  ;;  %v1366_v29 = vand.u32 2147483647, %v2489_v27  ;;  %vm1358_vm2 = vcmp.ge.f32.partialorder %v2489_v27, 0.0 }
 0x761   :  { %v1362_v24 = vsel %vm1358_vm2, 1.0, %v1864_v20 }
 0x762   :  { %v1393_v3 = vmul.f32 1.0614054, %v1389_v26  ;;  %v1370_v35 = vmul.f32 0.3275911, %v1366_v29  ;;  %v1430_v61 = vsub.f32 0.0, %v1366_v29 }
 0x764   :  { %v1397_v25 = vadd.f32 -1.4531521, %v1393_v3  ;;  %v1374_v49 = vadd.f32 1.0, %v1370_v35  ;;  %v1434_v48 = vmul.f32 %v1430_v61, %v1366_v29  ;;  %v1350_v29 = vmul.f32 0.5, %v2483_v22 }
 0x766   :  { %v1401_v23 = vmul.f32 %v1397_v25, %v1389_v26  ;;  %1760 = vrcp.f32 %v1374_v49  ;;  %v1439_v5 = vmul.f32 1.442695, %v1434_v48 }
 0x767   :  { %1762 = vpow2.f32 %v1437_v2 }
 0x768   :  { %v1405_v37 = vadd.f32 1.4214138, %v1401_v23 }
 0x76a   :  { %v1409_v15 = vmul.f32 %v1405_v37, %v1389_v26 }
 0x76c   :  { %v1761_v7 = vpop.eup %1760  ;;  %v1413_v43 = vadd.f32 -0.28449672, %v1409_v15 }
 0x76d   :  { %v1382_v33 = vmul.f32 %v1761_v7, %v1374_v49  ;;  %v1763_v47 = vpop.eup %1762 }
 0x76e   :  { %v1417_v32 = vmul.f32 %v1413_v43, %v1389_v26 }
 0x76f   :  { %v1386_v39 = vsub.f32 2.0, %v1382_v33 }
 0x770   :  { %v1421_v45 = vadd.f32 0.2548296, %v1417_v32 }
 0x771   :  { %v1390_v42 = vmul.f32 %v1761_v7, %v1386_v39  ;;  %v1343_v44 = vpop.f32.mrf.mxu3 }
 0x772   :  { %v1425_v58 = vmul.f32 %v1421_v45, %v1389_v26  ;;  %v2493_v1 = vadd.f32 %v2452_v14, %v1343_v44 }
 0x773   :  { %v1394_v18 = vmul.f32 1.0614054, %v1390_v42 }
 0x774   :  { %v1445_v51 = vmul.f32 %v1763_v47, %v1425_v58  ;;  %v2497_v50 = vmul.f32 0.70710677, %v2493_v1 }
 0x775   :  { %v1398_v54 = vadd.f32 -1.4531521, %v1394_v18 }
 0x776   :  { %v1449_v12 = vsub.f32 1.0, %v1445_v51  ;;  %v1367_v63 = vand.u32 2147483647, %v2497_v50  ;;  %vm1359_vm3 = vcmp.ge.f32.partialorder %v2497_v50, 0.0 }
 0x777   :  { %v1402_v56 = vmul.f32 %v1398_v54, %v1390_v42  ;;  %v1363_v61 = vsel %vm1359_vm3, 1.0, %v1864_v20 }
 0x778   :  { %v1453_v60 = vmul.f32 %v1449_v12, %v1361_v55  ;;  %v1371_v28 = vmul.f32 0.3275911, %v1367_v63  ;;  %v1431_v36 = vsub.f32 0.0, %v1367_v63 }
 0x779   :  { %v1406_v0 = vadd.f32 1.4214138, %v1402_v56 }
 0x77a   :  { %v1457_v62 = vadd.f32 1.0, %v1453_v60  ;;  %v1375_v8 = vadd.f32 1.0, %v1371_v28  ;;  %v1435_v35 = vmul.f32 %v1431_v36, %v1367_v63 }
 0x77b   :  { %v1410_v6 = vmul.f32 %v1406_v0, %v1390_v42 }
 0x77c   :  { %v1461_v9 = vmul.f32 %v1457_v62, %v1349_v53  ;;  %1764 = vrcp.f32 %v1375_v8  ;;  %v1441_v27 = vmul.f32 1.442695, %v1435_v35 }
 0x77d   :  { %v1414_v13 = vadd.f32 -0.28449672, %v1410_v6  ;;  %1766 = vpow2.f32 %v1439_v5 }
 0x77e   :  { %1607 = vmatmul.msk.f32.vlgmr.msra.gmra.mxu0 %vm1477_vm1, %v1461_v9  ;;  %1768 = vpow2.f32 %v1441_v27 }
 0x77f   :  { %v1418_v34 = vmul.f32 %v1414_v13, %v1390_v42 }
 0x781   :  { %v1422_v16 = vadd.f32 0.2548296, %v1418_v34 }
 0x782   :  { %v1765_v17 = vpop.eup %1764 }
 0x783   :  { %v1383_v19 = vmul.f32 %v1765_v17, %v1375_v8  ;;  %v1426_v21 = vmul.f32 %v1422_v16, %v1390_v42  ;;  %v1767_v10 = vpop.eup %1766 }
 0x784   :  { %v1769_v45 = vpop.eup %1768 }
 0x785   :  { %v1387_v46 = vsub.f32 2.0, %v1383_v19  ;;  %v1446_v40 = vmul.f32 %v1767_v10, %v1426_v21 }
 0x787   :  { %v1391_v41 = vmul.f32 %v1765_v17, %v1387_v46  ;;  %v1450_v11 = vsub.f32 1.0, %v1446_v40  ;;  %v1675_v46 = vld [vmem:[%s2542_s11] ss:$0 sm:$0xff]  ;;  %s1865_s11 = smov [#allocation7]  }
 0x788   :  { %s1531_s23 = sshll.u32 %s1865_s11, 4  ;;  %s1532_s23 = int_to_ptr.vmem [resolvable:$true] %s1531_s23 }
 0x789   :  { %v1454_v59 = vmul.f32 %v1450_v11, %v1362_v24  ;;  %v1395_v26 = vmul.f32 1.0614054, %v1391_v41 }
 0x78b   :  { %v1458_v52 = vadd.f32 1.0, %v1454_v59  ;;  %v1399_v3 = vadd.f32 -1.4531521, %v1395_v26 }
 0x78d   :  { %v1462_v25 = vmul.f32 %v1458_v52, %v1350_v29  ;;  %v1403_v49 = vmul.f32 %v1399_v3, %v1391_v41 }
 0x78f   :  { %1608 = vmatmul.msk.f32.gmra.mxu0 %vm1477_vm1, %v1462_v25  ;;  %v1407_v57 = vadd.f32 1.4214138, %v1403_v49 }
 0x791   :  { %v1346_v23 = vpop.f32.mrf.mxu3  ;;  %v1411_v37 = vmul.f32 %v1407_v57, %v1391_v41 }
 0x792   :  { %v1347_v2 = vadd.f32 %v2452_v14, %v1346_v23  ;;  %v1351_v14 = vmul.f32 0.5, %v2493_v1 }
 0x793   :  { %v1415_v15 = vadd.f32 -0.28449672, %v1411_v37 }
 0x794   :  { %v1356_v7 = vmul.f32 0.70710677, %v1347_v2  ;;  %v1352_v19 = vmul.f32 0.5, %v1347_v2 }
 0x795   :  { %v1419_v43 = vmul.f32 %v1415_v15, %v1391_v41 }
 0x796   :  { %v1368_v33 = vand.u32 2147483647, %v1356_v7  ;;  %vm1360_vm4 = vcmp.ge.f32.partialorder %v1356_v7, 0.0 }
 0x797   :  { %v1423_v32 = vadd.f32 0.2548296, %v1419_v43  ;;  %v1364_v16 = vsel %vm1360_vm4, 1.0, %v1864_v20 }
 0x798   :  { %v1372_v22 = vmul.f32 0.3275911, %v1368_v33  ;;  %v1432_v55 = vsub.f32 0.0, %v1368_v33 }
 0x799   :  { %v1427_v39 = vmul.f32 %v1423_v32, %v1391_v41 }
 0x79a   :  { %v1376_v42 = vadd.f32 1.0, %v1372_v22  ;;  %v1436_v50 = vmul.f32 %v1432_v55, %v1368_v33 }
 0x79b   :  { %v1447_v44 = vmul.f32 %v1769_v45, %v1427_v39 }
 0x79c   :  { %1770 = vrcp.f32 %v1376_v42  ;;  %v1443_v53 = vmul.f32 1.442695, %v1436_v50 }
 0x79d   :  { %v1451_v58 = vsub.f32 1.0, %v1447_v44 }
 0x79e   :  { %1772 = vpow2.f32 %v1443_v53 }
 0x79f   :  { %v1455_v47 = vmul.f32 %v1451_v58, %v1363_v61 }
 0x7a1   :  { %v1459_v18 = vadd.f32 1.0, %v1455_v47 }
 0x7a2   :  { %v1771_v51 = vpop.eup %1770 }
 0x7a3   :  { %v1384_v54 = vmul.f32 %v1771_v51, %v1376_v42  ;;  %v1463_v12 = vmul.f32 %v1459_v18, %v1351_v14 }
 0x7a4   :  { %v1773_v9 = vpop.eup %1772 }
 0x7a5   :  { %v1388_v48 = vsub.f32 2.0, %v1384_v54  ;;  %1609 = vmatmul.msk.f32.gmra.mxu0 %vm1477_vm1, %v1463_v12 }
 0x7a7   :  { %v1392_v63 = vmul.f32 %v1771_v51, %v1388_v48 }
 0x7a9   :  { %v1396_v56 = vmul.f32 1.0614054, %v1392_v63 }
 0x7ab   :  { %v1400_v60 = vadd.f32 -1.4531521, %v1396_v56 }
 0x7ad   :  { %v1404_v28 = vmul.f32 %v1400_v60, %v1392_v63 }
 0x7af   :  { %v1408_v0 = vadd.f32 1.4214138, %v1404_v28 }
 0x7b1   :  { %v1412_v62 = vmul.f32 %v1408_v0, %v1392_v63 }
 0x7b3   :  { %v1416_v5 = vadd.f32 -0.28449672, %v1412_v62 }
 0x7b5   :  { %v1420_v8 = vmul.f32 %v1416_v5, %v1392_v63 }
 0x7b7   :  { %v1424_v1 = vadd.f32 0.2548296, %v1420_v8 }
 0x7b9   :  { %v1428_v6 = vmul.f32 %v1424_v1, %v1392_v63 }
 0x7bb   :  { %v1448_v13 = vmul.f32 %v1773_v9, %v1428_v6 }
 0x7bd   :  { %v1452_v34 = vsub.f32 1.0, %v1448_v13 }
 0x7bf   :  { %v1456_v17 = vmul.f32 %v1452_v34, %v1364_v16 }
 0x7c1   :  { %v1460_v21 = vadd.f32 1.0, %v1456_v17 }
 0x7c3   :  { %v1464_v10 = vmul.f32 %v1460_v21, %v1352_v19 }
 0x7c5   :  { %1610 = vmatmul.msk.f32.gmra.mxu0 %vm1477_vm1, %v1464_v10 }
 0x7fb   :  { %v1507_v40 = vpop.f32.mrf.mxu0 }
 0x7fc   :  { %v1508_v41 = vadd.f32 %v1675_v46, %v1507_v40 }
 0x7fe   :  { %v1519_v11 = vadd.f32 %v1508_v41, %v2429_v30 }
 0x800   :  { %1523 = vst.msk [vmem:[#allocation7] sm:$0xff] %vm78_vm0, %v1519_v11 }
 0x80c   :  { %v1510_v24 = vpop.f32.mrf.mxu0 }
 0x80d   :  { %v1511_v36 = vadd.f32 %v1675_v46, %v1510_v24 }
 0x80f   :  { %v1520_v20 = vadd.f32 %v1511_v36, %v2434_v38 }
 0x811   :  { %1524 = vst.msk [vmem:[#allocation7 + $0x8] sm:$0xff] %vm78_vm0, %v1520_v20 }
 0x822   :  { %v1513_v59 = vpop.f32.mrf.mxu0 }
 0x823   :  { %v1514_v26 = vadd.f32 %v1675_v46, %v1513_v59 }
 0x825   :  { %v1521_v29 = vadd.f32 %v1514_v26, %v2439_v31 }
 0x827   :  { %1525 = vst.msk [vmem:[#allocation7 + $0x10] sm:$0xff] %vm78_vm0, %v1521_v29 }
 0x842   :  { %v1516_v52 = vpop.f32.mrf.mxu0 }
 0x843   :  { %v1517_v30 = vadd.f32 %v1675_v46, %v1516_v52 }
 0x845   :  { %v1522_v3 = vadd.f32 %v1517_v30, %v2445_v4 }
 0x847   :  { %1526 = vst.msk [vmem:[#allocation7 + $0x18] sm:$0xff] %vm78_vm0, %v1522_v3 }
 0x848   :  { %1539 = dma.vmem_to_hbm [thread:$0]  %s1532_s23, 512, %s1534_s5, [#allocation4], %s1854_s13, %s1854_s13, %s1855_s14  }
 0x849   :  { %1850 = dma.done.wait [#allocation4], 512  }
 0x84a   :  { %1851 = vsyncadd [#allocation4], 4294966784 }
 0x84b   :  { %1544 = vsyncpa [#allocation3], 1 }
 0x84c   :  { %1545 = vsyncpa [#allocation6], 1 }
 0x84d   :  { %1546 = vsyncpa [#allocation4], 1 }

// kernel: tpu_custom_call.1
= control target key start
LH: loop header
LB: loop body
LE: loop exit
PB: predicated region body
PF: predicated region fallthrough
CT: control target
= control target key end

     0   :  { %17 = vsyncpa [#allocation3], 0  ;;  %s2531_s0 = inlined_call_operand.vmem [shape: f32[2,16,32], index: 0, kind: input, shape index: {}]   ;;  %s2532_s1 = inlined_call_operand.hbm [shape: f32[1,32], index: 1, kind: input, shape index: {}]   ;;  %s2533_s2 = inlined_call_operand.vmem [shape: f32[1,32], index: 2, kind: input, shape index: {}]   ;;  %s2534_s3 = inlined_call_operand.vmem [shape: f32[32,96], index: 3, kind: input, shape index: {}]   ;;  %s2535_s4 = inlined_call_operand.vmem [shape: f32[32,32], index: 4, kind: input, shape index: {}]   ;;  %s2536_s5 = inlined_call_operand.vmem [shape: f32[1,32], index: 5, kind: input, shape index: {}]   ;;  %s2537_s6 = inlined_call_operand.vmem [shape: f32[1,32], index: 6, kind: input, shape index: {}]   ;;  %s2538_s7 = inlined_call_operand.vmem [shape: f32[1,32], index: 7, kind: input, shape index: {}]   ;;  %s2539_s8 = inlined_call_operand.hbm [shape: f32[32,64], index: 8, kind: input, shape index: {}]   ;;  %s2540_s9 = inlined_call_operand.vmem [shape: f32[1,64], index: 9, kind: input, shape index: {}]   ;;  %s2541_s10 = inlined_call_operand.vmem [shape: f32[64,32], index: 10, kind: input, shape index: {}]   ;;  %s2542_s11 = inlined_call_operand.vmem [shape: f32[1,32], index: 11, kind: input, shape index: {}]   ;;  %s2543_s12 = inlined_call_operand.hbm [shape: f32[2,16,32], index: 12, kind: output, shape index: {}]  }
   0x1   :  { %18 = vsyncpa [#allocation6], 0 }
   0x2   :  { %19 = vsyncpa [#allocation4], 0  ;;  %s27_s23 = sshll.u32 %s2532_s1, 4  ;;  %s1852_s24 = smov [#allocation2]   ;;  %s28_s23 = int_to_ptr.hbm [resolvable:$true] %s27_s23 }
   0x3   :  { %s29_s25 = sshll.u32 %s1852_s24, 4  ;;  %s49_s28 = sshll.u32 %s2539_s8, 4  ;;  %s30_s25 = int_to_ptr.vmem [resolvable:$true] %s29_s25  ;;  %s50_s28 = int_to_ptr.hbm [resolvable:$true] %s49_s28 }
   0x4   :  { %32 = dma.hbm_to_vmem [thread:$0]  %s28_s23, 16, %s30_s25, [#allocation3]  }
   0x5   :  { %s1853_s29 = smov [#allocation5]   ;;  %s1854_s13 = smov 128  }
   0x6   :  { %s51_s30 = sshll.u32 %s1853_s29, 4  ;;  %s1855_s14 = smov 8   ;;  %s52_s30 = int_to_ptr.vmem [resolvable:$true] %s51_s30 }
   0x7   :  { %57 = dma.hbm_to_vmem [thread:$0]  %s50_s28, 512, %s52_s30, [#allocation6], %s1854_s13, %s1854_s13, %s1855_s14  }
   0x8   :  { %1846 = dma.done.wait [#allocation3], 16  }
   0x9   :  { %1847 = vsyncadd [#allocation3], 4294967280 }
   0xa   :  { %1848 = dma.done.wait [#allocation6], 512  }
   0xb   :  { %1849 = vsyncadd [#allocation6], 4294966784  ;;  %vm78_vm0 = vcmask 261120   ;;  %v74_v0 = vld [vmem:[%s2531_s0 + $0x10] sm:$0xff]  ;;  %v72_v1 = vld [vmem:[%s2531_s0] sm:$0xff]  ;;  %v1856_v8 = vmov 32.0  }
   0xc   :  { %v85_v2 = vsel %vm78_vm0, %v74_v0, 0.0  ;;  %v79_v3 = vsel %vm78_vm0, %v72_v1, 0.0  ;;  %v75_v4 = vld [vmem:[%s2531_s0 + $0x18] sm:$0xff]  ;;  %v73_v5 = vld [vmem:[%s2531_s0 + $0x8] sm:$0xff]  ;;  %1676 = vrcp.f32 %v1856_v8  ;;  %v190_v36 = vld [vmem:[%s2534_s3 + $0x10] sm:$0xff]  ;;  %s1858_s29 = smov 112  }
   0xd   :  { %86 = vadd.xlane.f32.xlu1 %v85_v2  ;;  %80 = vadd.xlane.f32.xlu0 %v79_v3  ;;  %v88_v6 = vsel %vm78_vm0, %v75_v4, 0.0  ;;  %v82_v7 = vsel %vm78_vm0, %v73_v5, 0.0  ;;  %v191_v35 = vld [vmem:[%s2534_s3 + $0x18] sm:$0xff]  ;;  %v189_v37 = vld [vmem:[%s2534_s3 + $0x8] sm:$0xff]  ;;  %v188_v38 = vld [vmem:[%s2534_s3] sm:$0xff]  ;;  %s1859_s30 = smov 96  }
   0xe   :  { %216 = vmatpush.msra.mxu0 %v191_v35  ;;  %1611 = vmatpush.msra.mxu1 %v191_v35  ;;  %v1669_v3 = vld [vmem:[#allocation2] ss:$0 sm:$0xff]  ;;  %s1860_s1 = smov 104   ;;  %vm265_vm14 = vcmask 64512   ;;  %s1861_s15 = smov 64  }
   0xf   :  { %s1862_s8 = smov 24   ;;  %s1863_s16 = smov 16  }
  0x10   :  { %217 = vmatpush.msra.mxu0 %v190_v36  ;;  %1612 = vmatpush.msra.mxu1 %v190_v36 }
  0x12   :  { %v1677_v9 = vpop.eup %1676  ;;  %218 = vmatpush.msra.mxu0 %v189_v37  ;;  %1613 = vmatpush.msra.mxu1 %v189_v37 }
  0x13   :  { %v92_v10 = vmul.f32 32.0, %v1677_v9  ;;  %vm96_vm1 = vweird.f32 %v1677_v9 }
  0x14   :  { %219 = vmatpush.msra.mxu0 %v188_v38  ;;  %1614 = vmatpush.msra.mxu1 %v188_v38 }
  0x15   :  { %89 = vadd.xlane.f32.xlu1 %v88_v6  ;;  %83 = vadd.xlane.f32.xlu0 %v82_v7  ;;  %v93_v11 = vsub.f32 1.0, %v92_v10 }
  0x17   :  { %v94_v12 = vmul.f32 %v1677_v9, %v93_v11 }
  0x19   :  { %v95_v13 = vadd.f32 %v1677_v9, %v94_v12 }
  0x1b   :  { %v1956_v14 = vsel %vm96_vm1, %v1677_v9, %v95_v13  ;;  %v1670_v9 = vld [vmem:[%s2533_s2] ss:$0 sm:$0xff]  ;;  %s1857_s2 = smov 120   ;;  %vm577_vm1 = vcmask 130048  }
  0x80   :  { %v87_v15 = vpop.xlane.xlu1 %86  ;;  %v81_v16 = vpop.xlane.xlu0 %80 }
  0x81   :  { %v100_v17 = vmul.f32 %v1956_v14, %v87_v15  ;;  %v98_v18 = vmul.f32 %v1956_v14, %v81_v16 }
  0x83   :  { %v1960_v19 = vsub.f32 %v74_v0, %v100_v17  ;;  %v1962_v20 = vsub.f32 %v72_v1, %v98_v18 }
  0x85   :  { %v108_v21 = vmul.f32 %v1960_v19, %v1960_v19  ;;  %v106_v22 = vmul.f32 %v1962_v20, %v1962_v20 }
  0x87   :  { %v116_v23 = vsel %vm78_vm0, %v108_v21, 0.0  ;;  %v110_v24 = vsel %vm78_vm0, %v106_v22, 0.0 }
  0x88   :  { %v90_v25 = vpop.xlane.xlu1 %89  ;;  %117 = vadd.xlane.f32.xlu0 %v116_v23  ;;  %111 = vadd.xlane.f32.xlu2 %v110_v24  ;;  %v84_v26 = vpop.xlane.xlu0 %83 }
  0x89   :  { %v101_v27 = vmul.f32 %v1956_v14, %v90_v25  ;;  %v99_v28 = vmul.f32 %v1956_v14, %v84_v26 }
  0x8b   :  { %v1972_v29 = vsub.f32 %v75_v4, %v101_v27  ;;  %v1974_v30 = vsub.f32 %v73_v5, %v99_v28 }
  0x8d   :  { %v109_v31 = vmul.f32 %v1972_v29, %v1972_v29  ;;  %v107_v32 = vmul.f32 %v1974_v30, %v1974_v30 }
  0x8f   :  { %v119_v33 = vsel %vm78_vm0, %v109_v31, 0.0  ;;  %v113_v34 = vsel %vm78_vm0, %v107_v32, 0.0 }
  0x90   :  { %120 = vadd.xlane.f32.xlu1 %v119_v33  ;;  %114 = vadd.xlane.f32.xlu2 %v113_v34 }
  0xfb   :  { %v112_v39 = vpop.xlane.xlu2 %111  ;;  %v118_v40 = vpop.xlane.xlu0 %117 }
  0xfc   :  { %v122_v41 = vmul.f32 %v112_v39, %v1956_v14  ;;  %v124_v42 = vmul.f32 %v118_v40, %v1956_v14 }
  0xfe   :  { %v126_v43 = vadd.f32 1e-05, %v122_v41  ;;  %v128_v44 = vadd.f32 1e-05, %v124_v42 }
 0x100   :  { %1678 = vrsqrt.f32 %v126_v43  ;;  %vm156_vm2 = vweird.f32 %v128_v44  ;;  %vm136_vm5 = vweird.f32 %v126_v43 }
 0x101   :  { %1680 = vrsqrt.f32 %v128_v44 }
 0x103   :  { %v121_v45 = vpop.xlane.xlu1 %120  ;;  %v115_v46 = vpop.xlane.xlu2 %114 }
 0x104   :  { %v125_v47 = vmul.f32 %v121_v45, %v1956_v14  ;;  %v123_v48 = vmul.f32 %v115_v46, %v1956_v14 }
 0x106   :  { %v1679_v49 = vpop.eup %1678  ;;  %v129_v50 = vadd.f32 1e-05, %v125_v47  ;;  %v127_v51 = vadd.f32 1e-05, %v123_v48 }
 0x107   :  { %v1681_v52 = vpop.eup %1680  ;;  %v131_v53 = vmul.f32 %v1679_v49, %v126_v43  ;;  %vm137_vm4 = vweird.f32 %v1679_v49 }
 0x108   :  { %v151_v54 = vmul.f32 %v1681_v52, %v128_v44  ;;  %1682 = vrsqrt.f32 %v129_v50  ;;  %vm157_vm3 = vweird.f32 %v1681_v52  ;;  %vm138_vm7 = vmor %vm136_vm5, %vm137_vm4  ;;  %vm166_vm8 = vweird.f32 %v129_v50 }
 0x109   :  { %v132_v55 = vmul.f32 %v1679_v49, %v131_v53  ;;  %1684 = vrsqrt.f32 %v127_v51  ;;  %vm158_vm6 = vmor %vm156_vm2, %vm157_vm3  ;;  %vm146_vm12 = vweird.f32 %v127_v51  ;;  %vm1138_vm2 = vcmask 195584  }
 0x10a   :  { %v152_v56 = vmul.f32 %v1681_v52, %v151_v54 }
 0x10b   :  { %v133_v57 = vmul.f32 0.5, %v132_v55 }
 0x10c   :  { %v153_v58 = vmul.f32 0.5, %v152_v56 }
 0x10d   :  { %v134_v59 = vsub.f32 1.5, %v133_v57 }
 0x10e   :  { %v1683_v60 = vpop.eup %1682  ;;  %v154_v61 = vsub.f32 1.5, %v153_v58 }
 0x10f   :  { %v1685_v62 = vpop.eup %1684  ;;  %v135_v63 = vmul.f32 %v1679_v49, %v134_v59  ;;  %v161_v0 = vmul.f32 %v1683_v60, %v129_v50  ;;  %vm167_vm9 = vweird.f32 %v1683_v60 }
 0x110   :  { %v155_v1 = vmul.f32 %v1681_v52, %v154_v61  ;;  %v141_v2 = vmul.f32 %v1685_v62, %v127_v51  ;;  %vm168_vm10 = vmor %vm166_vm8, %vm167_vm9  ;;  %vm147_vm11 = vweird.f32 %v1685_v62 }
 0x111   :  { %v139_v4 = vsel %vm138_vm7, %v1679_v49, %v135_v63  ;;  %v162_v5 = vmul.f32 %v1683_v60, %v161_v0  ;;  %vm148_vm13 = vmor %vm146_vm12, %vm147_vm11 }
 0x112   :  { %v159_v6 = vsel %vm158_vm6, %v1681_v52, %v155_v1  ;;  %v142_v7 = vmul.f32 %v1685_v62, %v141_v2  ;;  %v170_v8 = vmul.f32 %v139_v4, %v1962_v20  ;;  %v558_v2 = vlaneseq }
 0x113   :  { %v163_v10 = vmul.f32 0.5, %v162_v5  ;;  %v172_v11 = vmul.f32 %v159_v6, %v1960_v19 }
 0x114   :  { %v143_v12 = vmul.f32 0.5, %v142_v7  ;;  %v177_v13 = vmul.f32 %v1669_v3, %v170_v8  ;;  %v2127_v7 = vand.u32 127, %v558_v2 }
 0x115   :  { %v164_v15 = vsub.f32 1.5, %v163_v10  ;;  %v179_v16 = vmul.f32 %v1669_v3, %v172_v11 }
 0x116   :  { %v144_v17 = vsub.f32 1.5, %v143_v12  ;;  %v2003_v18 = vadd.f32 %v1670_v9, %v177_v13  ;;  %vm560_vm15 = vcmp.lt.s32.totalorder %v2127_v7, 9 }
 0x117   :  { %v165_v21 = vmul.f32 %v1683_v60, %v164_v15  ;;  %v2005_v20 = vadd.f32 %v1670_v9, %v179_v16 }
 0x118   :  { %v145_v22 = vmul.f32 %v1685_v62, %v144_v17  ;;  %1547 = vmatmul.msk.f32.vlgmr.msra.gmra.mxu0 %vm78_vm0, %v2003_v18 }
 0x119   :  { %v169_v23 = vsel %vm168_vm10, %v1683_v60, %v165_v21  ;;  %1549 = vmatmul.msk.f32.vlgmr.msra.gmra.mxu1 %vm78_vm0, %v2005_v20 }
 0x11a   :  { %v149_v19 = vsel %vm148_vm13, %v1685_v62, %v145_v22  ;;  %v173_v24 = vmul.f32 %v169_v23, %v1972_v29 }
 0x11b   :  { %v171_v25 = vmul.f32 %v149_v19, %v1974_v30 }
 0x11c   :  { %v180_v26 = vmul.f32 %v1669_v3, %v173_v24 }
 0x11d   :  { %v178_v27 = vmul.f32 %v1669_v3, %v171_v25 }
 0x11e   :  { %v2013_v28 = vadd.f32 %v1670_v9, %v180_v26 }
 0x11f   :  { %v2015_v31 = vadd.f32 %v1670_v9, %v178_v27 }
 0x121   :  { %1548 = vmatmul.msk.f32.gmra.mxu0 %vm78_vm0, %v2015_v31  ;;  %1550 = vmatmul.msk.f32.gmra.mxu1 %vm78_vm0, %v2013_v28 }
 0x195   :  { %v2021_v32 = vpop.f32.mrf.mxu0 }
 0x196   :  { %237 = vrot.lane.b32.xlu0 %v2021_v32, %s1857_s2  ;;  %v2024_v29 = vpop.f32.mrf.mxu1 }
 0x19e   :  { %v224_v30 = vpop.f32.mrf.mxu0  ;;  %241 = vrot.lane.b32.xlu0 %v2024_v29, %s1857_s2  ;;  %v2027_v33 = vpop.f32.mrf.mxu1 }
 0x19f   :  { %247 = vrot.lane.b32.xlu1 %v224_v30, %s1858_s29  ;;  %239 = vrot.lane.b32.xlu2 %v224_v30, %s1857_s2  ;;  %v1629_v51 = vpack.i.bf16 %v2021_v32, %v224_v30 }
 0x1a6   :  { %243 = vrot.lane.b32.xlu0 %v2027_v33, %s1857_s2 }
 0x1a7   :  { %245 = vrot.lane.b32.xlu2 %v2021_v32, %s1858_s29  ;;  %249 = vrot.lane.b32.xlu1 %v2024_v29, %s1858_s29 }
 0x1ae   :  { %299 = vrot.lane.b32.xlu0 %v2027_v33, %s1859_s30 }
 0x1af   :  { %253 = vrot.lane.b32.xlu2 %v2021_v32, %s1860_s1  ;;  %251 = vrot.lane.b32.xlu1 %v2027_v33, %s1858_s29 }
 0x1b6   :  { %263 = vrot.lane.b32.xlu0 %v224_v30, %s1859_s30 }
 0x1b7   :  { %255 = vrot.lane.b32.xlu2 %v224_v30, %s1860_s1  ;;  %259 = vrot.lane.b32.xlu1 %v2027_v33, %s1860_s1 }
 0x1be   :  { %261 = vrot.lane.b32.xlu0 %v2021_v32, %s1859_s30 }
 0x1bf   :  { %297 = vrot.lane.b32.xlu2 %v2024_v29, %s1859_s30  ;;  %257 = vrot.lane.b32.xlu1 %v2024_v29, %s1860_s1 }
 0x1f9   :  { %v240_v34 = vpop.permute.xlu2 %239 }
 0x1fa   :  { %334 = vrot.lane.b32.xlu2 %v240_v34, %s1859_s30 }
 0x201   :  { %v2044_v35 = vpop.permute.xlu2 %245 }
 0x202   :  { %402 = vrot.lane.b32.xlu0 %v2044_v35, %s1859_s30 }
 0x208   :  { %v238_v36 = vpop.permute.xlu0 %237 }
 0x209   :  { %332 = vrot.lane.b32.xlu2 %v238_v36, %s1859_s30  ;;  %v2049_v37 = vpop.permute.xlu2 %253  ;;  %v1634_v48 = vpack.i.bf16 %v238_v36, %v240_v34 }
 0x210   :  { %v2051_v38 = vpop.permute.xlu0 %241 }
 0x211   :  { %v2053_v39 = vpop.permute.xlu1 %247  ;;  %v2059_v41 = vpop.permute.xlu2 %255 }
 0x212   :  { %404 = vrot.lane.b32.xlu1 %v2053_v39, %s1859_s30 }
 0x218   :  { %v2057_v40 = vpop.permute.xlu0 %243 }
 0x219   :  { %v2061_v42 = vpop.permute.xlu1 %249  ;;  %369 = vrot.lane.b32.xlu2 %v2057_v40, %s1859_s30  ;;  %v298_v45 = vpop.permute.xlu2 %297 }
 0x21a   :  { %474 = vrot.lane.b32.xlu1 %v2059_v41, %s1859_s30 }
 0x220   :  { %v300_v43 = vpop.permute.xlu0 %299 }
 0x221   :  { %v2067_v44 = vpop.permute.xlu1 %251  ;;  %367 = vrot.lane.b32.xlu2 %v2051_v38, %s1859_s30  ;;  %1555 = vmatpush.xpose.msk.msra.mxu2 %vm265_vm14, %v300_v43 }
 0x222   :  { %472 = vrot.lane.b32.xlu1 %v2049_v37, %s1859_s30  ;;  %439 = vrot.lane.b32.xlu0 %v2067_v44, %s1859_s30 }
 0x225   :  { %1556 = vmatpush.xpose.msk.msra.mxu2 %vm265_vm14, %v298_v45 }
 0x228   :  { %1557 = vmatmul.msk.f32.vlgmr.msra.gmra.mxu2 %vm265_vm14, %v2024_v29  ;;  %v264_v46 = vpop.permute.xlu0 %263 }
 0x229   :  { %v2079_v47 = vpop.permute.xlu1 %259  ;;  %1551 = vmatpush.xpose.msk.msrb.mxu1 %vm265_vm14, %v264_v46 }
 0x22a   :  { %437 = vrot.lane.b32.xlu0 %v2061_v42, %s1859_s30  ;;  %509 = vrot.lane.b32.xlu2 %v2079_v47, %s1859_s30 }
 0x230   :  { %1558 = vmatmul.msk.f32.gmra.mxu2 %vm265_vm14, %v2027_v33  ;;  %v262_v49 = vpop.permute.xlu0 %261 }
 0x231   :  { %v2088_v50 = vpop.permute.xlu1 %257  ;;  %1552 = vmatpush.xpose.msk.msrb.mxu1 %vm265_vm14, %v262_v49 }
 0x232   :  { %507 = vrot.lane.b32.xlu1 %v2088_v50, %s1859_s30  ;;  %1635 = vrot.lane.b32.xlu0 %v1634_v48, %s1861_s15 }
 0x233   :  { %1630 = vrot.lane.b32.xlu2 %v1629_v51, %s1861_s15 }
 0x234   :  { %1553 = vmatmul.msk.f32.vlgmr.msrb.gmra.mxu1 %vm265_vm14, %v2021_v32 }
 0x23c   :  { %1554 = vmatmul.msk.f32.gmra.mxu1 %vm265_vm14, %v224_v30 }
 0x254   :  { %v335_v52 = vpop.permute.xlu2 %334 }
 0x255   :  { %1559 = vmatpush.xpose.msk.msra.mxu3 %vm265_vm14, %v335_v52 }
 0x263   :  { %v333_v53 = vpop.permute.xlu2 %332 }
 0x264   :  { %1560 = vmatpush.xpose.msk.msra.mxu3 %vm265_vm14, %v333_v53 }
 0x267   :  { %1561 = vmatmul.msk.f32.vlgmr.msra.gmra.mxu3 %vm265_vm14, %v238_v36 }
 0x26f   :  { %1562 = vmatmul.msk.f32.gmra.mxu3 %vm265_vm14, %v240_v34 }
 0x273   :  { %v370_v54 = vpop.permute.xlu2 %369 }
 0x274   :  { %1563 = vmatpush.xpose.msk.msra.mxu1 %vm265_vm14, %v370_v54  ;;  %v403_v58 = vpop.permute.xlu0 %402 }
 0x27b   :  { %v368_v55 = vpop.permute.xlu2 %367 }
 0x27c   :  { %1564 = vmatpush.xpose.msk.msra.mxu1 %vm265_vm14, %v368_v55 }
 0x27f   :  { %1565 = vmatmul.msk.f32.vlgmr.msra.gmra.mxu1 %vm265_vm14, %v2051_v38 }
 0x284   :  { %v405_v56 = vpop.permute.xlu1 %404  ;;  %v510_v57 = vpop.permute.xlu2 %509 }
 0x285   :  { %1567 = vmatpush.xpose.msk.msrb.mxu2 %vm265_vm14, %v405_v56  ;;  %1579 = vmatpush.xpose.msk.msrb.mxu1 %vm265_vm14, %v510_v57 }
 0x287   :  { %1566 = vmatmul.msk.f32.gmra.mxu1 %vm265_vm14, %v2057_v40 }
 0x289   :  { %1568 = vmatpush.xpose.msk.msrb.mxu2 %vm265_vm14, %v403_v58 }
 0x28c   :  { %v475_v59 = vpop.permute.xlu1 %474  ;;  %1569 = vmatmul.msk.f32.vlgmr.msrb.gmra.mxu2 %vm265_vm14, %v2044_v35 }
 0x28d   :  { %v1631_v60 = vpop.permute.xlu2 %1630  ;;  %1575 = vmatpush.xpose.msk.msrb.mxu0 %vm265_vm14, %v475_v59 }
 0x28e   :  { %v1632_v61 = vunpack.i.l.bf16 %v1631_v60  ;;  %v1633_v62 = vunpack.i.h.bf16 %v1631_v60 }
 0x290   :  { %828 = vmatpush.msra.mxu2 %v1632_v61 }
 0x292   :  { %829 = vmatpush.msra.mxu2 %v1633_v62 }
 0x294   :  { %v473_v63 = vpop.permute.xlu1 %472  ;;  %1570 = vmatmul.msk.f32.gmra.mxu2 %vm265_vm14, %v2053_v39  ;;  %v440_v0 = vpop.permute.xlu0 %439 }
 0x295   :  { %1571 = vmatpush.xpose.msk.msrb.mxu3 %vm265_vm14, %v440_v0  ;;  %1576 = vmatpush.xpose.msk.msrb.mxu0 %vm265_vm14, %v473_v63 }
 0x298   :  { %1577 = vmatmul.msk.f32.vlgmr.msrb.gmra.mxu0 %vm265_vm14, %v2049_v37 }
 0x29c   :  { %v438_v1 = vpop.permute.xlu0 %437 }
 0x29d   :  { %1572 = vmatpush.xpose.msk.msrb.mxu3 %vm265_vm14, %v438_v1 }
 0x2a0   :  { %1573 = vmatmul.msk.f32.vlgmr.msrb.gmra.mxu3 %vm265_vm14, %v2061_v42  ;;  %1578 = vmatmul.msk.f32.gmra.mxu0 %vm265_vm14, %v2059_v41 }
 0x2a4   :  { %v508_v3 = vpop.permute.xlu1 %507  ;;  %v1636_v4 = vpop.permute.xlu0 %1635 }
 0x2a5   :  { %v1637_v5 = vunpack.i.l.bf16 %v1636_v4  ;;  %1580 = vmatpush.xpose.msk.msrb.mxu1 %vm265_vm14, %v508_v3  ;;  %v1638_v6 = vunpack.i.h.bf16 %v1636_v4 }
 0x2a7   :  { %898 = vmatpush.msra.mxu0 %v1637_v5 }
 0x2a8   :  { %1574 = vmatmul.msk.f32.gmra.mxu3 %vm265_vm14, %v2067_v44  ;;  %1581 = vmatmul.msk.f32.vlgmr.msrb.gmra.mxu1 %vm265_vm14, %v2088_v50 }
 0x2a9   :  { %899 = vmatpush.msra.mxu0 %v1638_v6 }
 0x2ab   :  { %v326_v8 = vpop.f32.mrf.mxu2 }
 0x2ac   :  { %v544_v9 = vmul.f32 0.35355338, %v326_v8 }
 0x2ae   :  { %v563_v10 = vsel %vm560_vm15, %v544_v9, -1e+30 }
 0x2af   :  { %v584_v11 = vsel %vm577_vm1, %v563_v10, -inf }
 0x2b0   :  { %1582 = vmatmul.msk.f32.gmra.mxu1 %vm265_vm14, %v2079_v47  ;;  %585 = vmax.xlane.f32.xlu2 %v584_v11 }
 0x2b1   :  { %v291_v12 = vpop.f32.mrf.mxu1 }
 0x2b2   :  { %v542_v13 = vmul.f32 0.35355338, %v291_v12 }
 0x2b3   :  { %v329_v22 = vpop.f32.mrf.mxu2 }
 0x2b4   :  { %v561_v15 = vsel %vm560_vm15, %v542_v13, -1e+30  ;;  %v545_v24 = vmul.f32 0.35355338, %v329_v22 }
 0x2b5   :  { %v578_v16 = vsel %vm577_vm1, %v561_v15, -inf }
 0x2b6   :  { %579 = vmax.xlane.f32.xlu0 %v578_v16  ;;  %v2147_v25 = vsel %vm560_vm15, %v545_v24, -1e+30 }
 0x2b7   :  { %v587_v26 = vsel %vm577_vm1, %v2147_v25, -inf }
 0x2b9   :  { %v294_v17 = vpop.f32.mrf.mxu1 }
 0x2ba   :  { %v543_v21 = vmul.f32 0.35355338, %v294_v17 }
 0x2bc   :  { %v562_v23 = vsel %vm560_vm15, %v543_v21, -1e+30 }
 0x2bd   :  { %v581_v19 = vsel %vm577_vm1, %v562_v23, -inf }
 0x2be   :  { %582 = vmax.xlane.f32.xlu1 %v581_v19 }
 0x2c6   :  { %588 = vmax.xlane.f32.xlu1 %v587_v26 }
 0x2ea   :  { %v361_v27 = vpop.f32.mrf.mxu3 }
 0x2eb   :  { %v546_v60 = vmul.f32 0.35355338, %v361_v27 }
 0x2ed   :  { %v2183_v1 = vsel %vm560_vm15, %v546_v60, -1e+30 }
 0x2ee   :  { %v590_v4 = vsel %vm577_vm1, %v2183_v1, -inf }
 0x2f2   :  { %v364_v34 = vpop.f32.mrf.mxu3 }
 0x2f3   :  { %v547_v45 = vmul.f32 0.35355338, %v364_v34 }
 0x2f5   :  { %v2159_v46 = vsel %vm560_vm15, %v547_v45, -1e+30 }
 0x2f6   :  { %v593_v48 = vsel %vm577_vm1, %v2159_v46, -inf }
 0x2fc   :  { %v396_v32 = vpop.f32.mrf.mxu1 }
 0x2fd   :  { %v548_v30 = vmul.f32 0.35355338, %v396_v32 }
 0x2ff   :  { %v2153_v36 = vsel %vm560_vm15, %v548_v30, -1e+30 }
 0x300   :  { %v596_v43 = vsel %vm577_vm1, %v2153_v36, -inf }
 0x301   :  { %597 = vmax.xlane.f32.xlu0 %v596_v43 }
 0x304   :  { %v399_v2 = vpop.f32.mrf.mxu1 }
 0x305   :  { %v549_v6 = vmul.f32 0.35355338, %v399_v2 }
 0x307   :  { %v2195_v12 = vsel %vm560_vm15, %v549_v6, -1e+30  ;;  %v1649_v6 = vpack.i.bf16 %v2059_v41, %v2057_v40 }
 0x308   :  { %v599_v13 = vsel %vm577_vm1, %v2195_v12, -inf }
 0x309   :  { %594 = vmax.xlane.f32.xlu0 %v593_v48 }
 0x30f   :  { %v431_v49 = vpop.f32.mrf.mxu2 }
 0x310   :  { %v550_v51 = vmul.f32 0.35355338, %v431_v49 }
 0x312   :  { %v2165_v52 = vsel %vm560_vm15, %v550_v51, -1e+30 }
 0x313   :  { %v602_v53 = vsel %vm577_vm1, %v2165_v52, -inf }
 0x314   :  { %603 = vmax.xlane.f32.xlu1 %v602_v53 }
 0x315   :  { %v501_v54 = vpop.f32.mrf.mxu0 }
 0x316   :  { %v554_v55 = vmul.f32 0.35355338, %v501_v54 }
 0x317   :  { %v434_v56 = vpop.f32.mrf.mxu2 }
 0x318   :  { %v551_v57 = vmul.f32 0.35355338, %v434_v56  ;;  %v2171_v58 = vsel %vm560_vm15, %v554_v55, -1e+30 }
 0x319   :  { %v614_v59 = vsel %vm577_vm1, %v2171_v58, -inf }
 0x31a   :  { %615 = vmax.xlane.f32.xlu2 %v614_v59  ;;  %v2177_v61 = vsel %vm560_vm15, %v551_v57, -1e+30 }
 0x31b   :  { %v605_v62 = vsel %vm577_vm1, %v2177_v61, -inf }
 0x31c   :  { %606 = vmax.xlane.f32.xlu0 %v605_v62 }
 0x31d   :  { %v504_v63 = vpop.f32.mrf.mxu0 }
 0x31e   :  { %v555_v0 = vmul.f32 0.35355338, %v504_v63 }
 0x320   :  { %v2187_v3 = vsel %vm560_vm15, %v555_v0, -1e+30 }
 0x321   :  { %v617_v5 = vsel %vm577_vm1, %v2187_v3, -inf }
 0x322   :  { %591 = vmax.xlane.f32.xlu2 %v590_v4  ;;  %618 = vmax.xlane.f32.xlu1 %v617_v5 }
 0x323   :  { %v586_v8 = vpop.xlane.xlu2 %585 }
 0x324   :  { %v628_v9 = vsub.f32 %v563_v10, %v586_v8 }
 0x325   :  { %v536_v26 = vpop.f32.mrf.mxu1 }
 0x326   :  { %v646_v11 = vmul.f32 1.442695, %v628_v9  ;;  %v556_v34 = vmul.f32 0.35355338, %v536_v26 }
 0x328   :  { %1686 = vpow2.f32 %v646_v11  ;;  %v2210_v48 = vsel %vm560_vm15, %v556_v34, -1e+30 }
 0x329   :  { %v580_v16 = vpop.xlane.xlu0 %579  ;;  %v620_v53 = vsel %vm577_vm1, %v2210_v48, -inf }
 0x32a   :  { %600 = vmax.xlane.f32.xlu2 %v599_v13  ;;  %v626_v17 = vsub.f32 %v561_v15, %v580_v16  ;;  %v466_v15 = vpop.f32.mrf.mxu3 }
 0x32b   :  { %v552_v54 = vmul.f32 0.35355338, %v466_v15 }
 0x32c   :  { %v642_v21 = vmul.f32 1.442695, %v626_v17 }
 0x32d   :  { %v539_v56 = vpop.f32.mrf.mxu1 }
 0x32e   :  { %v2199_v22 = vpop.eup %1686  ;;  %1688 = vpow2.f32 %v642_v21  ;;  %v557_v63 = vmul.f32 0.35355338, %v539_v56 }
 0x32f   :  { %v680_v19 = vsel %vm577_vm1, %v2199_v22, 0.0 }
 0x330   :  { %681 = vadd.xlane.f32.xlu0 %v680_v19  ;;  %v2230_v0 = vsel %vm560_vm15, %v557_v63, -1e+30 }
 0x331   :  { %v583_v10 = vpop.xlane.xlu1 %582  ;;  %v623_v4 = vsel %vm577_vm1, %v2230_v0, -inf }
 0x332   :  { %v627_v24 = vsub.f32 %v562_v23, %v583_v10  ;;  %v469_v55 = vpop.f32.mrf.mxu3 }
 0x333   :  { %v553_v62 = vmul.f32 0.35355338, %v469_v55 }
 0x334   :  { %v2203_v27 = vpop.eup %1688  ;;  %v644_v32 = vmul.f32 1.442695, %v627_v24 }
 0x335   :  { %v674_v30 = vsel %vm577_vm1, %v2203_v27, 0.0  ;;  %v2234_v2 = vsel %vm560_vm15, %v553_v62, -1e+30 }
 0x336   :  { %1690 = vpow2.f32 %v644_v32  ;;  %675 = vadd.xlane.f32.xlu2 %v674_v30  ;;  %v611_v5 = vsel %vm577_vm1, %v2234_v2, -inf }
 0x339   :  { %v589_v43 = vpop.xlane.xlu1 %588 }
 0x33a   :  { %v629_v45 = vsub.f32 %v2147_v25, %v589_v43  ;;  %v2220_v25 = vsel %vm560_vm15, %v552_v54, -1e+30 }
 0x33b   :  { %v608_v60 = vsel %vm577_vm1, %v2220_v25, -inf }
 0x33c   :  { %v2212_v49 = vpop.eup %1690  ;;  %v648_v23 = vmul.f32 1.442695, %v629_v45 }
 0x33d   :  { %v677_v51 = vsel %vm577_vm1, %v2212_v49, 0.0 }
 0x33e   :  { %1692 = vpow2.f32 %v648_v23  ;;  %678 = vadd.xlane.f32.xlu0 %v677_v51  ;;  %621 = vmax.xlane.f32.xlu2 %v620_v53 }
 0x344   :  { %v2222_v57 = vpop.eup %1692 }
 0x345   :  { %v683_v59 = vsel %vm577_vm1, %v2222_v57, 0.0 }
 0x346   :  { %684 = vadd.xlane.f32.xlu1 %v683_v59  ;;  %609 = vmax.xlane.f32.xlu0 %v608_v60 }
 0x34e   :  { %624 = vmax.xlane.f32.xlu0 %v623_v4  ;;  %612 = vmax.xlane.f32.xlu1 %v611_v5 }
 0x362   :  { %1650 = vrot.lane.b32.xlu0 %v1649_v6, %s1861_s15 }
 0x374   :  { %v598_v8 = vpop.xlane.xlu0 %597 }
 0x375   :  { %v632_v9 = vsub.f32 %v2153_v36, %v598_v8 }
 0x377   :  { %v654_v11 = vmul.f32 1.442695, %v632_v9 }
 0x379   :  { %1694 = vpow2.f32 %v654_v11 }
 0x37c   :  { %v595_v16 = vpop.xlane.xlu0 %594 }
 0x37d   :  { %v631_v51 = vsub.f32 %v2159_v46, %v595_v16 }
 0x37f   :  { %v2244_v7 = vpop.eup %1694  ;;  %v652_v56 = vmul.f32 1.442695, %v631_v51 }
 0x380   :  { %v692_v13 = vsel %vm577_vm1, %v2244_v7, 0.0 }
 0x381   :  { %693 = vadd.xlane.f32.xlu1 %v692_v13 }
 0x387   :  { %v604_v17 = vpop.xlane.xlu1 %603 }
 0x388   :  { %v634_v15 = vsub.f32 %v2165_v52, %v604_v17  ;;  %v1644_v17 = vpack.i.bf16 %v2044_v35, %v2024_v29 }
 0x38d   :  { %v616_v21 = vpop.xlane.xlu2 %615 }
 0x38e   :  { %v638_v19 = vsub.f32 %v2171_v58, %v616_v21 }
 0x38f   :  { %v607_v10 = vpop.xlane.xlu0 %606 }
 0x390   :  { %v666_v40 = vmul.f32 1.442695, %v638_v19  ;;  %v635_v41 = vsub.f32 %v2177_v61, %v607_v10 }
 0x392   :  { %1696 = vpow2.f32 %v666_v40  ;;  %v660_v24 = vmul.f32 1.442695, %v635_v41 }
 0x394   :  { %1698 = vpow2.f32 %v660_v24 }
 0x395   :  { %v592_v36 = vpop.xlane.xlu2 %591  ;;  %v619_v26 = vpop.xlane.xlu1 %618 }
 0x396   :  { %v630_v32 = vsub.f32 %v2183_v1, %v592_v36  ;;  %v639_v30 = vsub.f32 %v2187_v3, %v619_v26  ;;  %v658_v1 = vmul.f32 1.442695, %v634_v15  ;;  %v1654_v26 = vpack.i.bf16 %v2049_v37, %v2051_v38 }
 0x397   :  { %v1659_v37 = vpack.i.bf16 %v2061_v42, %v2067_v44 }
 0x398   :  { %v2252_v34 = vpop.eup %1696  ;;  %v650_v43 = vmul.f32 1.442695, %v630_v32  ;;  %v668_v45 = vmul.f32 1.442695, %v639_v30 }
 0x399   :  { %v710_v58 = vsel %vm577_vm1, %v2252_v34, 0.0 }
 0x39a   :  { %v2257_v23 = vpop.eup %1698  ;;  %1700 = vpow2.f32 %v650_v43  ;;  %711 = vadd.xlane.f32.xlu2 %v710_v58  ;;  %v1664_v43 = vpack.i.bf16 %v2088_v50, %v2079_v47 }
 0x39b   :  { %1702 = vpow2.f32 %v668_v45  ;;  %v701_v61 = vsel %vm577_vm1, %v2257_v23, 0.0 }
 0x39c   :  { %702 = vadd.xlane.f32.xlu0 %v701_v61  ;;  %1704 = vpow2.f32 %v658_v1 }
 0x39d   :  { %v601_v53 = vpop.xlane.xlu2 %600  ;;  %1706 = vpow2.f32 %v652_v56 }
 0x39e   :  { %v633_v42 = vsub.f32 %v2195_v12, %v601_v53 }
 0x3a0   :  { %v2261_v3 = vpop.eup %1700  ;;  %v656_v44 = vmul.f32 1.442695, %v633_v42 }
 0x3a1   :  { %v2264_v52 = vpop.eup %1702  ;;  %v686_v54 = vsel %vm577_vm1, %v2261_v3, 0.0 }
 0x3a2   :  { %v713_v55 = vsel %vm577_vm1, %v2264_v52, 0.0  ;;  %687 = vadd.xlane.f32.xlu1 %v686_v54  ;;  %v2270_v59 = vpop.eup %1704 }
 0x3a3   :  { %714 = vadd.xlane.f32.xlu2 %v713_v55  ;;  %v2272_v60 = vpop.xlane.xlu0 %681  ;;  %v698_v46 = vsel %vm577_vm1, %v2270_v59, 0.0  ;;  %v2276_v63 = vpop.eup %1706 }
 0x3a4   :  { %v689_v6 = vsel %vm577_vm1, %v2276_v63, 0.0 }
 0x3a9   :  { %v676_v62 = vpop.xlane.xlu2 %675 }
 0x3aa   :  { %1708 = vrcp.f32 %v676_v62  ;;  %699 = vadd.xlane.f32.xlu1 %v698_v46 }
 0x3b0   :  { %v1709_v4 = vpop.eup %1708 }
 0x3b1   :  { %v738_v5 = vmul.f32 %v1709_v4, %v676_v62  ;;  %v679_v8 = vpop.xlane.xlu0 %678  ;;  %v622_v58 = vpop.xlane.xlu2 %621 }
 0x3b2   :  { %690 = vadd.xlane.f32.xlu1 %v689_v6  ;;  %1710 = vrcp.f32 %v679_v8  ;;  %v640_v61 = vsub.f32 %v2210_v48, %v622_v58 }
 0x3b3   :  { %v754_v9 = vsub.f32 2.0, %v738_v5 }
 0x3b4   :  { %v670_v1 = vmul.f32 1.442695, %v640_v61 }
 0x3b5   :  { %v770_v11 = vmul.f32 %v1709_v4, %v754_v9 }
 0x3b7   :  { %v786_v13 = vmul.f32 %v2203_v27, %v770_v11 }
 0x3b8   :  { %v1711_v16 = vpop.eup %1710 }
 0x3b9   :  { %v739_v21 = vmul.f32 %v1711_v16, %v679_v8  ;;  %v2283_v19 = vpop.xlane.xlu1 %684  ;;  %1583 = vmatmul.msk.f32.vlgmr.msra.gmra.mxu2 %vm577_vm1, %v786_v13  ;;  %v610_v10 = vpop.xlane.xlu0 %609 }
 0x3ba   :  { %v636_v40 = vsub.f32 %v2220_v25, %v610_v10 }
 0x3bb   :  { %v755_v41 = vsub.f32 2.0, %v739_v21  ;;  %1645 = vrot.lane.b32.xlu2 %v1644_v17, %s1861_s15 }
 0x3bc   :  { %v662_v24 = vmul.f32 1.442695, %v636_v40 }
 0x3bd   :  { %v771_v36 = vmul.f32 %v1711_v16, %v755_v41 }
 0x3be   :  { %1712 = vpow2.f32 %v662_v24 }
 0x3bf   :  { %v787_v27 = vmul.f32 %v2212_v49, %v771_v36  ;;  %v1639_v49 = vpack.i.bf16 %v2053_v39, %v2027_v33 }
 0x3c1   :  { %v613_v29 = vpop.xlane.xlu1 %612  ;;  %1584 = vmatmul.msk.f32.gmra.mxu2 %vm577_vm1, %v787_v27 }
 0x3c2   :  { %v637_v35 = vsub.f32 %v2234_v2, %v613_v29  ;;  %v625_v2 = vpop.xlane.xlu0 %624 }
 0x3c3   :  { %1655 = vrot.lane.b32.xlu2 %v1654_v26, %s1861_s15  ;;  %v641_v47 = vsub.f32 %v2230_v0, %v625_v2 }
 0x3c4   :  { %v2294_v32 = vpop.eup %1712  ;;  %v664_v25 = vmul.f32 1.442695, %v637_v35 }
 0x3c5   :  { %v704_v30 = vsel %vm577_vm1, %v2294_v32, 0.0  ;;  %v672_v54 = vmul.f32 1.442695, %v641_v47 }
 0x3c6   :  { %1714 = vpow2.f32 %v664_v25  ;;  %705 = vadd.xlane.f32.xlu0 %v704_v30 }
 0x3c7   :  { %1716 = vpow2.f32 %v656_v44 }
 0x3c8   :  { %1718 = vpow2.f32 %v670_v1 }
 0x3c9   :  { %1720 = vpow2.f32 %v672_v54 }
 0x3cb   :  { %1660 = vrot.lane.b32.xlu2 %v1659_v37, %s1861_s15  ;;  %1640 = vrot.lane.b32.xlu1 %v1639_v49, %s1861_s15 }
 0x3cc   :  { %v2304_v38 = vpop.eup %1714 }
 0x3cd   :  { %v707_v15 = vsel %vm577_vm1, %v2304_v38, 0.0  ;;  %v2313_v51 = vpop.eup %1716 }
 0x3ce   :  { %708 = vadd.xlane.f32.xlu0 %v707_v15  ;;  %v695_v50 = vsel %vm577_vm1, %v2313_v51, 0.0  ;;  %v2318_v55 = vpop.eup %1718 }
 0x3cf   :  { %v716_v12 = vsel %vm577_vm1, %v2318_v55, 0.0  ;;  %v2322_v53 = vpop.eup %1720 }
 0x3d0   :  { %v719_v48 = vsel %vm577_vm1, %v2322_v53, 0.0 }
 0x3d3   :  { %1665 = vrot.lane.b32.xlu2 %v1664_v43, %s1861_s15 }
 0x3d4   :  { %v1651_v33 = vpop.permute.xlu0 %1650 }
 0x3d5   :  { %v1653_v39 = vunpack.i.h.bf16 %v1651_v33  ;;  %v1652_v45 = vunpack.i.l.bf16 %v1651_v33 }
 0x3d7   :  { %933 = vmatpush.msra.mxu1 %v1652_v45  ;;  %1038 = vmatpush.msrb.mxu0 %v1653_v39 }
 0x3f4   :  { %v694_v56 = vpop.xlane.xlu1 %693 }
 0x3f5   :  { %696 = vadd.xlane.f32.xlu1 %v695_v50  ;;  %1722 = vrcp.f32 %v694_v56 }
 0x3fb   :  { %v1723_v4 = vpop.eup %1722 }
 0x3fc   :  { %v744_v6 = vmul.f32 %v1723_v4, %v694_v56 }
 0x3fd   :  { %717 = vadd.xlane.f32.xlu1 %v716_v12 }
 0x3fe   :  { %v760_v16 = vsub.f32 2.0, %v744_v6 }
 0x400   :  { %v776_v10 = vmul.f32 %v1723_v4, %v760_v16 }
 0x402   :  { %v792_v27 = vmul.f32 %v2244_v7, %v776_v10 }
 0x405   :  { %720 = vadd.xlane.f32.xlu1 %v719_v48 }
 0x40d   :  { %v712_v0 = vpop.xlane.xlu2 %711 }
 0x40f   :  { %v703_v37 = vpop.xlane.xlu0 %702 }
 0x415   :  { %v688_v62 = vpop.xlane.xlu1 %687 }
 0x416   :  { %v715_v46 = vpop.xlane.xlu2 %714  ;;  %1724 = vrcp.f32 %v688_v62 }
 0x417   :  { %1726 = vrcp.f32 %v712_v0 }
 0x41c   :  { %v1725_v5 = vpop.eup %1724 }
 0x41d   :  { %v742_v8 = vmul.f32 %v1725_v5, %v688_v62  ;;  %v700_v9 = vpop.xlane.xlu1 %699  ;;  %v1727_v26 = vpop.eup %1726 }
 0x41e   :  { %v2326_v11 = vpop.permute.xlu2 %1645  ;;  %v750_v25 = vmul.f32 %v1727_v26, %v712_v0 }
 0x41f   :  { %v758_v13 = vsub.f32 2.0, %v742_v8 }
 0x420   :  { %v766_v7 = vsub.f32 2.0, %v750_v25 }
 0x421   :  { %v774_v17 = vmul.f32 %v1725_v5, %v758_v13  ;;  %v1647_v13 = vunpack.i.l.bf16 %v2326_v11 }
 0x422   :  { %v782_v44 = vmul.f32 %v1727_v26, %v766_v7 }
 0x423   :  { %v790_v21 = vmul.f32 %v2261_v3, %v774_v17 }
 0x425   :  { %v691_v40 = vpop.xlane.xlu1 %690  ;;  %1587 = vmatmul.msk.f32.vlgmr.msra.gmra.mxu0 %vm577_vm1, %v790_v21 }
 0x426   :  { %v1656_v41 = vpop.permute.xlu2 %1655  ;;  %1728 = vrcp.f32 %v691_v40 }
 0x427   :  { %v1658_v24 = vunpack.i.h.bf16 %v1656_v41  ;;  %v1657_v36 = vunpack.i.l.bf16 %v1656_v41  ;;  %1730 = vrcp.f32 %v2272_v60 }
 0x428   :  { %1732 = vrcp.f32 %v700_v9 }
 0x429   :  { %934 = vmatpush.msra.mxu1 %v1657_v36  ;;  %1039 = vmatpush.msrb.mxu0 %v1658_v24  ;;  %1734 = vrcp.f32 %v715_v46 }
 0x42a   :  { %1589 = vmatmul.msk.f32.vlgmr.msra.gmra.mxu1 %vm577_vm1, %v792_v27  ;;  %1736 = vrcp.f32 %v2283_v19 }
 0x42b   :  { %1738 = vrcp.f32 %v703_v37 }
 0x42c   :  { %v1729_v29 = vpop.eup %1728 }
 0x42d   :  { %v743_v3 = vmul.f32 %v1729_v29, %v691_v40  ;;  %v1731_v49 = vpop.eup %1730 }
 0x42e   :  { %v1661_v35 = vpop.permute.xlu2 %1660  ;;  %v1733_v15 = vpop.eup %1732  ;;  %v740_v39 = vmul.f32 %v1731_v49, %v2272_v60 }
 0x42f   :  { %v759_v30 = vsub.f32 2.0, %v743_v3  ;;  %v1735_v33 = vpop.eup %1734  ;;  %v746_v45 = vmul.f32 %v1733_v15, %v700_v9  ;;  %v1648_v9 = vunpack.i.h.bf16 %v2326_v11  ;;  %v1662_v40 = vunpack.i.l.bf16 %v1661_v35 }
 0x430   :  { %v751_v58 = vmul.f32 %v1735_v33, %v715_v46  ;;  %v1737_v1 = vpop.eup %1736  ;;  %v756_v47 = vsub.f32 2.0, %v740_v39  ;;  %v1663_v11 = vunpack.i.h.bf16 %v1661_v35 }
 0x431   :  { %v775_v2 = vmul.f32 %v1729_v29, %v759_v30  ;;  %v762_v50 = vsub.f32 2.0, %v746_v45  ;;  %v1739_v48 = vpop.eup %1738  ;;  %v741_v0 = vmul.f32 %v1737_v1, %v2283_v19 }
 0x432   :  { %v767_v56 = vsub.f32 2.0, %v751_v58  ;;  %v772_v60 = vmul.f32 %v1731_v49, %v756_v47  ;;  %v747_v62 = vmul.f32 %v1739_v48, %v703_v37 }
 0x433   :  { %v791_v43 = vmul.f32 %v2276_v63, %v775_v2  ;;  %v798_v63 = vmul.f32 %v2252_v34, %v782_v44  ;;  %v778_v4 = vmul.f32 %v1733_v15, %v762_v50  ;;  %v757_v16 = vsub.f32 2.0, %v741_v0 }
 0x434   :  { %v783_v8 = vmul.f32 %v1735_v33, %v767_v56  ;;  %v788_v34 = vmul.f32 %v2199_v22, %v772_v60  ;;  %v763_v17 = vsub.f32 2.0, %v747_v62 }
 0x435   :  { %1588 = vmatmul.msk.f32.gmra.mxu0 %vm577_vm1, %v791_v43  ;;  %v794_v19 = vmul.f32 %v2270_v59, %v778_v4  ;;  %v773_v24 = vmul.f32 %v1737_v1, %v757_v16 }
 0x436   :  { %v1666_v42 = vpop.permute.xlu2 %1665  ;;  %v799_v41 = vmul.f32 %v2264_v52, %v783_v8  ;;  %v779_v22 = vmul.f32 %v1739_v48, %v763_v17  ;;  %v1146_v8 = vld [vmem:[%s2535_s4 + $0x18] sm:$0xff] }
 0x437   :  { %v1667_v61 = vunpack.i.l.bf16 %v1666_v42  ;;  %v1668_v54 = vunpack.i.h.bf16 %v1666_v42  ;;  %v789_v27 = vmul.f32 %v2222_v57, %v773_v24 }
 0x438   :  { %v795_v26 = vmul.f32 %v2257_v23, %v779_v22 }
 0x439   :  { %1073 = vmatpush.msrb.mxu1 %v1667_v61  ;;  %v706_v12 = vpop.xlane.xlu0 %705 }
 0x43a   :  { %1740 = vrcp.f32 %v706_v12 }
 0x43b   :  { %1074 = vmatpush.msrb.mxu1 %v1668_v54 }
 0x43c   :  { %v831_v54 = vpop.f32.mrf.mxu2 }
 0x43d   :  { %v1641_v5 = vpop.permute.xlu1 %1640  ;;  %1595 = vmatmul.msk.f32.vlgmr.msrb.gmra.mxu0 %vm577_vm1, %v798_v63 }
 0x43e   :  { %v1643_v46 = vunpack.i.h.bf16 %v1641_v5  ;;  %v1642_v6 = vunpack.i.l.bf16 %v1641_v5 }
 0x440   :  { %863 = vmatpush.msra.mxu3 %v1642_v6  ;;  %968 = vmatpush.msrb.mxu2 %v1643_v46  ;;  %v1741_v10 = vpop.eup %1740 }
 0x441   :  { %v709_v21 = vpop.xlane.xlu0 %708  ;;  %v748_v36 = vmul.f32 %v1741_v10, %v706_v12 }
 0x442   :  { %864 = vmatpush.msra.mxu3 %v1647_v13  ;;  %969 = vmatpush.msrb.mxu2 %v1648_v9  ;;  %1742 = vrcp.f32 %v709_v21  ;;  %v1145_v9 = vld [vmem:[%s2535_s4 + $0x10] sm:$0xff]  ;;  %v1144_v13 = vld [vmem:[%s2535_s4 + $0x8] sm:$0xff] }
 0x443   :  { %1585 = vmatmul.msk.f32.vlgmr.msra.gmra.mxu3 %vm577_vm1, %v788_v34  ;;  %1591 = vmatmul.msk.f32.vlgmr.msrb.gmra.mxu2 %vm577_vm1, %v794_v19  ;;  %v764_v59 = vsub.f32 2.0, %v748_v36  ;;  %v1143_v34 = vld [vmem:[%s2535_s4] sm:$0xff] }
 0x444   :  { %1003 = vmatpush.msrb.mxu3 %v1662_v40  ;;  %v834_v48 = vpop.f32.mrf.mxu2  ;;  %1175 = vmatpush.msra.mxu2 %v1146_v8 }
 0x445   :  { %1596 = vmatmul.msk.f32.gmra.mxu0 %vm577_vm1, %v799_v41  ;;  %v780_v52 = vmul.f32 %v1741_v10, %v764_v59 }
 0x446   :  { %1004 = vmatpush.msrb.mxu3 %v1663_v11  ;;  %1176 = vmatpush.msra.mxu2 %v1145_v9 }
 0x447   :  { %v796_v35 = vmul.f32 %v2294_v32, %v780_v52 }
 0x448   :  { %v1743_v29 = vpop.eup %1742  ;;  %1177 = vmatpush.msra.mxu2 %v1144_v13  ;;  %v1303_v13 = vld [vmem:[#allocation5 + $0x18] sm:$0xff] }
 0x449   :  { %v749_v3 = vmul.f32 %v1743_v29, %v709_v21  ;;  %1332 = vmatpush.msra.mxu3 %v1303_v13 }
 0x44a   :  { %1178 = vmatpush.msra.mxu2 %v1143_v34  ;;  %v1302_v34 = vld [vmem:[#allocation5 + $0x10] sm:$0xff] }
 0x44b   :  { %1586 = vmatmul.msk.f32.gmra.mxu3 %vm577_vm1, %v789_v27  ;;  %1592 = vmatmul.msk.f32.gmra.mxu2 %vm577_vm1, %v795_v26  ;;  %v765_v25 = vsub.f32 2.0, %v749_v3 }
 0x44c   :  { %1333 = vmatpush.msra.mxu3 %v1302_v34  ;;  %v1471_v34 = vld [vmem:[%s2541_s10 + $0x30] sm:$0xff] }
 0x44d   :  { %v781_v30 = vmul.f32 %v1743_v29, %v765_v25 }
 0x44f   :  { %v797_v49 = vmul.f32 %v2304_v38, %v781_v30 }
 0x453   :  { %1593 = vmatmul.msk.f32.vlgmr.msrb.gmra.mxu3 %vm577_vm1, %v796_v35 }
 0x45b   :  { %1594 = vmatmul.msk.f32.gmra.mxu3 %vm577_vm1, %v797_v49 }
 0x468   :  { %v697_v57 = vpop.xlane.xlu1 %696 }
 0x469   :  { %1744 = vrcp.f32 %v697_v57 }
 0x46f   :  { %v1745_v23 = vpop.eup %1744 }
 0x470   :  { %v745_v37 = vmul.f32 %v1745_v23, %v697_v57  ;;  %v718_v2 = vpop.xlane.xlu1 %717 }
 0x471   :  { %1746 = vrcp.f32 %v718_v2 }
 0x472   :  { %v761_v15 = vsub.f32 2.0, %v745_v37 }
 0x474   :  { %v777_v7 = vmul.f32 %v1745_v23, %v761_v15 }
 0x476   :  { %v793_v43 = vmul.f32 %v2313_v51, %v777_v7 }
 0x477   :  { %v1747_v33 = vpop.eup %1746 }
 0x478   :  { %v752_v32 = vmul.f32 %v1747_v33, %v718_v2  ;;  %v721_v39 = vpop.xlane.xlu1 %720  ;;  %1590 = vmatmul.msk.f32.gmra.mxu1 %vm577_vm1, %v793_v43  ;;  %v1671_v2 = vld [vmem:[%s2536_s5] ss:$0 sm:$0xff]  ;;  %s1533_s5 = sshll.u32 %s2543_s12, 4  ;;  %s1534_s5 = int_to_ptr.hbm [resolvable:$true] %s1533_s5 }
 0x479   :  { %1748 = vrcp.f32 %v721_v39 }
 0x47a   :  { %v768_v45 = vsub.f32 2.0, %v752_v32 }
 0x47c   :  { %v784_v38 = vmul.f32 %v1747_v33, %v768_v45 }
 0x47e   :  { %v800_v42 = vmul.f32 %v2318_v55, %v784_v38 }
 0x47f   :  { %v1749_v44 = vpop.eup %1748 }
 0x480   :  { %v753_v58 = vmul.f32 %v1749_v44, %v721_v39  ;;  %1597 = vmatmul.msk.f32.vlgmr.msrb.gmra.mxu1 %vm577_vm1, %v800_v42 }
 0x482   :  { %v769_v61 = vsub.f32 2.0, %v753_v58 }
 0x484   :  { %v785_v1 = vmul.f32 %v1749_v44, %v769_v61 }
 0x486   :  { %v801_v47 = vmul.f32 %v2322_v53, %v785_v1 }
 0x488   :  { %1598 = vmatmul.msk.f32.gmra.mxu1 %vm577_vm1, %v801_v47 }
 0x4a2   :  { %v901_v51 = vpop.f32.mrf.mxu0 }
 0x4a3   :  { %1086 = vrot.lane.b32.xlu1 %v901_v51, %s1855_s14 }
 0x4a7   :  { %v936_v62 = vpop.f32.mrf.mxu1 }
 0x4b2   :  { %v904_v50 = vpop.f32.mrf.mxu0 }
 0x4ba   :  { %v1041_v12 = vpop.f32.mrf.mxu0 }
 0x4c2   :  { %v1044_v63 = vpop.f32.mrf.mxu0 }
 0x4c3   :  { %1120 = vrot.lane.b32.xlu0 %v1044_v63, %s1862_s8 }
 0x4c6   :  { %v866_v55 = vpop.f32.mrf.mxu3  ;;  %v971_v56 = vpop.f32.mrf.mxu2 }
 0x4c7   :  { %1102 = vrot.lane.b32.xlu2 %v971_v56, %s1863_s16 }
 0x4ce   :  { %v869_v60 = vpop.f32.mrf.mxu3  ;;  %v974_v0 = vpop.f32.mrf.mxu2 }
 0x4cf   :  { %1104 = vrot.lane.b32.xlu1 %v974_v0, %s1863_s16  ;;  %1088 = vrot.lane.b32.xlu2 %v904_v50, %s1855_s14 }
 0x4d6   :  { %v1006_v53 = vpop.f32.mrf.mxu3 }
 0x4d7   :  { %1106 = vrot.lane.b32.xlu1 %v1006_v53, %s1863_s16  ;;  %1118 = vrot.lane.b32.xlu2 %v1041_v12, %s1862_s8 }
 0x4de   :  { %v1009_v46 = vpop.f32.mrf.mxu3 }
 0x4df   :  { %1090 = vrot.lane.b32.xlu2 %v936_v62, %s1855_s14 }
 0x4f5   :  { %v939_v4 = vpop.f32.mrf.mxu1 }
 0x4f6   :  { %1092 = vrot.lane.b32.xlu1 %v939_v4, %s1855_s14 }
 0x4fd   :  { %v1076_v5 = vpop.f32.mrf.mxu1 }
 0x4fe   :  { %1122 = vrot.lane.b32.xlu2 %v1076_v5, %s1862_s8 }
 0x505   :  { %v1079_v6 = vpop.f32.mrf.mxu1 }
 0x506   :  { %1108 = vrot.lane.b32.xlu2 %v1009_v46, %s1863_s16  ;;  %1124 = vrot.lane.b32.xlu0 %v1079_v6, %s1862_s8 }
 0x515   :  { %v1087_v19 = vpop.permute.xlu1 %1086 }
 0x516   :  { %v1130_v21 = vsel %vm265_vm14, %v831_v54, %v1087_v19 }
 0x521   :  { %v1103_v16 = vpop.permute.xlu2 %1102 }
 0x522   :  { %v1134_v10 = vsel %vm577_vm1, %v1130_v21, %v1103_v16  ;;  %v1301_v16 = vld [vmem:[#allocation5 + $0x8] sm:$0xff] }
 0x523   :  { %1334 = vmatpush.msra.mxu3 %v1301_v16 }
 0x529   :  { %v1089_v17 = vpop.permute.xlu2 %1088 }
 0x52a   :  { %v1131_v11 = vsel %vm265_vm14, %v834_v48, %v1089_v17  ;;  %v1300_v17 = vld [vmem:[#allocation5] sm:$0xff] }
 0x52b   :  { %1335 = vmatpush.msra.mxu3 %v1300_v17  ;;  %v1470_v17 = vld [vmem:[%s2541_s10 + $0x28] sm:$0xff] }
 0x531   :  { %v1119_v40 = vpop.permute.xlu2 %1118 }
 0x532   :  { %v1139_v41 = vsel %vm1138_vm2, %v1134_v10, %v1119_v40 }
 0x533   :  { %1599 = vmatmul.msk.f32.vlgmr.msra.gmra.mxu2 %vm78_vm0, %v1139_v41 }
 0x535   :  { %v1121_v22 = vpop.permute.xlu0 %1120 }
 0x539   :  { %v1091_v27 = vpop.permute.xlu2 %1090 }
 0x53a   :  { %v1132_v29 = vsel %vm265_vm14, %v866_v55, %v1091_v27 }
 0x541   :  { %v1105_v24 = vpop.permute.xlu1 %1104 }
 0x542   :  { %v1135_v36 = vsel %vm577_vm1, %v1131_v11, %v1105_v24 }
 0x543   :  { %v1140_v59 = vsel %vm1138_vm2, %v1135_v36, %v1121_v22 }
 0x544   :  { %1600 = vmatmul.msk.f32.gmra.mxu2 %vm78_vm0, %v1140_v59 }
 0x549   :  { %v1107_v26 = vpop.permute.xlu1 %1106 }
 0x54a   :  { %v1136_v52 = vsel %vm577_vm1, %v1132_v29, %v1107_v26  ;;  %v1672_v29 = vld [vmem:[%s2537_s6] ss:$0 sm:$0xff] }
 0x558   :  { %v1123_v3 = vpop.permute.xlu2 %1122 }
 0x559   :  { %v1141_v35 = vsel %vm1138_vm2, %v1136_v52, %v1123_v3 }
 0x55a   :  { %1601 = vmatmul.msk.f32.gmra.mxu2 %vm78_vm0, %v1141_v35  ;;  %v1673_v35 = vld [vmem:[%s2538_s7] ss:$0 sm:$0xff] }
 0x560   :  { %v1109_v49 = vpop.permute.xlu2 %1108 }
 0x568   :  { %v1093_v25 = vpop.permute.xlu1 %1092 }
 0x569   :  { %v1133_v30 = vsel %vm265_vm14, %v869_v60, %v1093_v25 }
 0x56a   :  { %v1137_v23 = vsel %vm577_vm1, %v1133_v30, %v1109_v49  ;;  %vm1477_vm1 = vcmask 523264  }
 0x578   :  { %v1125_v57 = vpop.permute.xlu0 %1124 }
 0x579   :  { %v1142_v37 = vsel %vm1138_vm2, %v1137_v23, %v1125_v57 }
 0x57a   :  { %1602 = vmatmul.msk.f32.gmra.mxu2 %vm78_vm0, %v1142_v37 }
 0x5b6   :  { %v1180_v15 = vpop.f32.mrf.mxu2 }
 0x5b7   :  { %v1181_v7 = vadd.f32 %v1671_v2, %v1180_v15 }
 0x5b9   :  { %v1192_v43 = vadd.f32 %v1181_v7, %v2003_v18 }
 0x5bb   :  { %v1198_v33 = vsel %vm78_vm0, %v1192_v43, 0.0 }
 0x5bc   :  { %1199 = vadd.xlane.f32.xlu1 %v1198_v33 }
 0x5c7   :  { %v1183_v32 = vpop.f32.mrf.mxu2 }
 0x5c8   :  { %v1184_v39 = vadd.f32 %v1671_v2, %v1183_v32 }
 0x5ca   :  { %v1193_v45 = vadd.f32 %v1184_v39, %v2015_v31 }
 0x5cc   :  { %v1201_v38 = vsel %vm78_vm0, %v1193_v45, 0.0 }
 0x5cd   :  { %1202 = vadd.xlane.f32.xlu2 %v1201_v38 }
 0x5dd   :  { %v1186_v42 = vpop.f32.mrf.mxu2 }
 0x5de   :  { %v1187_v44 = vadd.f32 %v1671_v2, %v1186_v42 }
 0x5e0   :  { %v1194_v58 = vadd.f32 %v1187_v44, %v2005_v20 }
 0x5e2   :  { %v1204_v61 = vsel %vm78_vm0, %v1194_v58, 0.0 }
 0x5e3   :  { %1205 = vadd.xlane.f32.xlu0 %v1204_v61 }
 0x5fd   :  { %v1189_v1 = vpop.f32.mrf.mxu2 }
 0x5fe   :  { %v1190_v47 = vadd.f32 %v1671_v2, %v1189_v1 }
 0x600   :  { %v1195_v18 = vadd.f32 %v1190_v47, %v2013_v28 }
 0x602   :  { %v1207_v51 = vsel %vm78_vm0, %v1195_v18, 0.0 }
 0x603   :  { %1208 = vadd.xlane.f32.xlu1 %v1207_v51 }
 0x62f   :  { %v1200_v50 = vpop.xlane.xlu1 %1199 }
 0x630   :  { %v1210_v31 = vmul.f32 %v1200_v50, %v1956_v14 }
 0x632   :  { %v1214_v54 = vsub.f32 %v1192_v43, %v1210_v31 }
 0x634   :  { %v1218_v12 = vmul.f32 %v1214_v54, %v1214_v54 }
 0x636   :  { %v1222_v48 = vsel %vm78_vm0, %v1218_v12, 0.0 }
 0x637   :  { %1223 = vadd.xlane.f32.xlu2 %v1222_v48 }
 0x640   :  { %v1203_v63 = vpop.xlane.xlu2 %1202 }
 0x641   :  { %v1211_v20 = vmul.f32 %v1203_v63, %v1956_v14 }
 0x643   :  { %v1215_v55 = vsub.f32 %v1193_v45, %v1211_v20 }
 0x645   :  { %v1219_v56 = vmul.f32 %v1215_v55, %v1215_v55 }
 0x647   :  { %v1225_v60 = vsel %vm78_vm0, %v1219_v56, 0.0 }
 0x648   :  { %1226 = vadd.xlane.f32.xlu0 %v1225_v60 }
 0x656   :  { %v1206_v28 = vpop.xlane.xlu0 %1205 }
 0x657   :  { %v1212_v0 = vmul.f32 %v1206_v28, %v1956_v14 }
 0x659   :  { %v2410_v53 = vsub.f32 %v1194_v58, %v1212_v0 }
 0x65b   :  { %v1220_v62 = vmul.f32 %v2410_v53, %v2410_v53 }
 0x65d   :  { %v1228_v4 = vsel %vm78_vm0, %v1220_v62, 0.0 }
 0x65e   :  { %1229 = vadd.xlane.f32.xlu1 %v1228_v4 }
 0x676   :  { %v1209_v5 = vpop.xlane.xlu1 %1208 }
 0x677   :  { %v1213_v46 = vmul.f32 %v1209_v5, %v1956_v14 }
 0x679   :  { %v2416_v6 = vsub.f32 %v1195_v18, %v1213_v46 }
 0x67b   :  { %v1221_v8 = vmul.f32 %v2416_v6, %v2416_v6 }
 0x67d   :  { %v1231_v9 = vsel %vm78_vm0, %v1221_v8, 0.0 }
 0x67e   :  { %1232 = vadd.xlane.f32.xlu2 %v1231_v9  ;;  %v1472_v9 = vld [vmem:[%s2541_s10 + $0x38] sm:$0xff] }
 0x67f   :  { %1498 = vmatpush.msra.mxu0 %v1472_v9 }
 0x681   :  { %1499 = vmatpush.msra.mxu0 %v1471_v34 }
 0x683   :  { %1500 = vmatpush.msra.mxu0 %v1470_v17 }
 0x6aa   :  { %v1224_v19 = vpop.xlane.xlu2 %1223 }
 0x6ab   :  { %v1234_v21 = vmul.f32 %v1224_v19, %v1956_v14  ;;  %v1469_v19 = vld [vmem:[%s2541_s10 + $0x20] sm:$0xff] }
 0x6ac   :  { %1501 = vmatpush.msra.mxu0 %v1469_v19 }
 0x6ad   :  { %v1238_v10 = vadd.f32 1e-05, %v1234_v21  ;;  %v1468_v21 = vld [vmem:[%s2541_s10 + $0x18] sm:$0xff] }
 0x6ae   :  { %1502 = vmatpush.msra.mxu0 %v1468_v21 }
 0x6af   :  { %1750 = vrsqrt.f32 %v1238_v10  ;;  %vm1248_vm4 = vweird.f32 %v1238_v10 }
 0x6b5   :  { %v1751_v40 = vpop.eup %1750 }
 0x6b6   :  { %v1243_v41 = vmul.f32 %v1751_v40, %v1238_v10  ;;  %vm1249_vm3 = vweird.f32 %v1751_v40  ;;  %v1467_v10 = vld [vmem:[%s2541_s10 + $0x10] sm:$0xff] }
 0x6b7   :  { %vm1250_vm5 = vmor %vm1248_vm4, %vm1249_vm3  ;;  %1503 = vmatpush.msra.mxu0 %v1467_v10 }
 0x6b8   :  { %v1244_v11 = vmul.f32 %v1751_v40, %v1243_v41 }
 0x6ba   :  { %v1245_v24 = vmul.f32 0.5, %v1244_v11  ;;  %v1466_v11 = vld [vmem:[%s2541_s10 + $0x8] sm:$0xff] }
 0x6bb   :  { %v1227_v22 = vpop.xlane.xlu0 %1226  ;;  %1504 = vmatpush.msra.mxu0 %v1466_v11 }
 0x6bc   :  { %v1246_v36 = vsub.f32 1.5, %v1245_v24  ;;  %v1235_v59 = vmul.f32 %v1227_v22, %v1956_v14 }
 0x6be   :  { %v1247_v27 = vmul.f32 %v1751_v40, %v1246_v36  ;;  %v1239_v26 = vadd.f32 1e-05, %v1235_v59  ;;  %v1465_v36 = vld [vmem:[%s2541_s10] sm:$0xff] }
 0x6bf   :  { %1505 = vmatpush.msra.mxu0 %v1465_v36 }
 0x6c0   :  { %v1251_v52 = vsel %vm1250_vm5, %v1751_v40, %v1247_v27  ;;  %1752 = vrsqrt.f32 %v1239_v26  ;;  %vm1258_vm7 = vweird.f32 %v1239_v26 }
 0x6c1   :  { %v1282_v3 = vmul.f32 %v1251_v52, %v1214_v54 }
 0x6c3   :  { %v1289_v25 = vmul.f32 %v1672_v29, %v1282_v3 }
 0x6c5   :  { %v2429_v30 = vadd.f32 %v1673_v35, %v1289_v25 }
 0x6c6   :  { %v1753_v49 = vpop.eup %1752 }
 0x6c7   :  { %v1253_v57 = vmul.f32 %v1753_v49, %v1239_v26  ;;  %1603 = vmatmul.msk.f32.vlgmr.msra.gmra.mxu3 %vm78_vm0, %v2429_v30  ;;  %vm1259_vm6 = vweird.f32 %v1753_v49 }
 0x6c8   :  { %vm1260_vm8 = vmor %vm1258_vm7, %vm1259_vm6 }
 0x6c9   :  { %v1254_v23 = vmul.f32 %v1753_v49, %v1253_v57 }
 0x6cb   :  { %v1255_v37 = vmul.f32 0.5, %v1254_v23 }
 0x6cd   :  { %v1256_v2 = vsub.f32 1.5, %v1255_v37 }
 0x6cf   :  { %v1257_v15 = vmul.f32 %v1753_v49, %v1256_v2 }
 0x6d1   :  { %v1261_v7 = vsel %vm1260_vm8, %v1753_v49, %v1257_v15  ;;  %v1230_v43 = vpop.xlane.xlu1 %1229 }
 0x6d2   :  { %v1236_v33 = vmul.f32 %v1230_v43, %v1956_v14  ;;  %v1283_v32 = vmul.f32 %v1261_v7, %v1215_v55 }
 0x6d4   :  { %v1240_v39 = vadd.f32 1e-05, %v1236_v33  ;;  %v1290_v45 = vmul.f32 %v1672_v29, %v1283_v32 }
 0x6d6   :  { %1754 = vrsqrt.f32 %v1240_v39  ;;  %v2434_v38 = vadd.f32 %v1673_v35, %v1290_v45  ;;  %vm1268_vm10 = vweird.f32 %v1240_v39 }
 0x6d8   :  { %1604 = vmatmul.msk.f32.gmra.mxu3 %vm78_vm0, %v2434_v38 }
 0x6dc   :  { %v1755_v42 = vpop.eup %1754 }
 0x6dd   :  { %v1263_v44 = vmul.f32 %v1755_v42, %v1240_v39  ;;  %vm1269_vm9 = vweird.f32 %v1755_v42 }
 0x6de   :  { %vm1270_vm11 = vmor %vm1268_vm10, %vm1269_vm9 }
 0x6df   :  { %v1264_v58 = vmul.f32 %v1755_v42, %v1263_v44 }
 0x6e1   :  { %v1265_v61 = vmul.f32 0.5, %v1264_v58 }
 0x6e3   :  { %v1266_v1 = vsub.f32 1.5, %v1265_v61 }
 0x6e5   :  { %v1267_v47 = vmul.f32 %v1755_v42, %v1266_v1 }
 0x6e7   :  { %v1271_v18 = vsel %vm1270_vm11, %v1755_v42, %v1267_v47 }
 0x6e8   :  { %v1284_v51 = vmul.f32 %v1271_v18, %v2410_v53 }
 0x6ea   :  { %v1291_v50 = vmul.f32 %v1672_v29, %v1284_v51 }
 0x6ec   :  { %v2439_v31 = vadd.f32 %v1673_v35, %v1291_v50 }
 0x6ee   :  { %1605 = vmatmul.msk.f32.gmra.mxu3 %vm78_vm0, %v2439_v31 }
 0x6f1   :  { %v1233_v54 = vpop.xlane.xlu2 %1232 }
 0x6f2   :  { %v1237_v12 = vmul.f32 %v1233_v54, %v1956_v14  ;;  %v2452_v14 = vld [vmem:[%s2540_s9] ss:$0 sm:$0xff] }
 0x6f4   :  { %v1241_v48 = vadd.f32 1e-05, %v1237_v12 }
 0x6f6   :  { %1756 = vrsqrt.f32 %v1241_v48  ;;  %vm1278_vm13 = vweird.f32 %v1241_v48 }
 0x6fc   :  { %v1757_v63 = vpop.eup %1756 }
 0x6fd   :  { %v1273_v20 = vmul.f32 %v1757_v63, %v1241_v48  ;;  %vm1279_vm12 = vweird.f32 %v1757_v63 }
 0x6fe   :  { %vm1280_vm14 = vmor %vm1278_vm13, %vm1279_vm12 }
 0x6ff   :  { %v1274_v55 = vmul.f32 %v1757_v63, %v1273_v20  ;;  %v1864_v20 = vmov -1.0  }
 0x701   :  { %v1275_v56 = vmul.f32 0.5, %v1274_v55 }
 0x703   :  { %v1276_v60 = vsub.f32 1.5, %v1275_v56 }
 0x705   :  { %v1277_v28 = vmul.f32 %v1757_v63, %v1276_v60 }
 0x707   :  { %v1281_v0 = vsel %vm1280_vm14, %v1757_v63, %v1277_v28 }
 0x708   :  { %v1285_v53 = vmul.f32 %v1281_v0, %v2416_v6 }
 0x70a   :  { %v1292_v62 = vmul.f32 %v1672_v29, %v1285_v53 }
 0x70c   :  { %v2445_v4 = vadd.f32 %v1673_v35, %v1292_v62 }
 0x70e   :  { %1606 = vmatmul.msk.f32.gmra.mxu3 %vm78_vm0, %v2445_v4 }
 0x74a   :  { %v1337_v5 = vpop.f32.mrf.mxu3 }
 0x74b   :  { %v2455_v46 = vadd.f32 %v2452_v14, %v1337_v5 }
 0x74d   :  { %v2458_v8 = vmul.f32 0.70710677, %v2455_v46  ;;  %v1349_v53 = vmul.f32 0.5, %v2455_v46 }
 0x74f   :  { %v1365_v6 = vand.u32 2147483647, %v2458_v8  ;;  %vm1357_vm15 = vcmp.ge.f32.partialorder %v2458_v8, 0.0 }
 0x750   :  { %v1361_v55 = vsel %vm1357_vm15, 1.0, %v1864_v20 }
 0x751   :  { %v1369_v13 = vmul.f32 0.3275911, %v1365_v6  ;;  %v1429_v52 = vsub.f32 0.0, %v1365_v6 }
 0x753   :  { %v1373_v16 = vadd.f32 1.0, %v1369_v13  ;;  %v1433_v57 = vmul.f32 %v1429_v52, %v1365_v6 }
 0x755   :  { %1758 = vrcp.f32 %v1373_v16  ;;  %v1437_v2 = vmul.f32 1.442695, %v1433_v57 }
 0x75b   :  { %v1759_v40 = vpop.eup %1758  ;;  %v1340_v41 = vpop.f32.mrf.mxu3 }
 0x75c   :  { %v1381_v24 = vmul.f32 %v1759_v40, %v1373_v16  ;;  %v2483_v22 = vadd.f32 %v2452_v14, %v1340_v41 }
 0x75e   :  { %v1385_v59 = vsub.f32 2.0, %v1381_v24  ;;  %v2489_v27 = vmul.f32 0.70710677, %v2483_v22 }
 0x760   :  { %v1389_v26 = vmul.f32 %v1759_v40, %v1385_v59  ;;  %v1366_v29 = vand.u32 2147483647, %v2489_v27  ;;  %vm1358_vm2 = vcmp.ge.f32.partialorder %v2489_v27, 0.0 }
 0x761   :  { %v1362_v24 = vsel %vm1358_vm2, 1.0, %v1864_v20 }
 0x762   :  { %v1393_v3 = vmul.f32 1.0614054, %v1389_v26  ;;  %v1370_v35 = vmul.f32 0.3275911, %v1366_v29  ;;  %v1430_v61 = vsub.f32 0.0, %v1366_v29 }
 0x764   :  { %v1397_v25 = vadd.f32 -1.4531521, %v1393_v3  ;;  %v1374_v49 = vadd.f32 1.0, %v1370_v35  ;;  %v1434_v48 = vmul.f32 %v1430_v61, %v1366_v29  ;;  %v1350_v29 = vmul.f32 0.5, %v2483_v22 }
 0x766   :  { %v1401_v23 = vmul.f32 %v1397_v25, %v1389_v26  ;;  %1760 = vrcp.f32 %v1374_v49  ;;  %v1439_v5 = vmul.f32 1.442695, %v1434_v48 }
 0x767   :  { %1762 = vpow2.f32 %v1437_v2 }
 0x768   :  { %v1405_v37 = vadd.f32 1.4214138, %v1401_v23 }
 0x76a   :  { %v1409_v15 = vmul.f32 %v1405_v37, %v1389_v26 }
 0x76c   :  { %v1761_v7 = vpop.eup %1760  ;;  %v1413_v43 = vadd.f32 -0.28449672, %v1409_v15 }
 0x76d   :  { %v1382_v33 = vmul.f32 %v1761_v7, %v1374_v49  ;;  %v1763_v47 = vpop.eup %1762 }
 0x76e   :  { %v1417_v32 = vmul.f32 %v1413_v43, %v1389_v26 }
 0x76f   :  { %v1386_v39 = vsub.f32 2.0, %v1382_v33 }
 0x770   :  { %v1421_v45 = vadd.f32 0.2548296, %v1417_v32 }
 0x771   :  { %v1390_v42 = vmul.f32 %v1761_v7, %v1386_v39  ;;  %v1343_v44 = vpop.f32.mrf.mxu3 }
 0x772   :  { %v1425_v58 = vmul.f32 %v1421_v45, %v1389_v26  ;;  %v2493_v1 = vadd.f32 %v2452_v14, %v1343_v44 }
 0x773   :  { %v1394_v18 = vmul.f32 1.0614054, %v1390_v42 }
 0x774   :  { %v1445_v51 = vmul.f32 %v1763_v47, %v1425_v58  ;;  %v2497_v50 = vmul.f32 0.70710677, %v2493_v1 }
 0x775   :  { %v1398_v54 = vadd.f32 -1.4531521, %v1394_v18 }
 0x776   :  { %v1449_v12 = vsub.f32 1.0, %v1445_v51  ;;  %v1367_v63 = vand.u32 2147483647, %v2497_v50  ;;  %vm1359_vm3 = vcmp.ge.f32.partialorder %v2497_v50, 0.0 }
 0x777   :  { %v1402_v56 = vmul.f32 %v1398_v54, %v1390_v42  ;;  %v1363_v61 = vsel %vm1359_vm3, 1.0, %v1864_v20 }
 0x778   :  { %v1453_v60 = vmul.f32 %v1449_v12, %v1361_v55  ;;  %v1371_v28 = vmul.f32 0.3275911, %v1367_v63  ;;  %v1431_v36 = vsub.f32 0.0, %v1367_v63 }
 0x779   :  { %v1406_v0 = vadd.f32 1.4214138, %v1402_v56 }
 0x77a   :  { %v1457_v62 = vadd.f32 1.0, %v1453_v60  ;;  %v1375_v8 = vadd.f32 1.0, %v1371_v28  ;;  %v1435_v35 = vmul.f32 %v1431_v36, %v1367_v63 }
 0x77b   :  { %v1410_v6 = vmul.f32 %v1406_v0, %v1390_v42 }
 0x77c   :  { %v1461_v9 = vmul.f32 %v1457_v62, %v1349_v53  ;;  %1764 = vrcp.f32 %v1375_v8  ;;  %v1441_v27 = vmul.f32 1.442695, %v1435_v35 }
 0x77d   :  { %v1414_v13 = vadd.f32 -0.28449672, %v1410_v6  ;;  %1766 = vpow2.f32 %v1439_v5 }
 0x77e   :  { %1607 = vmatmul.msk.f32.vlgmr.msra.gmra.mxu0 %vm1477_vm1, %v1461_v9  ;;  %1768 = vpow2.f32 %v1441_v27 }
 0x77f   :  { %v1418_v34 = vmul.f32 %v1414_v13, %v1390_v42 }
 0x781   :  { %v1422_v16 = vadd.f32 0.2548296, %v1418_v34 }
 0x782   :  { %v1765_v17 = vpop.eup %1764 }
 0x783   :  { %v1383_v19 = vmul.f32 %v1765_v17, %v1375_v8  ;;  %v1426_v21 = vmul.f32 %v1422_v16, %v1390_v42  ;;  %v1767_v10 = vpop.eup %1766 }
 0x784   :  { %v1769_v45 = vpop.eup %1768 }
 0x785   :  { %v1387_v46 = vsub.f32 2.0, %v1383_v19  ;;  %v1446_v40 = vmul.f32 %v1767_v10, %v1426_v21 }
 0x787   :  { %v1391_v41 = vmul.f32 %v1765_v17, %v1387_v46  ;;  %v1450_v11 = vsub.f32 1.0, %v1446_v40  ;;  %v1675_v46 = vld [vmem:[%s2542_s11] ss:$0 sm:$0xff]  ;;  %s1865_s11 = smov [#allocation7]  }
 0x788   :  { %s1531_s23 = sshll.u32 %s1865_s11, 4  ;;  %s1532_s23 = int_to_ptr.vmem [resolvable:$true] %s1531_s23 }
 0x789   :  { %v1454_v59 = vmul.f32 %v1450_v11, %v1362_v24  ;;  %v1395_v26 = vmul.f32 1.0614054, %v1391_v41 }
 0x78b   :  { %v1458_v52 = vadd.f32 1.0, %v1454_v59  ;;  %v1399_v3 = vadd.f32 -1.4531521, %v1395_v26 }
 0x78d   :  { %v1462_v25 = vmul.f32 %v1458_v52, %v1350_v29  ;;  %v1403_v49 = vmul.f32 %v1399_v3, %v1391_v41 }
 0x78f   :  { %1608 = vmatmul.msk.f32.gmra.mxu0 %vm1477_vm1, %v1462_v25  ;;  %v1407_v57 = vadd.f32 1.4214138, %v1403_v49 }
 0x791   :  { %v1346_v23 = vpop.f32.mrf.mxu3  ;;  %v1411_v37 = vmul.f32 %v1407_v57, %v1391_v41 }
 0x792   :  { %v1347_v2 = vadd.f32 %v2452_v14, %v1346_v23  ;;  %v1351_v14 = vmul.f32 0.5, %v2493_v1 }
 0x793   :  { %v1415_v15 = vadd.f32 -0.28449672, %v1411_v37 }
 0x794   :  { %v1356_v7 = vmul.f32 0.70710677, %v1347_v2  ;;  %v1352_v19 = vmul.f32 0.5, %v1347_v2 }
 0x795   :  { %v1419_v43 = vmul.f32 %v1415_v15, %v1391_v41 }
 0x796   :  { %v1368_v33 = vand.u32 2147483647, %v1356_v7  ;;  %vm1360_vm4 = vcmp.ge.f32.partialorder %v1356_v7, 0.0 }
 0x797   :  { %v1423_v32 = vadd.f32 0.2548296, %v1419_v43  ;;  %v1364_v16 = vsel %vm1360_vm4, 1.0, %v1864_v20 }
 0x798   :  { %v1372_v22 = vmul.f32 0.3275911, %v1368_v33  ;;  %v1432_v55 = vsub.f32 0.0, %v1368_v33 }
 0x799   :  { %v1427_v39 = vmul.f32 %v1423_v32, %v1391_v41 }
 0x79a   :  { %v1376_v42 = vadd.f32 1.0, %v1372_v22  ;;  %v1436_v50 = vmul.f32 %v1432_v55, %v1368_v33 }
 0x79b   :  { %v1447_v44 = vmul.f32 %v1769_v45, %v1427_v39 }
 0x79c   :  { %1770 = vrcp.f32 %v1376_v42  ;;  %v1443_v53 = vmul.f32 1.442695, %v1436_v50 }
 0x79d   :  { %v1451_v58 = vsub.f32 1.0, %v1447_v44 }
 0x79e   :  { %1772 = vpow2.f32 %v1443_v53 }
 0x79f   :  { %v1455_v47 = vmul.f32 %v1451_v58, %v1363_v61 }
 0x7a1   :  { %v1459_v18 = vadd.f32 1.0, %v1455_v47 }
 0x7a2   :  { %v1771_v51 = vpop.eup %1770 }
 0x7a3   :  { %v1384_v54 = vmul.f32 %v1771_v51, %v1376_v42  ;;  %v1463_v12 = vmul.f32 %v1459_v18, %v1351_v14 }
 0x7a4   :  { %v1773_v9 = vpop.eup %1772 }
 0x7a5   :  { %v1388_v48 = vsub.f32 2.0, %v1384_v54  ;;  %1609 = vmatmul.msk.f32.gmra.mxu0 %vm1477_vm1, %v1463_v12 }
 0x7a7   :  { %v1392_v63 = vmul.f32 %v1771_v51, %v1388_v48 }
 0x7a9   :  { %v1396_v56 = vmul.f32 1.0614054, %v1392_v63 }
 0x7ab   :  { %v1400_v60 = vadd.f32 -1.4531521, %v1396_v56 }
 0x7ad   :  { %v1404_v28 = vmul.f32 %v1400_v60, %v1392_v63 }
 0x7af   :  { %v1408_v0 = vadd.f32 1.4214138, %v1404_v28 }
 0x7b1   :  { %v1412_v62 = vmul.f32 %v1408_v0, %v1392_v63 }
 0x7b3   :  { %v1416_v5 = vadd.f32 -0.28449672, %v1412_v62 }
 0x7b5   :  { %v1420_v8 = vmul.f32 %v1416_v5, %v1392_v63 }
 0x7b7   :  { %v1424_v1 = vadd.f32 0.2548296, %v1420_v8 }
 0x7b9   :  { %v1428_v6 = vmul.f32 %v1424_v1, %v1392_v63 }
 0x7bb   :  { %v1448_v13 = vmul.f32 %v1773_v9, %v1428_v6 }
 0x7bd   :  { %v1452_v34 = vsub.f32 1.0, %v1448_v13 }
 0x7bf   :  { %v1456_v17 = vmul.f32 %v1452_v34, %v1364_v16 }
 0x7c1   :  { %v1460_v21 = vadd.f32 1.0, %v1456_v17 }
 0x7c3   :  { %v1464_v10 = vmul.f32 %v1460_v21, %v1352_v19 }
 0x7c5   :  { %1610 = vmatmul.msk.f32.gmra.mxu0 %vm1477_vm1, %v1464_v10 }
 0x7fb   :  { %v1507_v40 = vpop.f32.mrf.mxu0 }
 0x7fc   :  { %v1508_v41 = vadd.f32 %v1675_v46, %v1507_v40 }
 0x7fe   :  { %v1519_v11 = vadd.f32 %v1508_v41, %v2429_v30 }
 0x800   :  { %1523 = vst.msk [vmem:[#allocation7] sm:$0xff] %vm78_vm0, %v1519_v11 }
 0x80c   :  { %v1510_v24 = vpop.f32.mrf.mxu0 }
 0x80d   :  { %v1511_v36 = vadd.f32 %v1675_v46, %v1510_v24 }
 0x80f   :  { %v1520_v20 = vadd.f32 %v1511_v36, %v2434_v38 }
 0x811   :  { %1524 = vst.msk [vmem:[#allocation7 + $0x8] sm:$0xff] %vm78_vm0, %v1520_v20 }
 0x822   :  { %v1513_v59 = vpop.f32.mrf.mxu0 }
 0x823   :  { %v1514_v26 = vadd.f32 %v1675_v46, %v1513_v59 }
 0x825   :  { %v1521_v29 = vadd.f32 %v1514_v26, %v2439_v31 }
 0x827   :  { %1525 = vst.msk [vmem:[#allocation7 + $0x10] sm:$0xff] %vm78_vm0, %v1521_v29 }
 0x842   :  { %v1516_v52 = vpop.f32.mrf.mxu0 }
 0x843   :  { %v1517_v30 = vadd.f32 %v1675_v46, %v1516_v52 }
 0x845   :  { %v1522_v3 = vadd.f32 %v1517_v30, %v2445_v4 }
 0x847   :  { %1526 = vst.msk [vmem:[#allocation7 + $0x18] sm:$0xff] %vm78_vm0, %v1522_v3 }
 0x848   :  { %1539 = dma.vmem_to_hbm [thread:$0]  %s1532_s23, 512, %s1534_s5, [#allocation4], %s1854_s13, %s1854_s13, %s1855_s14  }
 0x849   :  { %1850 = dma.done.wait [#allocation4], 512  }
 0x84a   :  { %1851 = vsyncadd [#allocation4], 4294966784 }
 0x84b   :  { %1544 = vsyncpa [#allocation3], 1 }
 0x84c   :  { %1545 = vsyncpa [#allocation6], 1 }
 0x84d   :  { %1546 = vsyncpa [#allocation4], 1 }

</bundles_post_ra>
